<compile_context>
chip_gen: v5e
topology: v5e:2x2
jax: 0.10.0
libtpu: 0.0.40
codegen_flags: <defaults>
</compile_context>

<pallas_src>
import math

import jax
import jax.numpy as jnp
from jax.experimental import pallas as pl
from jax.experimental.pallas import tpu as pltpu


def _round_up(x, m):
    return (x + m - 1) // m * m


def _largest_divisor_tile(total, candidates):
    for c in candidates:
        if c <= total and total % c == 0:
            return c
    return total


def _pick_batches_per_tile(batch, tgt_len, max_rows=256):
    """Largest divisor of `batch` whose M = mb*T stays <= max_rows (MXU M tile)."""
    for c in range(batch, 0, -1):
        if batch % c == 0 and c * tgt_len <= max(max_rows, tgt_len):
            return c
    return 1


def _vmem_limit_bytes(*blocks):
    """Explicit scoped-VMEM budget: 2x (double-buffered) per-step blocks plus
    slack for f32 intermediates, capped below v7x's 64 MiB physical VMEM."""
    per_step = sum(math.prod(shape) * jnp.dtype(dtype).itemsize
                   for shape, dtype in blocks)
    return int(min(64 * 1024 * 1024,
                   max(16 * 1024 * 1024, 2 * per_step + 8 * 1024 * 1024)))


# --------------------- Kernel A: per-key encoder + attention -----------------

def _feature_kernel(src_len_ref, src_emb_ref, tgt_emb_ref, w_enc_ref, feat_ref):
    """One grid step == one language-pair model (key); full batch per step.

    Refs (grid step k):
      src_len_ref : (B,)            int32  SMEM (scalar prefetch)
      src_emb_ref : (1, B, Sp, D)   bf16   source embeddings, S padded to 128*
      tgt_emb_ref : (1, B, T, D)    bf16   target (prev_output) embeddings
      w_enc_ref   : (1, D, D)       bf16   encoder projection for key k
      feat_ref    : (1, B, T, D)    bf16   decoder features (pre output layer)
    """
    src = src_emb_ref[0]                       # (B, Sp, D) bf16
    tgt = tgt_emb_ref[0]                       # (B, T, D)  bf16
    w_enc = w_enc_ref[0]                       # (D, D)     bf16

    b, sp, d = src.shape
    scale = 1.0 / (float(d) ** 0.5)

    # ---- encoder: one M = B*Sp MXU matmul (f32 accumulation).
    enc = jnp.dot(src.reshape(b * sp, d), w_enc,
                  preferred_element_type=jnp.float32)            # (B*Sp, D) f32
    enc = enc.reshape(b, sp, d).astype(jnp.bfloat16)

    # ---- cross-attention scores: batched contraction on last dims
    #      (no enc.T materialized), lane-dense Sp (multiple of 128).
    scores = jnp.einsum("btd,bsd->bts", tgt, enc,
                        preferred_element_type=jnp.float32)      # (B, T, Sp) f32
    scores = scores * scale

    # ---- src_lengths padding bias built in-kernel from SMEM scalars
    #      (removes the (B,1,S) mask input DMA stream).
    row = jax.lax.broadcasted_iota(jnp.int32, (b, 1, sp), 0)
    col = jax.lax.broadcasted_iota(jnp.int32, (b, 1, sp), 2)
    bias = jnp.zeros((b, 1, sp), jnp.float32)
    for i in range(b):                         # b is small & static
        bias = jnp.where((row == i) & (col >= src_len_ref[i]), -1e9, bias)
    scores = scores + bias

    # ---- softmax (f32 math; reciprocal rides the EUP slot).
    m = jnp.max(scores, axis=-1, keepdims=True)
    p = jnp.exp(scores - m)
    denom = jnp.sum(p, axis=-1, keepdims=True)
    attn = p * pl.reciprocal(denom, approx=True)

    ctx = jnp.einsum("bts,bsd->btd", attn.astype(jnp.bfloat16), enc,
                     preferred_element_type=jnp.float32)         # (B, T, D) f32
    feat = tgt.astype(jnp.float32) + ctx                         # residual, f32
    feat_ref[0] = feat.astype(jnp.bfloat16)


def _feature_forward(src_lengths, src_emb, tgt_emb, w_enc):
    num_keys, batch, s_pad, dim = src_emb.shape
    tgt_len = tgt_emb.shape[2]

    cost = pl.CostEstimate(
        flops=int(2 * num_keys * batch
                  * (s_pad * dim * dim + 2 * tgt_len * s_pad * dim)),
        transcendentals=int(num_keys * batch * tgt_len * (s_pad + 1)),
        bytes_accessed=int((src_emb.size + tgt_emb.size + w_enc.size
                            + num_keys * batch * tgt_len * dim) * 2
                           + src_lengths.size * 4),
    )
    vmem = _vmem_limit_bytes(((1, batch, s_pad, dim), jnp.bfloat16),
                             ((1, batch, tgt_len, dim), jnp.bfloat16),
                             ((1, dim, dim), jnp.bfloat16),
                             ((1, batch, tgt_len, dim), jnp.bfloat16))

    return pl.pallas_call(
        _feature_kernel,
        out_shape=jax.ShapeDtypeStruct((num_keys, batch, tgt_len, dim),
                                       jnp.bfloat16),
        grid_spec=pltpu.PrefetchScalarGridSpec(
            num_scalar_prefetch=1,
            grid=(num_keys,),
            in_specs=[
                pl.BlockSpec((1, batch, s_pad, dim),
                             lambda k, lens: (k, 0, 0, 0)),
                pl.BlockSpec((1, batch, tgt_len, dim),
                             lambda k, lens: (k, 0, 0, 0)),
                pl.BlockSpec((1, dim, dim), lambda k, lens: (k, 0, 0)),
            ],
            out_specs=pl.BlockSpec((1, batch, tgt_len, dim),
                                   lambda k, lens: (k, 0, 0, 0)),
        ),
        compiler_params=pltpu.CompilerParams(
            dimension_semantics=("parallel",),
            vmem_limit_bytes=vmem),
        cost_estimate=cost,
    )(src_lengths, src_emb, tgt_emb, w_enc)


# --------------------- Kernel B: tiled output projection ---------------------

def _output_projection_kernel(feat_ref, w_out_ref, logits_ref):
    """Grid step (k, v, m): MB batches x T rows of features for key k projected
    onto vocab tile v.  feat (1,MB,T,D) bf16, w_out (1,D,Vt) bf16,
    logits (1,MB,T,Vt) bf16 (f32 accumulation in the MXU)."""
    f = feat_ref[0]                            # (MB, T, D) bf16
    w = w_out_ref[0]                           # (D, Vt)    bf16
    mb, t, d = f.shape
    vt = w.shape[1]
    logits = jnp.dot(f.reshape(mb * t, d), w,
                     preferred_element_type=jnp.float32)         # (MB*T, Vt) f32
    logits_ref[0] = logits.reshape(mb, t, vt).astype(jnp.bfloat16)


def _output_projection(feat, w_out_p):
    num_keys, batch, tgt_len, dim = feat.shape
    vocab_p = w_out_p.shape[-1]

    mb = _pick_batches_per_tile(batch, tgt_len, max_rows=256)
    v_tile = _largest_divisor_tile(vocab_p, (2048, 1024, 512, 256, 128))
    grid = (num_keys, vocab_p // v_tile, batch // mb)   # M innermost: w_out tile
                                                        # reused across M tiles.

    cost = pl.CostEstimate(
        flops=int(2 * num_keys * batch * tgt_len * dim * vocab_p),
        transcendentals=0,
        bytes_accessed=int((feat.size + w_out_p.size
                            + num_keys * batch * tgt_len * vocab_p) * 2),
    )
    vmem = _vmem_limit_bytes(((1, mb, tgt_len, dim), jnp.bfloat16),
                             ((1, dim, v_tile), jnp.bfloat16),
                             ((1, mb, tgt_len, v_tile), jnp.bfloat16))

    return pl.pallas_call(
        _output_projection_kernel,
        out_shape=jax.ShapeDtypeStruct((num_keys, batch, tgt_len, vocab_p),
                                       jnp.bfloat16),
        grid_spec=pltpu.PrefetchScalarGridSpec(
            num_scalar_prefetch=0,
            grid=grid,
            in_specs=[
                pl.BlockSpec((1, mb, tgt_len, dim),
                             lambda k, v, m: (k, m, 0, 0)),
                pl.BlockSpec((1, dim, v_tile),
                             lambda k, v, m: (k, 0, v)),
            ],
            out_specs=pl.BlockSpec((1, mb, tgt_len, v_tile),
                                   lambda k, v, m: (k, m, 0, v)),
        ),
        compiler_params=pltpu.CompilerParams(
            dimension_semantics=("parallel", "parallel", "parallel"),
            vmem_limit_bytes=vmem),
        cost_estimate=cost,
    )(feat, w_out_p)


# --------------------------- Multi-model wrapper ------------------------------

class FairseqMultiModelPallas:
    """JAX/Pallas analogue of FairseqMultiModel: a dict of per-language
    encoder-decoder models; forward returns a dict of decoder outputs."""

    def __init__(self, keys, vocab_size, embed_dim, seed=0):
        self.keys = list(keys)
        self.vocab_size = vocab_size
        self.embed_dim = embed_dim
        num_keys = len(self.keys)
        rng = jax.random.PRNGKey(seed)
        k1, k2, k3, k4 = jax.random.split(rng, 4)
        scale = 1.0 / jnp.sqrt(jnp.float32(embed_dim))
        # Per-key parameters are STACKED along a leading key axis so a single
        # pallas_call (grid over keys) can index them via the key grid axis.
        self.params = {
            "enc_embed": jax.random.normal(
                k1, (num_keys, vocab_size, embed_dim), jnp.float32) * scale,
            "dec_embed": jax.random.normal(
                k2, (num_keys, vocab_size, embed_dim), jnp.float32) * scale,
            "w_enc": jax.random.normal(
                k3, (num_keys, embed_dim, embed_dim), jnp.float32) * scale,
            "w_out": jax.random.normal(
                k4, (num_keys, embed_dim, vocab_size), jnp.float32) * scale,
        }

    def forward(self, src_tokens, src_lengths, prev_output_tokens):
        vocab = self.vocab_size
        src_len = src_tokens.shape[1]

        # bf16 MXU inputs; all accumulation inside the kernels is f32.
        enc_embed = self.params["enc_embed"].astype(jnp.bfloat16)
        dec_embed = self.params["dec_embed"].astype(jnp.bfloat16)
        w_enc = self.params["w_enc"].astype(jnp.bfloat16)
        w_out = self.params["w_out"].astype(jnp.bfloat16)

        # TODO(synk): fuse these gathers into the feature kernel (scalar-prefetch
        # token ids + DMA row gathers) to avoid the HBM round trip of the
        # (K,B,S,D)/(K,B,T,D) activations.
        src_emb = jnp.take(enc_embed, src_tokens, axis=1)            # (K,B,S,D)
        tgt_emb = jnp.take(dec_embed, prev_output_tokens, axis=1)    # (K,B,T,D)

        # Lane-dense source axis: zero-pad S to a multiple of 128; the in-kernel
        # length bias masks the padded columns (padded enc rows are zero anyway).
        s_pad = _round_up(src_len, 128)
        if s_pad != src_len:
            src_emb = jnp.pad(src_emb,
                              ((0, 0), (0, 0), (0, s_pad - src_len), (0, 0)))

        # Lane-dense vocab: pad V to a multiple of 128 for unmasked stores.
        vocab_p = _round_up(vocab, 128)
        if vocab_p != vocab:
            w_out = jnp.pad(w_out, ((0, 0), (0, 0), (0, vocab_p - vocab)))

        feat = _feature_forward(src_lengths.astype(jnp.int32),
                                src_emb, tgt_emb, w_enc)             # (K,B,T,D) bf16
        logits_all = _output_projection(feat, w_out)                 # (K,B,T,Vp) bf16

        # No-op when V is already a multiple of 128 (demo). For realistic
        # vocabularies, prefer keeping the padded vocab downstream (mask in the
        # loss) to avoid an extra full pass over the logits in HBM.
        if vocab_p != vocab:
            logits_all = logits_all[..., :vocab]

        return {key: (logits_all[i], {"attn": None})
                for i, key in enumerate(self.keys)}


# ------------------------------- reference ------------------------------------

def _reference_forward(model, src_tokens, src_lengths, prev_output_tokens):
    """Pure-JAX mirror (same bf16/f32 precision choices as the kernels)."""
    p = model.params
    enc_embed = p["enc_embed"].astype(jnp.bfloat16)
    dec_embed = p["dec_embed"].astype(jnp.bfloat16)
    w_enc = p["w_enc"].astype(jnp.bfloat16)
    w_out = p["w_out"].astype(jnp.bfloat16)

    src_emb = jnp.take(enc_embed, src_tokens, axis=1)            # (K,B,S,D)
    tgt_emb = jnp.take(dec_embed, prev_output_tokens, axis=1)    # (K,B,T,D)

    d = model.embed_dim
    s = src_tokens.shape[1]
    scale = 1.0 / (float(d) ** 0.5)

    enc = jnp.einsum("kbsd,kde->kbse", src_emb, w_enc,
                     preferred_element_type=jnp.float32).astype(jnp.bfloat16)

    pos = jnp.arange(s, dtype=jnp.int32)[None, :]
    bias = jnp.where(pos < src_lengths[:, None], 0.0, -1e9).astype(jnp.float32)

    scores = jnp.einsum("kbtd,kbsd->kbts", tgt_emb, enc,
                        preferred_element_type=jnp.float32) * scale
    scores = scores + bias[None, :, None, :]
    attn = jax.nn.softmax(scores, axis=-1).astype(jnp.bfloat16)
    ctx = jnp.einsum("kbts,kbsd->kbtd", attn, enc,
                     preferred_element_type=jnp.float32)
    feat = (tgt_emb.astype(jnp.float32) + ctx).astype(jnp.bfloat16)
    logits = jnp.einsum("kbtd,kdv->kbtv", feat, w_out,
                        preferred_element_type=jnp.float32)
    return {key: logits[i] for i, key in enumerate(model.keys)}


# --------------------------------- main ----------------------------------------

if __name__ == "__main__":
    B, S, T = 8, 20, 64         # batch, src_len (padded to 128 in glue), tgt_len
    D, V = 128, 384             # embed_dim (lane-aligned), vocab (3 x 128 tiles)
    keys = ["en-de", "en-fr", "en-ro"]   # three language-pair models

    rng = jax.random.PRNGKey(0)
    r1, r2 = jax.random.split(rng)
    src_tokens = jax.random.randint(r1, (B, S), 0, V, dtype=jnp.int32)
    prev_output_tokens = jax.random.randint(r2, (B, T), 0, V, dtype=jnp.int32)
    # Varying lengths exercise the in-kernel src_lengths padding bias.
    src_lengths = jnp.array([S, 17, 13, S, 5, S, 9, 11], dtype=jnp.int32)

    model = FairseqMultiModelPallas(keys, vocab_size=V, embed_dim=D, seed=0)

    decoder_outs = model.forward(src_tokens, src_lengths, prev_output_tokens)
    for k in keys:
        jax.block_until_ready(decoder_outs[k][0])

    # sanity check against the pure-JAX reference (kernel logits are bf16)
    ref = _reference_forward(model, src_tokens, src_lengths, prev_output_tokens)
    for k in keys:
        out = decoder_outs[k][0]
        assert out.shape == (B, T, V), out.shape
        err = float(jnp.max(jnp.abs(out.astype(jnp.float32) - ref[k])))
        assert err < 2e-2, f"mismatch for {k}: {err}"

    print("KERNEL_OK")
</pallas_src>

<mosaic_0001>
module attributes {stable_mosaic.version = 11 : i64} {
  func.func @_feature_kernel(%arg0: i32, %arg1: memref<8xi32, #tpu.memory_space<smem>>, %arg2: memref<1x8x128x128xbf16, #tpu.memory_space<vmem>>, %arg3: memref<1x8x64x128xbf16, #tpu.memory_space<vmem>>, %arg4: memref<1x128x128xbf16, #tpu.memory_space<vmem>>, %arg5: memref<1x8x64x128xbf16, #tpu.memory_space<vmem>>) attributes {dimension_semantics = [#tpu.dimension_semantics<parallel>], iteration_bounds = array<i64: 3>, scalar_prefetch = 1 : i64, scratch_operands = 0 : i64, tpu.core_type = #tpu.core_type<tc>, window_params = [{transform_indices = @transform_0, window_bounds = array<i64: 1, 8, 128, 128>}, {transform_indices = @transform_1, window_bounds = array<i64: 1, 8, 64, 128>}, {transform_indices = @transform_2, window_bounds = array<i64: 1, 128, 128>}, {transform_indices = @transform_3, window_bounds = array<i64: 1, 8, 64, 128>}]} {
    %c0 = arith.constant 0 : index
    %c0_0 = arith.constant 0 : index
    %c0_1 = arith.constant 0 : index
    %c0_2 = arith.constant 0 : index
    %0 = vector.load %arg2[%c0, %c0_0, %c0_1, %c0_2] : memref<1x8x128x128xbf16, #tpu.memory_space<vmem>>, vector<1x8x128x128xbf16>
    %1 = vector.shape_cast %0 : vector<1x8x128x128xbf16> to vector<8x128x128xbf16>
    %c0_3 = arith.constant 0 : index
    %c0_4 = arith.constant 0 : index
    %c0_5 = arith.constant 0 : index
    %c0_6 = arith.constant 0 : index
    %2 = vector.load %arg3[%c0_3, %c0_4, %c0_5, %c0_6] : memref<1x8x64x128xbf16, #tpu.memory_space<vmem>>, vector<1x8x64x128xbf16>
    %3 = vector.shape_cast %2 : vector<1x8x64x128xbf16> to vector<8x64x128xbf16>
    %c0_7 = arith.constant 0 : index
    %c0_8 = arith.constant 0 : index
    %c0_9 = arith.constant 0 : index
    %4 = vector.load %arg4[%c0_7, %c0_8, %c0_9] : memref<1x128x128xbf16, #tpu.memory_space<vmem>>, vector<1x128x128xbf16>
    %5 = vector.shape_cast %4 : vector<1x128x128xbf16> to vector<128x128xbf16>
    %6 = vector.shape_cast %1 : vector<8x128x128xbf16> to vector<1024x128xbf16>
    %cst = arith.constant dense<0.000000e+00> : vector<1024x128xf32>
    %7 = tpu.matmul %6, %5, %cst {dimension_numbers = #tpu.dot_dimension_numbers<[1], [0], [0], [1], [0, 0, 1, 1], [], []>} : vector<1024x128xbf16>, vector<128x128xbf16>, vector<1024x128xf32> -> vector<1024x128xf32>
    %8 = vector.shape_cast %7 : vector<1024x128xf32> to vector<8x128x128xf32>
    %9 = arith.truncf %8 : vector<8x128x128xf32> to vector<8x128x128xbf16>
    "tpu.trace_start"() <{level = 10 : i32, message = "btd,bsd->bts"}> : () -> ()
    %cst_10 = arith.constant dense<0.000000e+00> : vector<8x64x128xf32>
    %10 = tpu.matmul %3, %9, %cst_10 {dimension_numbers = #tpu.dot_dimension_numbers<[2], [2], [1], [1], [0, 0, 0, 1, 1, 1], [0], [0]>} : vector<8x64x128xbf16>, vector<8x128x128xbf16>, vector<8x64x128xf32> -> vector<8x64x128xf32>
    "tpu.trace_stop"() : () -> ()
    %cst_11 = arith.constant 0.0883883461 : f32
    %11 = vector.broadcast %cst_11 : f32 to vector<8x64x128xf32>
    %12 = arith.mulf %10, %11 : vector<8x64x128xf32>
    %13 = tpu.iota {dimensions = array<i32: 0>} : vector<8x1x128xi32>
    %14 = tpu.iota {dimensions = array<i32: 2>} : vector<8x1x128xi32>
    %cst_12 = arith.constant 0.000000e+00 : f32
    %15 = vector.broadcast %cst_12 : f32 to vector<8x1x128xf32>
    %c0_i32 = arith.constant 0 : i32
    %16 = vector.broadcast %c0_i32 : i32 to vector<8x1x128xi32>
    %17 = arith.cmpi eq, %13, %16 : vector<8x1x128xi32>
    %c0_13 = arith.constant 0 : index
    %18 = memref.load %arg1[%c0_13] : memref<8xi32, #tpu.memory_space<smem>>
    %19 = vector.broadcast %18 : i32 to vector<8x1x128xi32>
    %20 = arith.cmpi sge, %14, %19 : vector<8x1x128xi32>
    %21 = arith.andi %17, %20 : vector<8x1x128xi1>
    %cst_14 = arith.constant -1.000000e+09 : f32
    %22 = vector.broadcast %cst_14 : f32 to vector<8x1x128xf32>
    %23 = arith.select %21, %22, %15 : vector<8x1x128xi1>, vector<8x1x128xf32>
    %c1_i32 = arith.constant 1 : i32
    %24 = vector.broadcast %c1_i32 : i32 to vector<8x1x128xi32>
    %25 = arith.cmpi eq, %13, %24 : vector<8x1x128xi32>
    %c1 = arith.constant 1 : index
    %26 = memref.load %arg1[%c1] : memref<8xi32, #tpu.memory_space<smem>>
    %27 = vector.broadcast %26 : i32 to vector<8x1x128xi32>
    %28 = arith.cmpi sge, %14, %27 : vector<8x1x128xi32>
    %29 = arith.andi %25, %28 : vector<8x1x128xi1>
    %cst_15 = arith.constant -1.000000e+09 : f32
    %30 = vector.broadcast %cst_15 : f32 to vector<8x1x128xf32>
    %31 = arith.select %29, %30, %23 : vector<8x1x128xi1>, vector<8x1x128xf32>
    %c2_i32 = arith.constant 2 : i32
    %32 = vector.broadcast %c2_i32 : i32 to vector<8x1x128xi32>
    %33 = arith.cmpi eq, %13, %32 : vector<8x1x128xi32>
    %c2 = arith.constant 2 : index
    %34 = memref.load %arg1[%c2] : memref<8xi32, #tpu.memory_space<smem>>
    %35 = vector.broadcast %34 : i32 to vector<8x1x128xi32>
    %36 = arith.cmpi sge, %14, %35 : vector<8x1x128xi32>
    %37 = arith.andi %33, %36 : vector<8x1x128xi1>
    %cst_16 = arith.constant -1.000000e+09 : f32
    %38 = vector.broadcast %cst_16 : f32 to vector<8x1x128xf32>
    %39 = arith.select %37, %38, %31 : vector<8x1x128xi1>, vector<8x1x128xf32>
    %c3_i32 = arith.constant 3 : i32
    %40 = vector.broadcast %c3_i32 : i32 to vector<8x1x128xi32>
    %41 = arith.cmpi eq, %13, %40 : vector<8x1x128xi32>
    %c3 = arith.constant 3 : index
    %42 = memref.load %arg1[%c3] : memref<8xi32, #tpu.memory_space<smem>>
    %43 = vector.broadcast %42 : i32 to vector<8x1x128xi32>
    %44 = arith.cmpi sge, %14, %43 : vector<8x1x128xi32>
    %45 = arith.andi %41, %44 : vector<8x1x128xi1>
    %cst_17 = arith.constant -1.000000e+09 : f32
    %46 = vector.broadcast %cst_17 : f32 to vector<8x1x128xf32>
    %47 = arith.select %45, %46, %39 : vector<8x1x128xi1>, vector<8x1x128xf32>
    %c4_i32 = arith.constant 4 : i32
    %48 = vector.broadcast %c4_i32 : i32 to vector<8x1x128xi32>
    %49 = arith.cmpi eq, %13, %48 : vector<8x1x128xi32>
    %c4 = arith.constant 4 : index
    %50 = memref.load %arg1[%c4] : memref<8xi32, #tpu.memory_space<smem>>
    %51 = vector.broadcast %50 : i32 to vector<8x1x128xi32>
    %52 = arith.cmpi sge, %14, %51 : vector<8x1x128xi32>
    %53 = arith.andi %49, %52 : vector<8x1x128xi1>
    %cst_18 = arith.constant -1.000000e+09 : f32
    %54 = vector.broadcast %cst_18 : f32 to vector<8x1x128xf32>
    %55 = arith.select %53, %54, %47 : vector<8x1x128xi1>, vector<8x1x128xf32>
    %c5_i32 = arith.constant 5 : i32
    %56 = vector.broadcast %c5_i32 : i32 to vector<8x1x128xi32>
    %57 = arith.cmpi eq, %13, %56 : vector<8x1x128xi32>
    %c5 = arith.constant 5 : index
    %58 = memref.load %arg1[%c5] : memref<8xi32, #tpu.memory_space<smem>>
    %59 = vector.broadcast %58 : i32 to vector<8x1x128xi32>
    %60 = arith.cmpi sge, %14, %59 : vector<8x1x128xi32>
    %61 = arith.andi %57, %60 : vector<8x1x128xi1>
    %cst_19 = arith.constant -1.000000e+09 : f32
    %62 = vector.broadcast %cst_19 : f32 to vector<8x1x128xf32>
    %63 = arith.select %61, %62, %55 : vector<8x1x128xi1>, vector<8x1x128xf32>
    %c6_i32 = arith.constant 6 : i32
    %64 = vector.broadcast %c6_i32 : i32 to vector<8x1x128xi32>
    %65 = arith.cmpi eq, %13, %64 : vector<8x1x128xi32>
    %c6 = arith.constant 6 : index
    %66 = memref.load %arg1[%c6] : memref<8xi32, #tpu.memory_space<smem>>
    %67 = vector.broadcast %66 : i32 to vector<8x1x128xi32>
    %68 = arith.cmpi sge, %14, %67 : vector<8x1x128xi32>
    %69 = arith.andi %65, %68 : vector<8x1x128xi1>
    %cst_20 = arith.constant -1.000000e+09 : f32
    %70 = vector.broadcast %cst_20 : f32 to vector<8x1x128xf32>
    %71 = arith.select %69, %70, %63 : vector<8x1x128xi1>, vector<8x1x128xf32>
    %c7_i32 = arith.constant 7 : i32
    %72 = vector.broadcast %c7_i32 : i32 to vector<8x1x128xi32>
    %73 = arith.cmpi eq, %13, %72 : vector<8x1x128xi32>
    %c7 = arith.constant 7 : index
    %74 = memref.load %arg1[%c7] : memref<8xi32, #tpu.memory_space<smem>>
    %75 = vector.broadcast %74 : i32 to vector<8x1x128xi32>
    %76 = arith.cmpi sge, %14, %75 : vector<8x1x128xi32>
    %77 = arith.andi %73, %76 : vector<8x1x128xi1>
    %cst_21 = arith.constant -1.000000e+09 : f32
    %78 = vector.broadcast %cst_21 : f32 to vector<8x1x128xf32>
    %79 = arith.select %77, %78, %71 : vector<8x1x128xi1>, vector<8x1x128xf32>
    %80 = vector.broadcast %79 : vector<8x1x128xf32> to vector<8x64x128xf32>
    %81 = arith.addf %12, %80 : vector<8x64x128xf32>
    %cst_22 = arith.constant dense<0xFF800000> : vector<8x64xf32>
    %82 = vector.multi_reduction <maximumf>, %81, %cst_22 [2] : vector<8x64x128xf32> to vector<8x64xf32>
    %83 = vector.shape_cast %82 : vector<8x64xf32> to vector<8x64x1xf32>
    %84 = vector.broadcast %83 : vector<8x64x1xf32> to vector<8x64x128xf32>
    %85 = arith.subf %81, %84 : vector<8x64x128xf32>
    %86 = math.exp %85 : vector<8x64x128xf32>
    %cst_23 = arith.constant dense<0.000000e+00> : vector<8x64xf32>
    %87 = vector.multi_reduction <add>, %86, %cst_23 [2] : vector<8x64x128xf32> to vector<8x64xf32>
    %88 = vector.shape_cast %87 : vector<8x64xf32> to vector<8x64x1xf32>
    %89 = tpu.reciprocal %88 {approx = true} : vector<8x64x1xf32> -> vector<8x64x1xf32>
    %90 = vector.broadcast %89 : vector<8x64x1xf32> to vector<8x64x128xf32>
    %91 = arith.mulf %86, %90 : vector<8x64x128xf32>
    %92 = arith.truncf %91 : vector<8x64x128xf32> to vector<8x64x128xbf16>
    "tpu.trace_start"() <{level = 10 : i32, message = "bts,bsd->btd"}> : () -> ()
    %cst_24 = arith.constant dense<0.000000e+00> : vector<8x64x128xf32>
    %93 = tpu.matmul %92, %9, %cst_24 {dimension_numbers = #tpu.dot_dimension_numbers<[2], [1], [1], [2], [0, 0, 0, 1, 1, 2], [0], [0]>} : vector<8x64x128xbf16>, vector<8x128x128xbf16>, vector<8x64x128xf32> -> vector<8x64x128xf32>
    "tpu.trace_stop"() : () -> ()
    %94 = arith.extf %3 : vector<8x64x128xbf16> to vector<8x64x128xf32>
    %95 = arith.addf %94, %93 : vector<8x64x128xf32>
    %96 = arith.truncf %95 : vector<8x64x128xf32> to vector<8x64x128xbf16>
    %c0_25 = arith.constant 0 : index
    %c0_26 = arith.constant 0 : index
    %c0_27 = arith.constant 0 : index
    %c0_28 = arith.constant 0 : index
    %97 = vector.load %arg5[%c0_25, %c0_26, %c0_27, %c0_28] : memref<1x8x64x128xbf16, #tpu.memory_space<vmem>>, vector<1x8x64x128xbf16>
    %98 = vector.shape_cast %97 : vector<1x8x64x128xbf16> to vector<8x64x128xbf16>
    %99 = vector.shape_cast %96 : vector<8x64x128xbf16> to vector<1x8x64x128xbf16>
    tpu.vector_store %arg5[%c0_25, %c0_26, %c0_27, %c0_28], %99 {strides = array<i32>} : memref<1x8x64x128xbf16, #tpu.memory_space<vmem>>, vector<1x8x64x128xbf16>,
    return
  }
  func.func @transform_0(%arg0: i32, %arg1: memref<8xi32, #tpu.memory_space<smem>>) -> (i32, i32, i32, i32) {
    %c0_i32 = arith.constant 0 : i32
    %c0_i32_0 = arith.constant 0 : i32
    %c0_i32_1 = arith.constant 0 : i32
    %c0_i32_2 = arith.constant 0 : i32
    return %arg0, %c0_i32, %c0_i32_0, %c0_i32_1 : i32, i32, i32, i32
  }
  func.func @transform_1(%arg0: i32, %arg1: memref<8xi32, #tpu.memory_space<smem>>) -> (i32, i32, i32, i32) {
    %c0_i32 = arith.constant 0 : i32
    %c0_i32_0 = arith.constant 0 : i32
    %c0_i32_1 = arith.constant 0 : i32
    %c0_i32_2 = arith.constant 0 : i32
    return %arg0, %c0_i32, %c0_i32_0, %c0_i32_1 : i32, i32, i32, i32
  }
  func.func @transform_2(%arg0: i32, %arg1: memref<8xi32, #tpu.memory_space<smem>>) -> (i32, i32, i32) {
    %c0_i32 = arith.constant 0 : i32
    %c0_i32_0 = arith.constant 0 : i32
    %c0_i32_1 = arith.constant 0 : i32
    return %arg0, %c0_i32, %c0_i32_0 : i32, i32, i32
  }
  func.func @transform_3(%arg0: i32, %arg1: memref<8xi32, #tpu.memory_space<smem>>) -> (i32, i32, i32, i32) {
    %c0_i32 = arith.constant 0 : i32
    %c0_i32_0 = arith.constant 0 : i32
    %c0_i32_1 = arith.constant 0 : i32
    %c0_i32_2 = arith.constant 0 : i32
    return %arg0, %c0_i32, %c0_i32_0, %c0_i32_1 : i32, i32, i32, i32
  }
}

</mosaic_0001>

<bundles_post_ra>
// kernel: tpu_custom_call.1
= control target key start
LH: loop header
LB: loop body
LE: loop exit
PB: predicated region body
PF: predicated region fallthrough
CT: control target
= control target key end

     0   :  { %s5113_s18 = smov [#allocation3]   ;;  %s6637_s0 = inlined_call_operand.hbm [shape: s32[8], index: 0, kind: input, shape index: {}]   ;;  %s6638_s1 = inlined_call_operand.hbm [shape: bf16[3,8,128,128], index: 1, kind: input, shape index: {}]   ;;  %s6639_s2 = inlined_call_operand.hbm [shape: bf16[3,8,64,128], index: 2, kind: input, shape index: {}]   ;;  %s6640_s3 = inlined_call_operand.hbm [shape: bf16[3,128,128], index: 3, kind: input, shape index: {}]   ;;  %s6641_s4 = inlined_call_operand.hbm [shape: bf16[3,8,64,128], index: 4, kind: output, shape index: {}]  }
   0x1   :  { %6686 = sst [smem:[#allocation60_spill]] %s6639_s2  ;;  %s10_s17 = sshll.u32 %s6637_s0, 4  ;;  %s11_s17 = int_to_ptr.hbm [resolvable:$true] %s10_s17 }
   0x2   :  { %13 = dma.hbm_to_smem %s11_s17, 16, %s5113_s18, [#allocation2] }
   0x3   :  { %5083 = dma.done.wait [#allocation2], 16 }
   0x4   :  { %5084 = vsyncadd [#allocation2], 4294967280 }
   0x5   :  { %16 = sfence }
   0x6   :  { %17 = vsyncpa [#allocation5], 0 }
   0x7   :  { %19 = vsyncpa [#allocation5 + $0x1], 0 }
   0x8   :  { %20 = vsyncpa [#allocation8], 0 }
   0x9   :  { %22 = vsyncpa [#allocation8 + $0x1], 0 }
   0xa   :  { %23 = vsyncpa [#allocation6], 0 }
   0xb   :  { %25 = vsyncpa [#allocation6 + $0x1], 0  ;;  %s5147_s19 = smov 0   ;;  %s5149_s20 = smov 0  }
   0xc   :  { %s5151_s21 = smov 0   ;;  %s5153_s22 = smov 0  }
   0xd LB: > { %s5168_s0 = sadd.s32 4294967295, %s5111_s22   ;;  %s3851_s23 = sadd.s32 4294967294, %s5111_s22   ;;  %s5111_s22 = sphi %s5153_s22, %s6799_s22   ;;  %s5107_s21 = sphi %s5151_s21, %s6798_s21   ;;  %s5103_s20 = sphi %s5149_s20, %s6797_s20   ;;  %s5099_s19 = sphi %s5147_s19, %s6796_s19  }
   0xe   : > { %s5172_s24 = sadd.s32 1, %s5111_s22   ;;  %s38_s25 = sadd.s32 1, %s5107_s21 }
   0xf   : > { %s35_s26 = ssub.s32 %s5111_s22, %s5172_s24  ;;  %p45_p0 = scmp.ne.s32.totalorder %s5107_s21, %s5103_s20 }
  0x10   : > { %p36_p1 = scmp.eq.s32.totalorder %s35_s26, 0  ;;  %p46_p2 = scmp.eq.s32.totalorder %s5111_s22, 0 }
  0x11   : > { %p51_p3 = scmp.ne.s32.totalorder %s5103_s20, %s5099_s19  ;;  %p52_p4 = scmp.eq.s32.totalorder %s5168_s0, 0 }
  0x12   : > { %s5184_s27 = scalar_select %p36_p1, %s5107_s21, %s38_s25  }
  0x13   : > { %p47_p5 = por %p46_p2, %p45_p0  ;;  %p5186_p6 = por %p52_p4, %p51_p3 }
  0x14   : > { %6687 = sst [smem:[#allocation15_spill]] %s5184_s27  ;;  %p127_p7 = scmp.eq.s32.totalorder %s5168_s0, 2 }
  0x15   : > { %p133_p8 = scmp.eq.s32.totalorder %s3851_s23, 2  ;;  %p4641_p9 = scmp.lt.s32.totalorder %s5111_s22, 3 }
  0x16   : > { %p5192_p10 = por %p127_p7, %p45_p0  ;;  %s5201_s5 = sand.u32 1, %s5107_s21  }
  0x17   : > { %p5196_p11 = por %p133_p8, %p51_p3  ;;  %p5203_p12 = pnand %p4641_p9, %p47_p5 }
  0x18   : > { %s175_s7 = sand.u32 1, %s5111_s22   ;;  %s3857_s8 = sshll.u32 %s5201_s5, 8 }
  0x19   : > { %s4297_s9 = sshll.u32 %s5111_s22, 8  ;;  %s6692_s2 = sld [smem:[#allocation60_spill]] }
  0x1a   : > { %s179_s13 = scalar_lea.vmem [#allocation7], %s3857_s8  ;;  %p3863_p13 = scmp.ge.s32.totalorder %s5111_s22, 1 }
  0x1b   : > { %s187_s14 = sshll.u32 %s179_s13, 4  ;;  %s5214_s16 = scalar_lea.sflag [#allocation8], %s175_s7  ;;  %s188_s14 = int_to_ptr.vmem [resolvable:$true] %s187_s14 }
  0x1c   : > { %p4953_p1 = pneg %p5203_p12 }
  0x1f   : > { %s184_s12 = scalar_lea.hbm %s6692_s2, %s4297_s9  ;;  %s4956_s26 = scalar_lea.hbm %s6692_s2, 768 }
  0x20   : > { %s185_s15 = sshll.u32 %s184_s12, 4  ;;  %s186_s15 = int_to_ptr.hbm [resolvable:$true] %s185_s15 }
  0x21   : > { %s4949_s17 = sshra.s32 %s186_s15, 4  ;;  %s4950_s17 = int_to_ptr.hbm [resolvable:$true] %s4949_s17 }
  0x22   : > { %s4951_s18 = scalar_lea.hbm %s4950_s17, 256  ;;  %p4957_p4 = scmp.lt.s32.totalorder %s4950_s17, %s6692_s2 }
  0x23   : > { %p4952_p0 = scmp.ne.s32.totalorder %s4950_s17, %s4951_s18  ;;  %p4958_p5 = scmp.lt.s32.totalorder %s4956_s26, %s4951_s18 }
  0x25   : > { %p4954_p2 = pnand %p4953_p1, %p4952_p0  ;;  %p4959_p7 = por %p4958_p5, %p4957_p4 }
  0x27   : > { %p4955_p3 = pneg %p4954_p2 }
  0x29   : > { %p4960_p8 = pnand %p4959_p7, %p4955_p3 }
  0x2b   : > { %4963 = shalt.err (!%p4960_p8)
}
  0x2c   : > { %s6642_s7 = smov 64   ;;  %s6644_s10 = smov 4  }
  0x2d   : > { %4633 = dma.hbm_to_vmem [thread:$0]  (!%p5203_p12), %s186_s15, 4096, %s188_s14, %s5214_s16, %s6642_s7, %s6642_s7, %s6644_s10  }
  0x2e   : > { %p217_p9 = scmp.lt.s32.totalorder %s5111_s22, 4  ;;  %s3854_s11 = sshll.u32 %s5201_s5, 9 }
  0x2f   : > { %s4296_s12 = sshll.u32 %s5111_s22, 9  ;;  %s157_s25 = scalar_lea.vmem [#allocation4], %s3854_s11 }
  0x30   : > { %p5238_p0 = pnand %p3863_p13, %p217_p9  ;;  %s162_s23 = scalar_lea.hbm %s6638_s1, %s4296_s12 }
  0x31   : > { %s165_s26 = sshll.u32 %s157_s25, 4  ;;  %s163_s8 = sshll.u32 %s162_s23, 4  ;;  %s166_s26 = int_to_ptr.vmem [resolvable:$true] %s165_s26  ;;  %s164_s8 = int_to_ptr.hbm [resolvable:$true] %s163_s8 }
  0x32   : > { %s3860_s9 = sshll.u32 %s5201_s5, 6  ;;  %s154_s14 = scalar_lea.sflag [#allocation5], %s5201_s5 }
  0x33   : > { %s4979_s15 = sshra.s32 %s164_s8, 4  ;;  %s4986_s17 = scalar_lea.hbm %s6638_s1, 1536  ;;  %s4980_s15 = int_to_ptr.hbm [resolvable:$true] %s4979_s15 }
  0x34   : > { %s4981_s7 = scalar_lea.hbm %s4980_s15, 512  ;;  %p4987_p4 = scmp.lt.s32.totalorder %s4980_s15, %s6638_s1 }
  0x35   : > { %p4982_p2 = scmp.ne.s32.totalorder %s4980_s15, %s4981_s7  ;;  %p4988_p5 = scmp.lt.s32.totalorder %s4986_s17, %s4981_s7 }
  0x37   : > { %p4984_p13 = pnand %p4982_p2, %p4953_p1  ;;  %p4989_p7 = por %p4988_p5, %p4987_p4 }
  0x39   : > { %p4985_p3 = pneg %p4984_p13 }
  0x3b   : > { %p4990_p8 = pnand %p4989_p7, %p4985_p3 }
  0x3d   : > { %4993 = shalt.err (!%p4990_p8)
}
  0x3e   : > { %s6694_s5 = smov 4   ;;  %s6695_s18 = smov 64  }
  0x3f   : > { %4630 = dma.hbm_to_vmem [thread:$0]  (!%p5203_p12), %s164_s8, 8192, %s166_s26, %s154_s14, %s6695_s18, %s6695_s18, %s6694_s5  }
  0x40   : > { %s4298_s23 = sshll.u32 %s5111_s22, 6  ;;  %s201_s27 = scalar_lea.vmem [#allocation9], %s3860_s9 }
  0x41   : > { %s206_s10 = scalar_lea.hbm %s6640_s3, %s4298_s23  ;;  %s209_s12 = sshll.u32 %s201_s27, 4  ;;  %s210_s12 = int_to_ptr.vmem [resolvable:$true] %s209_s12 }
  0x42   : > { %s207_s15 = sshll.u32 %s206_s10, 4  ;;  %s5016_s8 = scalar_lea.hbm %s6640_s3, 192  ;;  %s208_s15 = int_to_ptr.hbm [resolvable:$true] %s207_s15 }
  0x43   : > { %s5009_s7 = sshra.s32 %s208_s15, 4  ;;  %s5010_s7 = int_to_ptr.hbm [resolvable:$true] %s5009_s7 }
  0x44   : > { %s5011_s17 = scalar_lea.hbm %s5010_s7, 64  ;;  %p5017_p3 = scmp.lt.s32.totalorder %s5010_s7, %s6640_s3 }
  0x45   : > { %p5012_p9 = scmp.ne.s32.totalorder %s5010_s7, %s5011_s17  ;;  %p5018_p4 = scmp.lt.s32.totalorder %s5016_s8, %s5011_s17 }
  0x47   : > { %p5014_p2 = pnand %p5012_p9, %p4953_p1  ;;  %p5019_p5 = por %p5018_p4, %p5017_p3 }
  0x49   : > { %p5015_p13 = pneg %p5014_p2 }
  0x4b   : > { %p5020_p7 = pnand %p5019_p5, %p5015_p13 }
  0x4d   : > { %5023 = shalt.err (!%p5020_p7)
}
  0x4e   : > { %4636 = dma.hbm_to_vmem [thread:$0]  (!%p5203_p12), %s208_s15, 1024, %s210_s12, %s5214_s16, %s6695_s18, %s6695_s18, %s6694_s5  }
  0x4f   : > { %221 = sbr.rel (%p5238_p0) target bundleno = 1567 (0x61f), region = 32 }
  0x54   : > { %s5283_s27 = sand.u32 1, %s5103_s20  }
  0x55   : > { %s3864_s9 = sshll.u32 %s5283_s27, 9  ;;  %s224_s23 = scalar_lea.sflag [#allocation5], %s5283_s27 }
  0x56   : > { %s5287_s2 = scalar_lea.vmem [#allocation4], %s3864_s9 }
  0x57   : > { %5086 = dma.done.wait (%p5186_p6), %s224_s23, 8192  }
  0x58   : > { %5088 = vsyncadd (%p5186_p6), %s224_s23, 4294959104  ;;  %s233_s6 = sand.u32 1, %s5168_s0   ;;  %s3865_s16 = sshll.u32 %s5283_s27, 8 }
  0x59   : > { %s234_s13 = scalar_lea.sflag [#allocation8], %s233_s6  ;;  %s5297_s5 = scalar_lea.vmem [#allocation7], %s3865_s16 }
  0x5a   : > { %5090 = dma.done.wait (%p5186_p6), %s234_s13, 5120  }
  0x5b   : > { %5092 = vsyncadd (%p5186_p6), %s234_s13, 4294962176  ;;  %s3866_s18 = sshll.u32 %s5283_s27, 6  ;;  %v4299_v8 = vld [vmem:[%s5287_s2] sm:$0xff]  ;;  %v4300_v9 = vld [vmem:[%s5287_s2 + $0x8] sm:$0xff]  ;;  %s2252_s28 = sld [smem:[#allocation3]] }
  0x5c   : > { %s5304_s10 = scalar_lea.vmem [#allocation9], %s3866_s18  ;;  %v4301_v10 = vld [vmem:[%s5287_s2 + $0x10] sm:$0xff]  ;;  %v4302_v11 = vld [vmem:[%s5287_s2 + $0x18] sm:$0xff]  ;;  %v4303_v12 = vld [vmem:[%s5287_s2 + $0x20] sm:$0xff]  ;;  %s4284_s12 = sld [smem:[#allocation3 + $0x1]] }
  0x5d   : > { %v4402_v0 = vld [vmem:[%s5304_s10 + $0x38] sm:$0xff]  ;;  %v4401_v1 = vld [vmem:[%s5304_s10 + $0x30] sm:$0xff]  ;;  %v4400_v2 = vld [vmem:[%s5304_s10 + $0x28] sm:$0xff]  ;;  %s4285_s15 = sld [smem:[#allocation3 + $0x2]]  ;;  %s6157_s8 = scalar_lea.vmem [#allocation10], %s3865_s16 }
  0x5e   : > { %921 = vmatpush.bf16.msra.mxu0 %v4402_v0  ;;  %4595 = vmatpush.bf16.msra.mxu1 %v4402_v0  ;;  %v4399_v3 = vld [vmem:[%s5304_s10 + $0x20] sm:$0xff]  ;;  %v4398_v4 = vld [vmem:[%s5304_s10 + $0x18] sm:$0xff]  ;;  %v4397_v5 = vld [vmem:[%s5304_s10 + $0x10] sm:$0xff]  ;;  %s4288_s7 = sld [smem:[#allocation3 + $0x5]]  ;;  %s4403_s25 = sshll.u32 %s5168_s0, 8 }
  0x5f   : > { %4596 = vmatpush.bf16.msra.mxu2 %v4402_v0  ;;  %4597 = vmatpush.bf16.msra.mxu3 %v4402_v0  ;;  %v4396_v6 = vld [vmem:[%s5304_s10 + $0x8] sm:$0xff]  ;;  %v4395_v7 = vld [vmem:[%s5304_s10] sm:$0xff]  ;;  %v4305_v14 = vld [vmem:[%s5287_s2 + $0x30] sm:$0xff]  ;;  %s4287_s17 = sld [smem:[#allocation3 + $0x4]]  ;;  %s3732_s6 = sshll.u32 %s6157_s8, 4  ;;  %s3733_s6 = int_to_ptr.vmem [resolvable:$true] %s3732_s6 }
  0x60   : > { %v4304_v13 = vld [vmem:[%s5287_s2 + $0x28] sm:$0xff]  ;;  %v4306_v15 = vld [vmem:[%s5287_s2 + $0x38] sm:$0xff]  ;;  %v4307_v16 = vld [vmem:[%s5287_s2 + $0x40] sm:$0xff]  ;;  %s4286_s11 = sld [smem:[#allocation3 + $0x3]]  ;;  %s3720_s13 = scalar_lea.sflag [#allocation6], %s5283_s27 }
  0x61   : > { %v4308_v24 = vld [vmem:[%s5287_s2 + $0x48] sm:$0xff]  ;;  %v4309_v32 = vld [vmem:[%s5287_s2 + $0x50] sm:$0xff]  ;;  %v4310_v40 = vld [vmem:[%s5287_s2 + $0x58] sm:$0xff]  ;;  %s6137_s26 = sld [smem:[#allocation3 + $0x7]] }
  0x62   : > { %922 = vmatpush.bf16.msra.mxu0 %v4401_v1  ;;  %4598 = vmatpush.bf16.msra.mxu1 %v4401_v1  ;;  %v4332_v42 = vld [vmem:[%s5287_s2 + $0x108] sm:$0xff]  ;;  %v4311_v49 = vld [vmem:[%s5287_s2 + $0x60] sm:$0xff]  ;;  %v4333_v51 = vld [vmem:[%s5287_s2 + $0x110] sm:$0xff]  ;;  %s4289_s14 = sld [smem:[#allocation3 + $0x6]] }
  0x63   : > { %4599 = vmatpush.bf16.msra.mxu2 %v4401_v1  ;;  %4600 = vmatpush.bf16.msra.mxu3 %v4401_v1  ;;  %v4338_v52 = vld [vmem:[%s5287_s2 + $0x138] sm:$0xff]  ;;  %v4312_v59 = vld [vmem:[%s5287_s2 + $0x68] sm:$0xff]  ;;  %v4339_v62 = vld [vmem:[%s5287_s2 + $0x140] sm:$0xff] }
  0x64   : > { %v4334_v61 = vld [vmem:[%s5287_s2 + $0x118] sm:$0xff]  ;;  %v4313_v0 = vld [vmem:[%s5287_s2 + $0x70] sm:$0xff] }
  0x66   : > { %923 = vmatpush.bf16.msra.mxu0 %v4400_v2  ;;  %4601 = vmatpush.bf16.msra.mxu1 %v4400_v2 }
  0x67   : > { %4602 = vmatpush.bf16.msra.mxu2 %v4400_v2  ;;  %4603 = vmatpush.bf16.msra.mxu3 %v4400_v2  ;;  %v4335_v2 = vld [vmem:[%s5287_s2 + $0x120] sm:$0xff] }
  0x6a   : > { %924 = vmatpush.bf16.msra.mxu0 %v4399_v3  ;;  %4604 = vmatpush.bf16.msra.mxu1 %v4399_v3 }
  0x6b   : > { %4605 = vmatpush.bf16.msra.mxu2 %v4399_v3  ;;  %4606 = vmatpush.bf16.msra.mxu3 %v4399_v3  ;;  %v4340_v3 = vld [vmem:[%s5287_s2 + $0x148] sm:$0xff] }
  0x6e   : > { %925 = vmatpush.bf16.msra.mxu0 %v4398_v4  ;;  %4607 = vmatpush.bf16.msra.mxu1 %v4398_v4 }
  0x6f   : > { %4608 = vmatpush.bf16.msra.mxu2 %v4398_v4  ;;  %4609 = vmatpush.bf16.msra.mxu3 %v4398_v4 }
  0x72   : > { %926 = vmatpush.bf16.msra.mxu0 %v4397_v5  ;;  %4610 = vmatpush.bf16.msra.mxu1 %v4397_v5 }
  0x73   : > { %4611 = vmatpush.bf16.msra.mxu2 %v4397_v5  ;;  %4612 = vmatpush.bf16.msra.mxu3 %v4397_v5  ;;  %v4314_v5 = vld [vmem:[%s5287_s2 + $0x78] sm:$0xff] }
  0x76   : > { %927 = vmatpush.bf16.msra.mxu0 %v4396_v6  ;;  %4613 = vmatpush.bf16.msra.mxu1 %v4396_v6 }
  0x77   : > { %4614 = vmatpush.bf16.msra.mxu2 %v4396_v6  ;;  %4615 = vmatpush.bf16.msra.mxu3 %v4396_v6 }
  0x7a   : > { %928 = vmatpush.bf16.msra.mxu0 %v4395_v7  ;;  %4616 = vmatpush.bf16.msra.mxu1 %v4395_v7 }
  0x7b   : > { %4617 = vmatpush.bf16.msra.mxu2 %v4395_v7  ;;  %4618 = vmatpush.bf16.msra.mxu3 %v4395_v7  ;;  %v4336_v7 = vld [vmem:[%s5287_s2 + $0x128] sm:$0xff] }
  0x7d   : > { %929 = vmatmul.bf16.vlgmr.msra.gmra.mxu0 %v4299_v8  ;;  %1094 = vmatmul.bf16.vlgmr.msra.gmra.mxu1 %v4332_v42  ;;  %v4341_v8 = vld [vmem:[%s5287_s2 + $0x150] sm:$0xff] }
  0x7e   : > { %1124 = vmatmul.bf16.vlgmr.msra.gmra.mxu2 %v4338_v52 }
  0x8d   : > { %934 = vmatmul.bf16.gmra.mxu0 %v4300_v9  ;;  %1099 = vmatmul.bf16.gmra.mxu1 %v4333_v51 }
  0x8e   : > { %1129 = vmatmul.bf16.gmra.mxu2 %v4339_v62 }
  0x9d   : > { %939 = vmatmul.bf16.gmra.mxu0 %v4301_v10  ;;  %1104 = vmatmul.bf16.gmra.mxu1 %v4334_v61  ;;  %v4345_v61 = vld [vmem:[%s5287_s2 + $0x170] sm:$0xff] }
  0x9e   : > { %1134 = vmatmul.bf16.gmra.mxu2 %v4340_v3 }
  0xad   : > { %944 = vmatmul.bf16.gmra.mxu0 %v4302_v11  ;;  %1109 = vmatmul.bf16.gmra.mxu1 %v4335_v2 }
  0xae   : > { %1139 = vmatmul.bf16.gmra.mxu2 %v4341_v8 }
  0xbd   : > { %949 = vmatmul.bf16.gmra.mxu0 %v4303_v12  ;;  %1114 = vmatmul.bf16.gmra.mxu1 %v4336_v7 }
  0xcd   : > { %954 = vmatmul.bf16.gmra.mxu0 %v4304_v13 }
  0xdd   : > { %959 = vmatmul.bf16.gmra.mxu0 %v4305_v14 }
  0xed   : > { %964 = vmatmul.bf16.gmra.mxu0 %v4306_v15 }
  0xfa   : > { %v930_v17 = vpop.f32.mrf.mxu0  ;;  %v5384_v8 = vpop.f32.mrf.mxu1 }
  0xfb   : > { %v1250_v18 = vpack.c.bf16 %v930_v17, %v930_v17  ;;  %v4315_v17 = vld [vmem:[%s5287_s2 + $0x80] sm:$0xff] }
  0xfd   : > { %969 = vmatmul.bf16.gmra.mxu0 %v4307_v16  ;;  %v1418_v21 = vunpack.c.l.b16 %v1250_v18 }
 0x102   : > { %v932_v19 = vpop.f32.mrf.mxu0 }
 0x103   : > { %v1251_v20 = vpack.c.bf16 %v932_v19, %v932_v19 }
 0x105   : > { %v1419_v22 = vunpack.c.l.b16 %v1251_v20 }
 0x107   : > { %v5323_v23 = vpack.c.b16 %v1419_v22, %v1418_v21 }
 0x10a   : > { %v935_v25 = vpop.f32.mrf.mxu0 }
 0x10b   : > { %v1252_v26 = vpack.c.bf16 %v935_v25, %v935_v25  ;;  %v4342_v25 = vld [vmem:[%s5287_s2 + $0x158] sm:$0xff] }
 0x10c   : > { %1144 = vmatmul.bf16.gmra.mxu2 %v4342_v25 }
 0x10d   : > { %974 = vmatmul.bf16.gmra.mxu0 %v4308_v24  ;;  %v1420_v29 = vunpack.c.l.b16 %v1252_v26  ;;  %v4337_v24 = vld [vmem:[%s5287_s2 + $0x130] sm:$0xff] }
 0x10e   : > { %1119 = vmatmul.bf16.gmra.mxu1 %v4337_v24 }
 0x112   : > { %v937_v27 = vpop.f32.mrf.mxu0 }
 0x113   : > { %v1253_v28 = vpack.c.bf16 %v937_v27, %v937_v27 }
 0x115   : > { %v1421_v30 = vunpack.c.l.b16 %v1253_v28 }
 0x117   : > { %v5326_v31 = vpack.c.b16 %v1421_v30, %v1420_v29 }
 0x11a   : > { %v940_v33 = vpop.f32.mrf.mxu0 }
 0x11b   : > { %v1254_v34 = vpack.c.bf16 %v940_v33, %v940_v33 }
 0x11d   : > { %979 = vmatmul.bf16.gmra.mxu0 %v4309_v32  ;;  %v1422_v37 = vunpack.c.l.b16 %v1254_v34 }
 0x122   : > { %v942_v35 = vpop.f32.mrf.mxu0 }
 0x123   : > { %v1255_v36 = vpack.c.bf16 %v942_v35, %v942_v35 }
 0x125   : > { %v1423_v38 = vunpack.c.l.b16 %v1255_v36 }
 0x127   : > { %v5329_v39 = vpack.c.b16 %v1423_v38, %v1422_v37  ;;  %v4316_v37 = vld [vmem:[%s5287_s2 + $0x88] sm:$0xff] }
 0x12a   : > { %v945_v41 = vpop.f32.mrf.mxu0 }
 0x12b   : > { %v1256_v43 = vpack.c.bf16 %v945_v41, %v945_v41 }
 0x12d   : > { %984 = vmatmul.bf16.gmra.mxu0 %v4310_v40  ;;  %v1424_v46 = vunpack.c.l.b16 %v1256_v43  ;;  %v4343_v40 = vld [vmem:[%s5287_s2 + $0x160] sm:$0xff] }
 0x12e   : > { %1149 = vmatmul.bf16.gmra.mxu2 %v4343_v40  ;;  %v4348_v40 = vld [vmem:[%s5287_s2 + $0x188] sm:$0xff] }
 0x132   : > { %v947_v44 = vpop.f32.mrf.mxu0 }
 0x133   : > { %v1257_v45 = vpack.c.bf16 %v947_v44, %v947_v44 }
 0x135   : > { %v1425_v47 = vunpack.c.l.b16 %v1257_v45 }
 0x137   : > { %v5333_v48 = vpack.c.b16 %v1425_v47, %v1424_v46  ;;  %v4317_v47 = vld [vmem:[%s5287_s2 + $0x90] sm:$0xff] }
 0x13a   : > { %v950_v50 = vpop.f32.mrf.mxu0 }
 0x13b   : > { %v1258_v53 = vpack.c.bf16 %v950_v50, %v950_v50  ;;  %v4344_v50 = vld [vmem:[%s5287_s2 + $0x168] sm:$0xff] }
 0x13d   : > { %989 = vmatmul.bf16.gmra.mxu0 %v4311_v49  ;;  %v1426_v56 = vunpack.c.l.b16 %v1258_v53 }
 0x13e   : > { %1154 = vmatmul.bf16.gmra.mxu2 %v4344_v50 }
 0x142   : > { %v952_v54 = vpop.f32.mrf.mxu0 }
 0x143   : > { %v1259_v55 = vpack.c.bf16 %v952_v54, %v952_v54 }
 0x145   : > { %v1427_v57 = vunpack.c.l.b16 %v1259_v55 }
 0x147   : > { %v5338_v58 = vpack.c.b16 %v1427_v57, %v1426_v56  ;;  %v4351_v56 = vld [vmem:[%s5287_s2 + $0x1a0] sm:$0xff] }
 0x148   : > { %1189 = vmatmul.bf16.vlgmr.msra.gmra.mxu3 %v4351_v56 }
 0x14a   : > { %v955_v60 = vpop.f32.mrf.mxu0 }
 0x14b   : > { %v1260_v26 = vpack.c.bf16 %v955_v60, %v955_v60 }
 0x14d   : > { %994 = vmatmul.bf16.gmra.mxu0 %v4312_v59  ;;  %v1428_v32 = vunpack.c.l.b16 %v1260_v26  ;;  %v4318_v59 = vld [vmem:[%s5287_s2 + $0x98] sm:$0xff]  ;;  %v4347_v26 = vld [vmem:[%s5287_s2 + $0x180] sm:$0xff] }
 0x14e   : > { %1159 = vmatmul.bf16.gmra.mxu2 %v4345_v61 }
 0x152   : > { %v957_v63 = vpop.f32.mrf.mxu0 }
 0x153   : > { %v1261_v21 = vpack.c.bf16 %v957_v63, %v957_v63 }
 0x155   : > { %v1429_v29 = vunpack.c.l.b16 %v1261_v21  ;;  %v5394_v21 = vpop.f32.mrf.mxu1 }
 0x157   : > { %v5358_v35 = vpack.c.b16 %v1429_v29, %v1428_v32  ;;  %v4365_v29 = vld [vmem:[%s5297_s5 + $0x10] sm:$0xff] }
 0x15a   : > { %v960_v1 = vpop.f32.mrf.mxu0 }
 0x15b   : > { %v1262_v16 = vpack.c.bf16 %v960_v1, %v960_v1  ;;  %v4363_v1 = vld [vmem:[%s5297_s5] sm:$0xff] }
 0x15d   : > { %999 = vmatmul.bf16.gmra.mxu0 %v4313_v0  ;;  %v1430_v20 = vunpack.c.l.b16 %v1262_v16 }
 0x162   : > { %v962_v4 = vpop.f32.mrf.mxu0 }
 0x163   : > { %v1263_v14 = vpack.c.bf16 %v962_v4, %v962_v4  ;;  %v4352_v4 = vld [vmem:[%s5287_s2 + $0x1a8] sm:$0xff] }
 0x164   : > { %1194 = vmatmul.bf16.gmra.mxu3 %v4352_v4 }
 0x165   : > { %v1431_v19 = vunpack.c.l.b16 %v1263_v14 }
 0x167   : > { %v5353_v22 = vpack.c.b16 %v1431_v19, %v1430_v20  ;;  %v4320_v20 = vld [vmem:[%s5287_s2 + $0xa8] sm:$0xff] }
 0x16a   : > { %v965_v6 = vpop.f32.mrf.mxu0 }
 0x16b   : > { %v1264_v9 = vpack.c.bf16 %v965_v6, %v965_v6  ;;  %v4319_v6 = vld [vmem:[%s5287_s2 + $0xa0] sm:$0xff] }
 0x16d   : > { %1004 = vmatmul.bf16.gmra.mxu0 %v4314_v5  ;;  %v1432_v12 = vunpack.c.l.b16 %v1264_v9  ;;  %v4346_v9 = vld [vmem:[%s5287_s2 + $0x178] sm:$0xff] }
 0x16e   : > { %1164 = vmatmul.bf16.gmra.mxu2 %v4346_v9 }
 0x172   : > { %v967_v10 = vpop.f32.mrf.mxu0 }
 0x173   : > { %v1265_v11 = vpack.c.bf16 %v967_v10, %v967_v10 }
 0x175   : > { %v1433_v13 = vunpack.c.l.b16 %v1265_v11 }
 0x177   : > { %v5349_v15 = vpack.c.b16 %v1433_v13, %v1432_v12  ;;  %v4364_v13 = vld [vmem:[%s5297_s5 + $0x8] sm:$0xff] }
 0x179   : > { %1450 = vmatpush.bf16.xpose.msrb.mxu1 %v5349_v15 }
 0x17a   : > { %v970_v18 = vpop.f32.mrf.mxu0 }
 0x17b   : > { %v1266_v27 = vpack.c.bf16 %v970_v18, %v970_v18  ;;  %v5389_v18 = vpop.f32.mrf.mxu2 }
 0x17d   : > { %1009 = vmatmul.bf16.gmra.mxu0 %v4315_v17  ;;  %v1519_v33 = vunpack.c.l.b16 %v1266_v27  ;;  %v4353_v17 = vld [vmem:[%s5287_s2 + $0x1b0] sm:$0xff] }
 0x17e   : > { %1199 = vmatmul.bf16.gmra.mxu3 %v4353_v17  ;;  %1169 = vmatmul.bf16.gmra.mxu2 %v4347_v26 }
 0x181   : > { %1451 = vmatpush.bf16.xpose.msrb.mxu1 %v5353_v22 }
 0x182   : > { %v972_v28 = vpop.f32.mrf.mxu0 }
 0x183   : > { %v1267_v30 = vpack.c.bf16 %v972_v28, %v972_v28  ;;  %v5396_v25 = vpop.f32.mrf.mxu2  ;;  %v5399_v28 = vpop.f32.mrf.mxu1 }
 0x185   : > { %v1520_v34 = vunpack.c.l.b16 %v1267_v30  ;;  %v4354_v30 = vld [vmem:[%s5287_s2 + $0x1b8] sm:$0xff] }
 0x187   : > { %v5360_v36 = vpack.c.b16 %v1520_v34, %v1519_v33  ;;  %v4321_v33 = vld [vmem:[%s5287_s2 + $0xb0] sm:$0xff] }
 0x189   : > { %6696 = vst [vmem:[#allocation16_spill] sm:$0xff] %v5360_v36  ;;  %1452 = vmatpush.bf16.xpose.msrb.mxu1 %v5358_v35 }
 0x18a   : > { %v975_v38 = vpop.f32.mrf.mxu0 }
 0x18b   : > { %v1268_v41 = vpack.c.bf16 %v975_v38, %v975_v38  ;;  %v5403_v32 = vpop.f32.mrf.mxu2 }
 0x18d   : > { %1014 = vmatmul.bf16.gmra.mxu0 %v4316_v37  ;;  %v1521_v44 = vunpack.c.l.b16 %v1268_v41  ;;  %v5406_v37 = vpop.f32.mrf.mxu1 }
 0x18e   : > { %1204 = vmatmul.bf16.gmra.mxu3 %v4354_v30  ;;  %1174 = vmatmul.bf16.gmra.mxu2 %v4348_v40 }
 0x191   : > { %1453 = vmatpush.bf16.xpose.msrb.mxu1 %v5338_v58 }
 0x192   : > { %v977_v42 = vpop.f32.mrf.mxu0 }
 0x193   : > { %v1269_v43 = vpack.c.bf16 %v977_v42, %v977_v42  ;;  %v5408_v38 = vpop.f32.mrf.mxu2  ;;  %v4366_v42 = vld [vmem:[%s5297_s5 + $0x18] sm:$0xff] }
 0x195   : > { %v1522_v45 = vunpack.c.l.b16 %v1269_v43  ;;  %v4355_v43 = vld [vmem:[%s5287_s2 + $0x1c0] sm:$0xff] }
 0x197   : > { %v5366_v46 = vpack.c.b16 %v1522_v45, %v1521_v44  ;;  %v5415_v45 = vpop.f32.mrf.mxu1 }
 0x199   : > { %6697 = vst [vmem:[#allocation17_spill] sm:$0xff] %v5366_v46  ;;  %1454 = vmatpush.bf16.xpose.msrb.mxu1 %v5333_v48 }
 0x19a   : > { %v980_v49 = vpop.f32.mrf.mxu0 }
 0x19b   : > { %v1270_v51 = vpack.c.bf16 %v980_v49, %v980_v49  ;;  %v5413_v44 = vpop.f32.mrf.mxu2 }
 0x19d   : > { %1019 = vmatmul.bf16.gmra.mxu0 %v4317_v47  ;;  %v1523_v54 = vunpack.c.l.b16 %v1270_v51  ;;  %v4322_v47 = vld [vmem:[%s5287_s2 + $0xb8] sm:$0xff]  ;;  %v4349_v51 = vld [vmem:[%s5287_s2 + $0x190] sm:$0xff] }
 0x19e   : > { %1209 = vmatmul.bf16.gmra.mxu3 %v4355_v43  ;;  %1179 = vmatmul.bf16.gmra.mxu2 %v4349_v51 }
 0x1a1   : > { %1455 = vmatpush.bf16.xpose.msrb.mxu1 %v5329_v39 }
 0x1a2   : > { %v982_v52 = vpop.f32.mrf.mxu0 }
 0x1a3   : > { %v1271_v53 = vpack.c.bf16 %v982_v52, %v982_v52  ;;  %v5418_v50 = vpop.f32.mrf.mxu2 }
 0x1a5   : > { %v1524_v55 = vunpack.c.l.b16 %v1271_v53  ;;  %v5421_v53 = vpop.f32.mrf.mxu1 }
 0x1a7   : > { %v5373_v57 = vpack.c.b16 %v1524_v55, %v1523_v54 }
 0x1a9   : > { %6698 = vst [vmem:[#allocation18_spill] sm:$0xff] %v5373_v57  ;;  %1456 = vmatpush.bf16.xpose.msrb.mxu1 %v5326_v31 }
 0x1aa   : > { %v985_v60 = vpop.f32.mrf.mxu0 }
 0x1ab   : > { %v1272_v62 = vpack.c.bf16 %v985_v60, %v985_v60  ;;  %v4356_v60 = vld [vmem:[%s5287_s2 + $0x1c8] sm:$0xff]  ;;  %v5424_v61 = vpop.f32.mrf.mxu2 }
 0x1ad   : > { %1024 = vmatmul.bf16.gmra.mxu0 %v4318_v59  ;;  %v1525_v2 = vunpack.c.l.b16 %v1272_v62  ;;  %v5430_v4 = vpop.f32.mrf.mxu1 }
 0x1ae   : > { %1214 = vmatmul.bf16.gmra.mxu3 %v4356_v60 }
 0x1b1   : > { %1457 = vmatpush.bf16.xpose.msrb.mxu1 %v5323_v23 }
 0x1b2   : > { %v987_v63 = vpop.f32.mrf.mxu0 }
 0x1b3   : > { %v1273_v0 = vpack.c.bf16 %v987_v63, %v987_v63 }
 0x1b5   : > { %v1526_v3 = vunpack.c.l.b16 %v1273_v0  ;;  %v5438_v30 = vpop.f32.mrf.mxu1 }
 0x1b7   : > { %v5381_v5 = vpack.c.b16 %v1526_v3, %v1525_v2 }
 0x1b8   : > { %1458 = vmatmul.bf16.vlgmr.msrb.gmra.mxu1 %v4363_v1  ;;  %v4323_v1 = vld [vmem:[%s5287_s2 + $0xc0] sm:$0xff] }
 0x1b9   : > { %6699 = vst [vmem:[#allocation19_spill] sm:$0xff] %v5381_v5 }
 0x1ba   : > { %v990_v7 = vpop.f32.mrf.mxu0 }
 0x1bb   : > { %v1274_v10 = vpack.c.bf16 %v990_v7, %v990_v7 }
 0x1bd   : > { %1029 = vmatmul.bf16.gmra.mxu0 %v4319_v6  ;;  %v1527_v14 = vunpack.c.l.b16 %v1274_v10  ;;  %v5434_v10 = vpop.f32.mrf.mxu2 }
 0x1c2   : > { %v992_v11 = vpop.f32.mrf.mxu0 }
 0x1c3   : > { %v1275_v12 = vpack.c.bf16 %v992_v11, %v992_v11  ;;  %v4350_v11 = vld [vmem:[%s5287_s2 + $0x198] sm:$0xff] }
 0x1c4   : > { %1184 = vmatmul.bf16.gmra.mxu2 %v4350_v11 }
 0x1c5   : > { %v1528_v16 = vunpack.c.l.b16 %v1275_v12  ;;  %v5447_v40 = vpop.f32.mrf.mxu2 }
 0x1c7   : > { %v5391_v19 = vpack.c.b16 %v1528_v16, %v1527_v14 }
 0x1c8   : > { %1463 = vmatmul.bf16.gmra.mxu1 %v4364_v13 }
 0x1c9   : > { %6700 = vst [vmem:[#allocation20_spill] sm:$0xff] %v5391_v19 }
 0x1ca   : > { %v995_v24 = vpop.f32.mrf.mxu0 }
 0x1cb   : > { %v1276_v12 = vpack.c.bf16 %v995_v24, %v995_v24  ;;  %v4324_v24 = vld [vmem:[%s5287_s2 + $0xc8] sm:$0xff] }
 0x1cd   : > { %1034 = vmatmul.bf16.gmra.mxu0 %v4320_v20  ;;  %v1529_v20 = vunpack.c.l.b16 %v1276_v12  ;;  %v5452_v51 = vpop.f32.mrf.mxu2  ;;  %v4359_v12 = vld [vmem:[%s5287_s2 + $0x1e0] sm:$0xff] }
 0x1d2   : > { %v997_v27 = vpop.f32.mrf.mxu0 }
 0x1d3   : > { %v1277_v7 = vpack.c.bf16 %v997_v27, %v997_v27  ;;  %v4357_v27 = vld [vmem:[%s5287_s2 + $0x1d0] sm:$0xff] }
 0x1d4   : > { %1219 = vmatmul.bf16.gmra.mxu3 %v4357_v27  ;;  %v5475_v27 = vpop.f32.mrf.mxu3 }
 0x1d5   : > { %v1530_v16 = vunpack.c.l.b16 %v1277_v7  ;;  %6707 = vst [vmem:[#allocation27_spill] sm:$0xff] %v5475_v27 }
 0x1d8   : > { %1468 = vmatmul.bf16.gmra.mxu1 %v4365_v29 }
 0x1da   : > { %v1000_v34 = vpop.f32.mrf.mxu0 }
 0x1db   : > { %v1278_v0 = vpack.c.bf16 %v1000_v34, %v1000_v34 }
 0x1dd   : > { %1039 = vmatmul.bf16.gmra.mxu0 %v4321_v33  ;;  %v1531_v6 = vunpack.c.l.b16 %v1278_v0  ;;  %v5441_v33 = vpack.c.b16 %v1530_v16, %v1529_v20  ;;  %v5461_v0 = vpop.f32.mrf.mxu2  ;;  %v1328_v16 = vpack.c.bf16 %v5389_v18, %v5389_v18  ;;  %v4326_v20 = vld [vmem:[%s5287_s2 + $0xd8] sm:$0xff] }
 0x1df   : > { %6703 = vst [vmem:[#allocation23_spill] sm:$0xff] %v5441_v33 }
 0x1e2   : > { %v1002_v41 = vpop.f32.mrf.mxu0 }
 0x1e3   : > { %v1279_v62 = vpack.c.bf16 %v1002_v41, %v1002_v41 }
 0x1e5   : > { %v1532_v3 = vunpack.c.l.b16 %v1279_v62 }
 0x1e7   : > { %v5432_v9 = vpack.c.b16 %v1532_v3, %v1531_v6 }
 0x1e8   : > { %1473 = vmatmul.bf16.gmra.mxu1 %v4366_v42  ;;  %v5449_v42 = vpop.f32.mrf.mxu1 }
 0x1e9   : > { %6702 = vst [vmem:[#allocation22_spill] sm:$0xff] %v5432_v9 }
 0x1ea   : > { %v1005_v49 = vpop.f32.mrf.mxu0 }
 0x1eb   : > { %v1280_v52 = vpack.c.bf16 %v1005_v49, %v1005_v49 }
 0x1ed   : > { %1044 = vmatmul.bf16.gmra.mxu0 %v4322_v47  ;;  %v1533_v56 = vunpack.c.l.b16 %v1280_v52 }
 0x1f0   : > { %v5459_v60 = vpop.f32.mrf.mxu1 }
 0x1f2   : > { %v1007_v54 = vpop.f32.mrf.mxu0 }
 0x1f3   : > { %v1281_v55 = vpack.c.bf16 %v1007_v54, %v1007_v54 }
 0x1f5   : > { %v1534_v59 = vunpack.c.l.b16 %v1281_v55  ;;  %v4358_v55 = vld [vmem:[%s5287_s2 + $0x1d8] sm:$0xff] }
 0x1f6   : > { %1224 = vmatmul.bf16.gmra.mxu3 %v4358_v55 }
 0x1f7   : > { %v5426_v63 = vpack.c.b16 %v1534_v59, %v1533_v56  ;;  %v4325_v59 = vld [vmem:[%s5287_s2 + $0xd0] sm:$0xff] }
 0x1f8   : > { %v1120_v6 = vpop.f32.mrf.mxu1 }
 0x1f9   : > { %6701 = vst [vmem:[#allocation21_spill] sm:$0xff] %v5426_v63  ;;  %1551 = vmatpush.bf16.xpose.msrb.mxu2 %v5426_v63 }
 0x1fa   : > { %v1010_v2 = vpop.f32.mrf.mxu0 }
 0x1fb   : > { %v1282_v13 = vpack.c.bf16 %v1010_v2, %v1010_v2 }
 0x1fd   : > { %1049 = vmatmul.bf16.gmra.mxu0 %v4323_v1  ;;  %v1620_v26 = vunpack.c.l.b16 %v1282_v13  ;;  %v5465_v13 = vpop.f32.mrf.mxu2 }
 0x201   : > { %1552 = vmatpush.bf16.xpose.msrb.mxu2 %v5432_v9 }
 0x202   : > { %v1012_v14 = vpop.f32.mrf.mxu0 }
 0x203   : > { %v1283_v17 = vpack.c.bf16 %v1012_v14, %v1012_v14 }
 0x205   : > { %v1621_v29 = vunpack.c.l.b16 %v1283_v17  ;;  %v1329_v17 = vpack.c.bf16 %v5396_v25, %v5396_v25  ;;  %v5482_v55 = vpop.f32.mrf.mxu2 }
 0x206   : > { %1229 = vmatmul.bf16.gmra.mxu3 %v4359_v12 }
 0x207   : > { %v5443_v34 = vpack.c.b16 %v1621_v29, %v1620_v26  ;;  %v2250_v29 = vlaneseq }
 0x209   : > { %6704 = vst [vmem:[#allocation24_spill] sm:$0xff] %v5443_v34  ;;  %1553 = vmatpush.bf16.xpose.msrb.mxu2 %v5441_v33 }
 0x20a   : > { %v1015_v41 = vpop.f32.mrf.mxu0 }
 0x20b   : > { %v1284_v43 = vpack.c.bf16 %v1015_v41, %v1015_v41  ;;  %v1837_v41 = vunpack.c.l.b16 %v1329_v17 }
 0x20d   : > { %1054 = vmatmul.bf16.gmra.mxu0 %v4324_v24  ;;  %v1622_v52 = vunpack.c.l.b16 %v1284_v43  ;;  %v1836_v24 = vunpack.c.l.b16 %v1328_v16  ;;  %v1122_v43 = vpop.f32.mrf.mxu1  ;;  %v6646_v16 = vmov 0.0  }
 0x20e   : > { %v1327_v25 = vpack.c.bf16 %v1122_v43, %v1122_v43 }
 0x20f   : > { %v5479_v18 = vpack.c.b16 %v1837_v41, %v1836_v24  ;;  %v1325_v41 = vpack.c.bf16 %v5459_v60, %v5459_v60 }
 0x211   : > { %1554 = vmatpush.bf16.xpose.msrb.mxu2 %v5391_v19  ;;  %6708 = vst [vmem:[#allocation28_spill] sm:$0xff] %v5479_v18 }
 0x212   : > { %v1017_v47 = vpop.f32.mrf.mxu0 }
 0x213   : > { %v1285_v49 = vpack.c.bf16 %v1017_v47, %v1017_v47  ;;  %v5477_v47 = vand.u32 127, %v2250_v29  ;;  %v1324_v29 = vpack.c.bf16 %v5449_v42, %v5449_v42 }
 0x215   : > { %v1623_v54 = vunpack.c.l.b16 %v1285_v49  ;;  %v2253_v49 = vstv %s2252_s28  ;;  %s5059_s28 = scalar_lea.hbm %s6641_s4, 768 }
 0x216   : > { %vm2254_vm0 = vcmp.ge.s32.totalorder %v5477_v47, %v2253_v49 }
 0x217   : > { %v5455_v56 = vpack.c.b16 %v1623_v54, %v1622_v52  ;;  %v1326_v52 = vpack.c.bf16 %v1120_v6, %v1120_v6  ;;  %v5490_v17 = vsel %vm2254_vm0, -1e+09, %v6646_v16 }
 0x219   : > { %6705 = vst [vmem:[#allocation25_spill] sm:$0xff] %v5455_v56  ;;  %1555 = vmatpush.bf16.xpose.msrb.mxu2 %v5381_v5 }
 0x21a   : > { %v1020_v62 = vpop.f32.mrf.mxu0 }
 0x21b   : > { %v1286_v1 = vpack.c.bf16 %v1020_v62, %v1020_v62 }
 0x21d   : > { %1059 = vmatmul.bf16.gmra.mxu0 %v4325_v59  ;;  %v1624_v7 = vunpack.c.l.b16 %v1286_v1  ;;  %v5486_v1 = vpop.f32.mrf.mxu3 }
 0x21e   : > { %6709 = vst [vmem:[#allocation29_spill] sm:$0xff] %v5486_v1 }
 0x221   : > { %1556 = vmatpush.bf16.xpose.msrb.mxu2 %v5373_v57 }
 0x222   : > { %v1022_v2 = vpop.f32.mrf.mxu0 }
 0x223   : > { %v1287_v3 = vpack.c.bf16 %v1022_v2, %v1022_v2  ;;  %v1834_v2 = vunpack.c.l.b16 %v1326_v52  ;;  %v4327_v52 = vld [vmem:[%s5287_s2 + $0xe0] sm:$0xff] }
 0x225   : > { %v1625_v11 = vunpack.c.l.b16 %v1287_v3  ;;  %v1835_v3 = vunpack.c.l.b16 %v1327_v25  ;;  %v5509_v42 = vpop.f32.mrf.mxu3 }
 0x227   : > { %v5467_v14 = vpack.c.b16 %v1625_v11, %v1624_v7  ;;  %v4367_v7 = vld [vmem:[%s5297_s5 + $0x20] sm:$0xff]  ;;  %v5502_v49 = vpack.c.b16 %v1835_v3, %v1834_v2  ;;  %v1322_v2 = vpack.c.bf16 %v5430_v4, %v5430_v4  ;;  %v1323_v3 = vpack.c.bf16 %v5438_v30, %v5438_v30 }
 0x229   : > { %6706 = vst [vmem:[#allocation26_spill] sm:$0xff] %v5467_v14  ;;  %1557 = vmatpush.bf16.xpose.msrb.mxu2 %v5366_v46  ;;  %v1831_v4 = vunpack.c.l.b16 %v1323_v3 }
 0x22a   : > { %v1025_v26 = vpop.f32.mrf.mxu0  ;;  %6711 = vst [vmem:[#allocation31_spill] sm:$0xff] %v5502_v49 }
 0x22b   : > { %v1288_v54 = vpack.c.bf16 %v1025_v26, %v1025_v26  ;;  %v4360_v26 = vld [vmem:[%s5287_s2 + $0x1e8] sm:$0xff] }
 0x22c   : > { %1234 = vmatmul.bf16.gmra.mxu3 %v4360_v26 }
 0x22d   : > { %1064 = vmatmul.bf16.gmra.mxu0 %v4326_v20  ;;  %v1626_v6 = vunpack.c.l.b16 %v1288_v54  ;;  %v5507_v54 = vpop.f32.mrf.mxu2 }
 0x231   : > { %1558 = vmatpush.bf16.xpose.msrb.mxu2 %v5360_v36 }
 0x232   : > { %v1027_v59 = vpop.f32.mrf.mxu0 }
 0x233   : > { %v1289_v62 = vpack.c.bf16 %v1027_v59, %v1027_v59  ;;  %v1832_v59 = vunpack.c.l.b16 %v1324_v29  ;;  %v5522_v29 = vpop.f32.mrf.mxu3 }
 0x235   : > { %v1627_v11 = vunpack.c.l.b16 %v1289_v62  ;;  %v1459_v12 = vpop.f32.mrf.mxu1  ;;  %v1833_v62 = vunpack.c.l.b16 %v1325_v41  ;;  %v1830_v41 = vunpack.c.l.b16 %v1322_v2  ;;  %v5525_v16 = vpop.f32.mrf.mxu2 }
 0x236   : > { %v2186_v20 = vmul.f32 0.088388346, %v1459_v12 }
 0x237   : > { %v5495_v24 = vpack.c.b16 %v1627_v11, %v1626_v6  ;;  %v5518_v11 = vpack.c.b16 %v1833_v62, %v1832_v59  ;;  %v4361_v62 = vld [vmem:[%s5287_s2 + $0x1f0] sm:$0xff]  ;;  %v5537_v3 = vpack.c.b16 %v1831_v4, %v1830_v41  ;;  %v1318_v41 = vpack.c.bf16 %v5399_v28, %v5399_v28 }
 0x238   : > { %1559 = vmatmul.bf16.vlgmr.msrb.gmra.mxu2 %v4367_v7  ;;  %v5500_v43 = vadd.f32 %v5490_v17, %v2186_v20  ;;  %v1319_v4 = vpack.c.bf16 %v5406_v37, %v5406_v37  ;;  %v4369_v28 = vld [vmem:[%s5297_s5 + $0x30] sm:$0xff] }
 0x239   : > { %1854 = vmatpush.bf16.xpose.msra.mxu2 %v5479_v18  ;;  %6710 = vst [vmem:[#allocation30_spill] sm:$0xff] %v5495_v24 }
 0x23a   : > { %2399 = vmax.xlane.f32.xlu0 %v5500_v43  ;;  %v1030_v25 = vpop.f32.mrf.mxu0  ;;  %6712 = vst [vmem:[#allocation32_spill] sm:$0xff] %v5518_v11 }
 0x23b   : > { %v1290_v12 = vpack.c.bf16 %v1030_v25, %v1030_v25  ;;  %v1320_v25 = vpack.c.bf16 %v5415_v45, %v5415_v45  ;;  %6714 = vst [vmem:[#allocation34_spill] sm:$0xff] %v5537_v3  ;;  %v5544_v45 = vpop.f32.mrf.mxu3 }
 0x23c   : > { %1239 = vmatmul.bf16.gmra.mxu3 %v4361_v62 }
 0x23d   : > { %1069 = vmatmul.bf16.gmra.mxu0 %v4327_v52  ;;  %v1461_v60 = vpop.f32.mrf.mxu1  ;;  %v4368_v52 = vld [vmem:[%s5297_s5 + $0x28] sm:$0xff]  ;;  %v1628_v30 = vunpack.c.l.b16 %v1290_v12 }
 0x23e   : > { %v2187_v7 = vmul.f32 0.088388346, %v1461_v60  ;;  %v4328_v12 = vld [vmem:[%s5287_s2 + $0xe8] sm:$0xff] }
 0x240   : > { %v5516_v6 = vadd.f32 %v5490_v17, %v2187_v7 }
 0x241   : > { %1855 = vmatpush.bf16.xpose.msra.mxu2 %v5502_v49 }
 0x242   : > { %2401 = vmax.xlane.f32.xlu0 %v5516_v6  ;;  %v1032_v20 = vpop.f32.mrf.mxu0 }
 0x243   : > { %v1291_v26 = vpack.c.bf16 %v1032_v20, %v1032_v20  ;;  %v1321_v20 = vpack.c.bf16 %v5421_v53, %v5421_v53 }
 0x245   : > { %v1629_v60 = vunpack.c.l.b16 %v1291_v26  ;;  %v1464_v7 = vpop.f32.mrf.mxu1 }
 0x246   : > { %v2188_v59 = vmul.f32 0.088388346, %v1464_v7  ;;  %v5546_v7 = vpop.f32.mrf.mxu2 }
 0x247   : > { %v5530_v49 = vpack.c.b16 %v1629_v60, %v1628_v30  ;;  %v1828_v30 = vunpack.c.l.b16 %v1320_v25  ;;  %v1829_v60 = vunpack.c.l.b16 %v1321_v20  ;;  %v5561_v20 = vpop.f32.mrf.mxu3 }
 0x248   : > { %1564 = vmatmul.bf16.gmra.mxu2 %v4368_v52  ;;  %v5535_v2 = vadd.f32 %v5490_v17, %v2188_v59 }
 0x249   : > { %1856 = vmatpush.bf16.xpose.msra.mxu2 %v5518_v11  ;;  %6713 = vst [vmem:[#allocation33_spill] sm:$0xff] %v5530_v49  ;;  %v5555_v62 = vpack.c.b16 %v1829_v60, %v1828_v30  ;;  %v4362_v11 = vld [vmem:[%s5287_s2 + $0x1f8] sm:$0xff]  ;;  %v1317_v30 = vpack.c.bf16 %v5394_v21, %v5394_v21 }
 0x24a   : > { %2403 = vmax.xlane.f32.xlu2 %v5535_v2  ;;  %v5541_v26 = vpop.f32.mrf.mxu0 }
 0x24b   : > { %6715 = vst [vmem:[#allocation35_spill] sm:$0xff] %v5555_v62  ;;  %v1825_v21 = vunpack.c.l.b16 %v1317_v30 }
 0x24c   : > { %1244 = vmatmul.bf16.gmra.mxu3 %v4362_v11 }
 0x24d   : > { %1074 = vmatmul.bf16.gmra.mxu0 %v4328_v12  ;;  %v1466_v53 = vpop.f32.mrf.mxu1  ;;  %v1826_v12 = vunpack.c.l.b16 %v1318_v41 }
 0x24e   : > { %v2189_v52 = vmul.f32 0.088388346, %v1466_v53  ;;  %v1827_v53 = vunpack.c.l.b16 %v1319_v4  ;;  %v5575_v41 = vpop.f32.mrf.mxu2 }
 0x250   : > { %v5553_v59 = vadd.f32 %v5490_v17, %v2189_v52  ;;  %v1316_v52 = vpack.c.bf16 %v5384_v8, %v5384_v8  ;;  %v5572_v18 = vpack.c.b16 %v1827_v53, %v1826_v12  ;;  %v5579_v8 = vpop.f32.mrf.mxu3 }
 0x251   : > { %1857 = vmatpush.bf16.xpose.msra.mxu2 %v5537_v3 }
 0x252   : > { %2405 = vmax.xlane.f32.xlu2 %v5553_v59  ;;  %v5558_v25 = vpop.f32.mrf.mxu0  ;;  %6716 = vst [vmem:[#allocation36_spill] sm:$0xff] %v5572_v18 }
 0x255   : > { %v1469_v3 = vpop.f32.mrf.mxu1 }
 0x256   : > { %v2190_v37 = vmul.f32 0.088388346, %v1469_v3  ;;  %v1824_v3 = vunpack.c.l.b16 %v1316_v52  ;;  %v5588_v36 = vpop.f32.mrf.mxu2  ;;  %v4370_v52 = vld [vmem:[%s5297_s5 + $0x38] sm:$0xff] }
 0x258   : > { %1569 = vmatmul.bf16.gmra.mxu2 %v4369_v28  ;;  %v5570_v60 = vadd.f32 %v5490_v17, %v2190_v37  ;;  %v5584_v11 = vpack.c.b16 %v1825_v21, %v1824_v3 }
 0x259   : > { %1858 = vmatpush.bf16.xpose.msra.mxu2 %v5555_v62  ;;  %v4329_v62 = vld [vmem:[%s5287_s2 + $0xf0] sm:$0xff] }
 0x25a   : > { %v1040_v4 = vpop.f32.mrf.mxu0  ;;  %2407 = vmax.xlane.f32.xlu2 %v5570_v60  ;;  %6717 = vst [vmem:[#allocation37_spill] sm:$0xff] %v5584_v11 }
 0x25b   : > { %v1294_v27 = vpack.c.bf16 %v1040_v4, %v1040_v4 }
 0x25d   : > { %1079 = vmatmul.bf16.gmra.mxu0 %v4329_v62  ;;  %v1471_v28 = vpop.f32.mrf.mxu1 }
 0x25e   : > { %v2191_v37 = vmul.f32 0.088388346, %v1471_v28  ;;  %v4330_v28 = vld [vmem:[%s5287_s2 + $0xf8] sm:$0xff] }
 0x260   : > { %v5582_v12 = vadd.f32 %v5490_v17, %v2191_v37 }
 0x261   : > { %1859 = vmatpush.bf16.xpose.msra.mxu2 %v5572_v18  ;;  %v5590_v18 = vpop.f32.mrf.mxu3 }
 0x262   : > { %2409 = vmax.xlane.f32.xlu0 %v5582_v12  ;;  %v1042_v53 = vpop.f32.mrf.mxu0 }
 0x263   : > { %v1295_v63 = vpack.c.bf16 %v1042_v53, %v1042_v53 }
 0x265   : > { %v1474_v30 = vpop.f32.mrf.mxu1 }
 0x266   : > { %v2192_v46 = vmul.f32 0.088388346, %v1474_v30 }
 0x268   : > { %1574 = vmatmul.bf16.gmra.mxu2 %v4370_v52  ;;  %v5594_v62 = vadd.f32 %v5490_v17, %v2192_v46 }
 0x269   : > { %1860 = vmatpush.bf16.xpose.msra.mxu2 %v5584_v11  ;;  %v5598_v3 = vpop.f32.mrf.mxu3  ;;  %v5600_v11 = vpop.f32.mrf.mxu2 }
 0x26a   : > { %v1045_v37 = vpop.f32.mrf.mxu0  ;;  %2411 = vmax.xlane.f32.xlu0 %v5594_v62  ;;  %6718 = vst [vmem:[#allocation38_spill] sm:$0xff] %v5600_v11  ;;  %v1632_v11 = vunpack.c.l.b16 %v1294_v27 }
 0x26b   : > { %v1296_v30 = vpack.c.bf16 %v1045_v37, %v1045_v37 }
 0x26d   : > { %1084 = vmatmul.bf16.gmra.mxu0 %v4330_v28  ;;  %v1476_v21 = vpop.f32.mrf.mxu1  ;;  %v1634_v33 = vunpack.c.l.b16 %v1296_v30 }
 0x26e   : > { %v2193_v57 = vmul.f32 0.088388346, %v1476_v21  ;;  %v4331_v21 = vld [vmem:[%s5287_s2 + $0x100] sm:$0xff]  ;;  %s3731_s2 = scalar_lea.hbm %s6641_s4, %s4403_s25 }
 0x26f   : > { %s3734_s16 = sshll.u32 %s3731_s2, 4  ;;  %s3735_s16 = int_to_ptr.hbm [resolvable:$true] %s3734_s16 }
 0x270   : > { %v5603_v5 = vadd.f32 %v5490_v17, %v2193_v57  ;;  %v1633_v17 = vunpack.c.l.b16 %v1295_v63  ;;  %s5053_s18 = sshra.s32 %s3735_s16, 4  ;;  %s5054_s18 = int_to_ptr.hbm [resolvable:$true] %s5053_s18 }
 0x271   : > { %v5606_v19 = vpop.f32.mrf.mxu3  ;;  %v5610_v28 = vpop.f32.mrf.mxu2  ;;  %s5055_s0 = scalar_lea.hbm %s5054_s18, 256  ;;  %p5060_p0 = scmp.lt.s32.totalorder %s5054_s18, %s6641_s4 }
 0x272   : > { %2413 = vmax.xlane.f32.xlu1 %v5603_v5  ;;  %v1047_v46 = vpop.f32.mrf.mxu0  ;;  %6719 = vst [vmem:[#allocation39_spill] sm:$0xff] %v5606_v19  ;;  %v5618_v30 = vpack.c.b16 %v1633_v17, %v1632_v11  ;;  %p5056_p6 = scmp.ne.s32.totalorder %s5054_s18, %s5055_s0  ;;  %p5061_p8 = scmp.lt.s32.totalorder %s5059_s28, %s5055_s0 }
 0x273   : > { %v1297_v52 = vpack.c.bf16 %v1047_v46, %v1047_v46  ;;  %6721 = vst [vmem:[#allocation41_spill] sm:$0xff] %v5610_v28  ;;  %v1293_v46 = vpack.c.bf16 %v5558_v25, %v5558_v25 }
 0x274   : > { %6722 = vst [vmem:[#allocation42_spill] sm:$0xff] %v5618_v30  ;;  %p5057_p12 = pnand %p5056_p6, %p5192_p10  ;;  %p5062_p9 = por %p5061_p8, %p5060_p0 }
 0x275   : > { %v1635_v9 = vunpack.c.l.b16 %v1297_v52  ;;  %v1631_v52 = vunpack.c.l.b16 %v1293_v46 }
 0x276   : > { %p5058_p1 = pneg %p5057_p12 }
 0x277   : > { %v5608_v1 = vpack.c.b16 %v1635_v9, %v1634_v33  ;;  %v1292_v9 = vpack.c.bf16 %v5541_v26, %v5541_v26 }
 0x278   : > { %p5063_p2 = pnand %p5062_p9, %p5058_p1 }
 0x279   : > { %6720 = vst [vmem:[#allocation40_spill] sm:$0xff] %v5608_v1  ;;  %1652 = vmatpush.bf16.xpose.msrb.mxu3 %v5608_v1  ;;  %v5614_v37 = vpop.f32.mrf.mxu3  ;;  %v5623_v4 = vpop.f32.mrf.mxu2  ;;  %v1630_v27 = vunpack.c.l.b16 %v1292_v9 }
 0x27a   : > { %v1050_v57 = vpop.f32.mrf.mxu0  ;;  %6723 = vst [vmem:[#allocation43_spill] sm:$0xff] %v5623_v4 }
 0x27b   : > { %v1298_v33 = vpack.c.bf16 %v1050_v57, %v1050_v57  ;;  %v5629_v25 = vpack.c.b16 %v1631_v52, %v1630_v27 }
 0x27d   : > { %1089 = vmatmul.bf16.gmra.mxu0 %v4331_v21  ;;  %v1721_v21 = vunpack.c.l.b16 %v1298_v33  ;;  %6724 = vst [vmem:[#allocation44_spill] sm:$0xff] %v5629_v25 }
 0x281   : > { %1653 = vmatpush.bf16.xpose.msrb.mxu3 %v5618_v30  ;;  %v5625_v28 = vpop.f32.mrf.mxu3  ;;  %v5632_v11 = vpop.f32.mrf.mxu2 }
 0x282   : > { %v1052_v53 = vpop.f32.mrf.mxu0  ;;  %6725 = vst [vmem:[#allocation45_spill] sm:$0xff] %v5632_v11 }
 0x283   : > { %v1299_v63 = vpack.c.bf16 %v1052_v53, %v1052_v53 }
 0x285   : > { %v1722_v1 = vunpack.c.l.b16 %v1299_v63 }
 0x287   : > { %v5627_v19 = vpack.c.b16 %v1722_v1, %v1721_v21 }
 0x289   : > { %1654 = vmatpush.bf16.xpose.msrb.mxu3 %v5629_v25  ;;  %v5634_v57 = vpop.f32.mrf.mxu3  ;;  %v5637_v33 = vpop.f32.mrf.mxu2  ;;  %v4371_v25 = vld [vmem:[%s5297_s5 + $0x40] sm:$0xff] }
 0x28a   : > { %v1055_v26 = vpop.f32.mrf.mxu0  ;;  %6726 = vst [vmem:[#allocation46_spill] sm:$0xff] %v5637_v33 }
 0x28b   : > { %v1300_v17 = vpack.c.bf16 %v1055_v26, %v1055_v26 }
 0x28d   : > { %v1723_v4 = vunpack.c.l.b16 %v1300_v17 }
 0x291   : > { %1655 = vmatpush.bf16.xpose.msrb.mxu3 %v5530_v49  ;;  %v5641_v52 = vpop.f32.mrf.mxu3  ;;  %v5644_v27 = vpop.f32.mrf.mxu2 }
 0x292   : > { %v1057_v46 = vpop.f32.mrf.mxu0  ;;  %6727 = vst [vmem:[#allocation47_spill] sm:$0xff] %v5644_v27 }
 0x293   : > { %v1301_v53 = vpack.c.bf16 %v1057_v46, %v1057_v46 }
 0x295   : > { %v1724_v9 = vunpack.c.l.b16 %v1301_v53 }
 0x297   : > { %v5639_v1 = vpack.c.b16 %v1724_v9, %v1723_v4  ;;  %v1344_v4 = vpack.c.bf16 %v5575_v41, %v5575_v41  ;;  %v1345_v9 = vpack.c.bf16 %v5588_v36, %v5588_v36  ;;  %v1342_v41 = vpack.c.bf16 %v5525_v16, %v5525_v16 }
 0x298   : > { %v1343_v36 = vpack.c.bf16 %v5546_v7, %v5546_v7  ;;  %v2260_v7 = vstv %s4284_s12 }
 0x299   : > { %1656 = vmatpush.bf16.xpose.msrb.mxu3 %v5495_v24  ;;  %v5647_v11 = vpop.f32.mrf.mxu3  ;;  %v5656_v24 = vpop.f32.mrf.mxu2  ;;  %v1938_v27 = vunpack.c.l.b16 %v1345_v9  ;;  %vm2261_vm1 = vcmp.ge.s32.totalorder %v5477_v47, %v2260_v7  ;;  %v1338_v7 = vpack.c.bf16 %v5461_v0, %v5461_v0 }
 0x29a   : > { %v1060_v63 = vpop.f32.mrf.mxu0  ;;  %6728 = vst [vmem:[#allocation48_spill] sm:$0xff] %v5656_v24 }
 0x29b   : > { %v1302_v21 = vpack.c.bf16 %v1060_v63, %v1060_v63 }
 0x29d   : > { %v1725_v17 = vunpack.c.l.b16 %v1302_v21 }
 0x2a1   : > { %1657 = vmatpush.bf16.xpose.msrb.mxu3 %v5467_v14  ;;  %v1937_v14 = vunpack.c.l.b16 %v1344_v4  ;;  %v5658_v33 = vpop.f32.mrf.mxu3 }
 0x2a2   : > { %v1062_v26 = vpop.f32.mrf.mxu0 }
 0x2a3   : > { %v1303_v46 = vpack.c.bf16 %v1062_v26, %v1062_v26 }
 0x2a5   : > { %v1726_v53 = vunpack.c.l.b16 %v1303_v46  ;;  %v5665_v46 = vpack.c.b16 %v1938_v27, %v1937_v14 }
 0x2a7   : > { %v5649_v49 = vpack.c.b16 %v1726_v53, %v1725_v17  ;;  %6729 = vst [vmem:[#allocation49_spill] sm:$0xff] %v5665_v46 }
 0x2a9   : > { %1658 = vmatpush.bf16.xpose.msrb.mxu3 %v5455_v56  ;;  %v5669_v56 = vpop.f32.mrf.mxu2  ;;  %v5673_v27 = vpop.f32.mrf.mxu3 }
 0x2aa   : > { %v1065_v63 = vpop.f32.mrf.mxu0  ;;  %6730 = vst [vmem:[#allocation50_spill] sm:$0xff] %v5669_v56 }
 0x2ab   : > { %v1304_v53 = vpack.c.bf16 %v1065_v63, %v1065_v63  ;;  %v1340_v63 = vpack.c.bf16 %v5482_v55, %v5482_v55 }
 0x2ad   : > { %v2400_v26 = vpop.xlane.xlu0 %2399  ;;  %v1727_v16 = vunpack.c.l.b16 %v1304_v53 }
 0x2ae   : > { %v2527_v21 = vsub.f32 %v5500_v43, %v2400_v26  ;;  %v1935_v43 = vunpack.c.l.b16 %v1342_v41  ;;  %v1936_v26 = vunpack.c.l.b16 %v1343_v36  ;;  %v1341_v41 = vpack.c.bf16 %v5507_v54, %v5507_v54 }
 0x2b0   : > { %v2591_v17 = vmul.f32 1.442695, %v2527_v21  ;;  %v5683_v53 = vpack.c.b16 %v1936_v26, %v1935_v43 }
 0x2b1   : > { %1659 = vmatpush.bf16.xpose.msrb.mxu3 %v5443_v34 }
 0x2b2   : > { %4681 = vpow2.f32 %v2591_v17  ;;  %v1067_v4 = vpop.f32.mrf.mxu0  ;;  %6731 = vst [vmem:[#allocation51_spill] sm:$0xff] %v5683_v53 }
 0x2b3   : > { %v1305_v9 = vpack.c.bf16 %v1067_v4, %v1067_v4  ;;  %v1933_v4 = vunpack.c.l.b16 %v1340_v63 }
 0x2b5   : > { %v1728_v24 = vunpack.c.l.b16 %v1305_v9  ;;  %v2402_v30 = vpop.xlane.xlu0 %2401  ;;  %v1934_v9 = vunpack.c.l.b16 %v1341_v41  ;;  %v5704_v41 = vpop.f32.mrf.mxu3 }
 0x2b6   : > { %v2528_v14 = vsub.f32 %v5516_v6, %v2402_v30 }
 0x2b7   : > { %v5677_v21 = vpack.c.b16 %v1728_v24, %v1727_v16  ;;  %v6732_v24 = vmov 0.0   ;;  %v5702_v63 = vpack.c.b16 %v1934_v9, %v1933_v4 }
 0x2b8   : > { %v5679_v17 = vpop.eup %4681  ;;  %v2593_v36 = vmul.f32 1.442695, %v2528_v14  ;;  %1660 = vmatmul.bf16.vlgmr.msrb.gmra.mxu3 %v4371_v25  ;;  %v5689_v30 = vsel %vm2261_vm1, -1e+09, %v6732_v24  ;;  %v1339_v14 = vpack.c.bf16 %v5465_v13, %v5465_v13  ;;  %v4372_v13 = vld [vmem:[%s5297_s5 + $0x48] sm:$0xff] }
 0x2b9   : > { %1955 = vmatpush.bf16.xpose.msra.mxu3 %v5665_v46  ;;  %2719 = vadd.xlane.f32.xlu2 %v5679_v17  ;;  %6733 = vst [vmem:[#allocation52_spill] sm:$0xff] %v5702_v63 }
 0x2ba   : > { %4683 = vpow2.f32 %v2593_v36  ;;  %v1070_v6 = vpop.f32.mrf.mxu0 }
 0x2bb   : > { %v1560_v55 = vpop.f32.mrf.mxu2 }
 0x2bc   : > { %v2194_v16 = vmul.f32 0.088388346, %v1560_v55 }
 0x2bd   : > { %v2404_v54 = vpop.xlane.xlu2 %2403 }
 0x2be   : > { %v2529_v25 = vsub.f32 %v5535_v2, %v2404_v54  ;;  %v5693_v43 = vadd.f32 %v5689_v30, %v2194_v16  ;;  %v1306_v2 = vpack.c.bf16 %v1070_v6, %v1070_v6  ;;  %v1931_v54 = vunpack.c.l.b16 %v1338_v7 }
 0x2bf   : > { %v1337_v7 = vpack.c.bf16 %v5452_v51, %v5452_v51 }
 0x2c0   : > { %v5695_v26 = vpop.eup %4683  ;;  %v2595_v36 = vmul.f32 1.442695, %v2529_v25  ;;  %2415 = vmax.xlane.f32.xlu1 %v5693_v43  ;;  %v1729_v25 = vunpack.c.l.b16 %v1306_v2 }
 0x2c1   : > { %1956 = vmatpush.bf16.xpose.msra.mxu3 %v5683_v53  ;;  %2721 = vadd.xlane.f32.xlu0 %v5695_v26  ;;  %v1932_v53 = vunpack.c.l.b16 %v1339_v14 }
 0x2c2   : > { %4685 = vpow2.f32 %v2595_v36  ;;  %v1072_v55 = vpop.f32.mrf.mxu0 }
 0x2c3   : > { %v1307_v16 = vpack.c.bf16 %v1072_v55, %v1072_v55  ;;  %v1562_v0 = vpop.f32.mrf.mxu2  ;;  %v1336_v55 = vpack.c.bf16 %v5447_v40, %v5447_v40  ;;  %v5722_v2 = vpack.c.b16 %v1932_v53, %v1931_v54  ;;  %v1334_v54 = vpack.c.bf16 %v5424_v61, %v5424_v61  ;;  %v4373_v61 = vld [vmem:[%s5297_s5 + $0x50] sm:$0xff] }
 0x2c4   : > { %v2195_v46 = vmul.f32 0.088388346, %v1562_v0 }
 0x2c5   : > { %v1730_v34 = vunpack.c.l.b16 %v1307_v16  ;;  %v2406_v56 = vpop.xlane.xlu2 %2405  ;;  %6735 = vst [vmem:[#allocation54_spill] sm:$0xff] %v5722_v2  ;;  %v1929_v40 = vunpack.c.l.b16 %v1336_v55 }
 0x2c6   : > { %v2530_v4 = vsub.f32 %v5553_v59, %v2406_v56  ;;  %v5711_v9 = vadd.f32 %v5689_v30, %v2195_v46  ;;  %v1930_v46 = vunpack.c.l.b16 %v1337_v7 }
 0x2c7   : > { %v5713_v6 = vpack.c.b16 %v1730_v34, %v1729_v25  ;;  %v5728_v34 = vpop.f32.mrf.mxu3 }
 0x2c8   : > { %v5715_v36 = vpop.eup %4685  ;;  %v2597_v14 = vmul.f32 1.442695, %v2530_v4  ;;  %2417 = vmax.xlane.f32.xlu1 %v5711_v9  ;;  %1665 = vmatmul.bf16.gmra.mxu3 %v4372_v13  ;;  %v1335_v13 = vpack.c.bf16 %v5434_v10, %v5434_v10  ;;  %v5739_v25 = vpack.c.b16 %v1930_v46, %v1929_v40 }
 0x2c9   : > { %1957 = vmatpush.bf16.xpose.msra.mxu3 %v5702_v63  ;;  %6734 = vst [vmem:[#allocation53_spill] sm:$0xff] %v5715_v36  ;;  %2723 = vadd.xlane.f32.xlu0 %v5715_v36 }
 0x2ca   : > { %4687 = vpow2.f32 %v2597_v14  ;;  %v5725_v56 = vpop.f32.mrf.mxu0  ;;  %6737 = vst [vmem:[#allocation56_spill] sm:$0xff] %v5739_v25  ;;  %v1927_v14 = vunpack.c.l.b16 %v1334_v54 }
 0x2cb   : > { %v1565_v59 = vpop.f32.mrf.mxu2 }
 0x2cc   : > { %v2196_v16 = vmul.f32 0.088388346, %v1565_v59  ;;  %v1928_v59 = vunpack.c.l.b16 %v1335_v13 }
 0x2cd   : > { %v2408_v0 = vpop.xlane.xlu2 %2407 }
 0x2ce   : > { %v5731_v51 = vadd.f32 %v5689_v30, %v2196_v16  ;;  %v2531_v4 = vsub.f32 %v5570_v60, %v2408_v0  ;;  %v1332_v60 = vpack.c.bf16 %v5413_v44, %v5413_v44  ;;  %v1333_v0 = vpack.c.bf16 %v5418_v50, %v5418_v50 }
 0x2cf   : > { %v5758_v54 = vpack.c.b16 %v1928_v59, %v1927_v14  ;;  %v1330_v14 = vpack.c.bf16 %v5403_v32, %v5403_v32  ;;  %v4374_v32 = vld [vmem:[%s5297_s5 + $0x58] sm:$0xff] }
 0x2d0   : > { %v5733_v53 = vpop.eup %4687  ;;  %v2599_v10 = vmul.f32 1.442695, %v2531_v4  ;;  %v1925_v4 = vunpack.c.l.b16 %v1332_v60 }
 0x2d1   : > { %1958 = vmatpush.bf16.xpose.msra.mxu3 %v5722_v2  ;;  %6736 = vst [vmem:[#allocation55_spill] sm:$0xff] %v5733_v53  ;;  %2725 = vadd.xlane.f32.xlu1 %v5733_v53  ;;  %v5748_v2 = vpop.f32.mrf.mxu3 }
 0x2d2   : > { %2419 = vmax.xlane.f32.xlu0 %v5731_v51  ;;  %v5744_v55 = vpop.f32.mrf.mxu0  ;;  %6739 = vst [vmem:[#allocation58_spill] sm:$0xff] %v5758_v54  ;;  %4689 = vpow2.f32 %v2599_v10 }
 0x2d3   : > { %v1567_v7 = vpop.f32.mrf.mxu2 }
 0x2d4   : > { %v2197_v16 = vmul.f32 0.088388346, %v1567_v7  ;;  %v1926_v7 = vunpack.c.l.b16 %v1333_v0  ;;  %v1923_v0 = vunpack.c.l.b16 %v1330_v14 }
 0x2d5   : > { %v2410_v40 = vpop.xlane.xlu0 %2409 }
 0x2d6   : > { %v2532_v46 = vsub.f32 %v5582_v12, %v2410_v40  ;;  %v5752_v63 = vadd.f32 %v5689_v30, %v2197_v16  ;;  %v5774_v59 = vpack.c.b16 %v1926_v7, %v1925_v4 }
 0x2d8   : > { %6738 = vst [vmem:[#allocation57_spill] sm:$0xff] %v5752_v63  ;;  %1670 = vmatmul.bf16.gmra.mxu3 %v4373_v61  ;;  %v5766_v50 = vpop.eup %4689 }
 0x2d9   : > { %1959 = vmatpush.bf16.xpose.msra.mxu3 %v5739_v25  ;;  %v2601_v25 = vmul.f32 1.442695, %v2532_v46  ;;  %2421 = vmax.xlane.f32.xlu1 %v5752_v63  ;;  %v5764_v44 = vpop.f32.mrf.mxu3 }
 0x2da   : > { %v5761_v13 = vpop.f32.mrf.mxu0 }
 0x2db   : > { %4691 = vpow2.f32 %v2601_v25  ;;  %v1570_v12 = vpop.f32.mrf.mxu2  ;;  %v1331_v25 = vpack.c.bf16 %v5408_v38, %v5408_v38 }
 0x2dc   : > { %v2198_v10 = vmul.f32 0.088388346, %v1570_v12 }
 0x2dd   : > { %v2412_v16 = vpop.xlane.xlu0 %2411 }
 0x2de   : > { %v2533_v40 = vsub.f32 %v5594_v62, %v2412_v16  ;;  %v5782_v38 = vadd.f32 %v5689_v30, %v2198_v10 }
 0x2e0   : > { %v2603_v53 = vmul.f32 1.442695, %v2533_v40 }
 0x2e1   : > { %1960 = vmatpush.bf16.xpose.msra.mxu3 %v5758_v54  ;;  %v5768_v61 = vpop.eup %4691  ;;  %2727 = vadd.xlane.f32.xlu1 %v5766_v50  ;;  %v1924_v54 = vunpack.c.l.b16 %v1331_v25  ;;  %v5790_v16 = vpop.f32.mrf.mxu3 }
 0x2e2   : > { %2729 = vadd.xlane.f32.xlu2 %v5768_v61  ;;  %v1082_v46 = vpop.f32.mrf.mxu0  ;;  %4693 = vpow2.f32 %v2603_v53 }
 0x2e3   : > { %v1572_v60 = vpop.f32.mrf.mxu2  ;;  %v5788_v62 = vpack.c.b16 %v1924_v54, %v1923_v0 }
 0x2e4   : > { %v2199_v63 = vmul.f32 0.088388346, %v1572_v60 }
 0x2e5   : > { %v2414_v36 = vpop.xlane.xlu1 %2413  ;;  %6740 = vst [vmem:[#allocation59_spill] sm:$0xff] %v5788_v62 }
 0x2e6   : > { %v2534_v12 = vsub.f32 %v5603_v5, %v2414_v36  ;;  %v5786_v4 = vadd.f32 %v5689_v30, %v2199_v63 }
 0x2e8   : > { %v2605_v7 = vmul.f32 1.442695, %v2534_v12  ;;  %1675 = vmatmul.bf16.gmra.mxu3 %v4374_v32  ;;  %v5799_v54 = vpop.eup %4693  ;;  %v4383_v32 = vld [vmem:[%s5297_s5 + $0xa0] sm:$0xff] }
 0x2e9   : > { %1961 = vmatpush.bf16.xpose.msra.mxu3 %v5774_v59  ;;  %2423 = vmax.xlane.f32.xlu1 %v5782_v38  ;;  %v1245_v10 = vpop.f32.mrf.mxu3 }
 0x2ea   : > { %2425 = vmax.xlane.f32.xlu2 %v5786_v4  ;;  %4695 = vpow2.f32 %v2605_v7  ;;  %v1085_v14 = vpop.f32.mrf.mxu0 }
 0x2eb   : > { %v1575_v5 = vpop.f32.mrf.mxu2  ;;  %v1312_v25 = vpack.c.bf16 %v1085_v14, %v1085_v14  ;;  %v1311_v14 = vpack.c.bf16 %v1082_v46, %v1082_v46 }
 0x2ec   : > { %v2200_v63 = vmul.f32 0.088388346, %v1575_v5 }
 0x2ed   : > { %v1735_v12 = vunpack.c.l.b16 %v1312_v25 }
 0x2ee   : > { %v5797_v36 = vadd.f32 %v5689_v30, %v2200_v63  ;;  %v1310_v63 = vpack.c.bf16 %v5761_v13, %v5761_v13  ;;  %v1308_v13 = vpack.c.bf16 %v5725_v56, %v5725_v56  ;;  %v1374_v56 = vpack.c.bf16 %v5764_v44, %v5764_v44 }
 0x2ef   : > { %v1373_v44 = vpack.c.bf16 %v5748_v2, %v5748_v2  ;;  %v1371_v2 = vpack.c.bf16 %v5704_v41, %v5704_v41  ;;  %v1369_v41 = vpack.c.bf16 %v5658_v33, %v5658_v33  ;;  %v1361_v33 = vpack.c.bf16 %v5590_v18, %v5590_v18 }
 0x2f0   : > { %v5802_v53 = vpop.eup %4695  ;;  %v1358_v18 = vpack.c.bf16 %v5544_v45, %v5544_v45 }
 0x2f1   : > { %1962 = vmatpush.bf16.xpose.msra.mxu3 %v5788_v62  ;;  %2733 = vadd.xlane.f32.xlu0 %v5802_v53  ;;  %v1247_v25 = vpop.f32.mrf.mxu3  ;;  %v1731_v62 = vunpack.c.l.b16 %v1308_v13  ;;  %v2134_v13 = vunpack.c.l.b16 %v1371_v2  ;;  %v6741_v2 = vld [vmem:[#allocation39_spill] sm:$0xff] }
 0x2f2   : > { %2731 = vadd.xlane.f32.xlu2 %v5799_v54  ;;  %2427 = vmax.xlane.f32.xlu1 %v5797_v36 }
 0x2f3   : > { %v1577_v60 = vpop.f32.mrf.mxu2 }
 0x2f4   : > { %v2201_v0 = vmul.f32 0.088388346, %v1577_v60  ;;  %v1376_v60 = vpack.c.bf16 %v1245_v10, %v1245_v10 }
 0x2f8   : > { %1963 = vmatmul.bf16.vlgmr.msra.gmra.mxu3 %v4383_v32 }
 0x2f9   : > { %3063 = vmatpush.bf16.msrb.mxu3 %v5349_v15  ;;  %v1087_v15 = vpop.f32.mrf.mxu0 }
 0x2fa   : > { %v1313_v40 = vpack.c.bf16 %v1087_v15, %v1087_v15  ;;  %v1734_v15 = vunpack.c.l.b16 %v1311_v14 }
 0x2fc   : > { %v1736_v7 = vunpack.c.l.b16 %v1313_v40  ;;  %v1733_v40 = vunpack.c.l.b16 %v1310_v63  ;;  %v4384_v63 = vld [vmem:[%s5297_s5 + $0xa8] sm:$0xff] }
 0x2fd   : > { %3064 = vmatpush.bf16.msrb.mxu3 %v5353_v22  ;;  %v5810_v22 = vadd.f32 %v5689_v30, %v2201_v0  ;;  %v1309_v30 = vpack.c.bf16 %v5744_v55, %v5744_v55 }
 0x2fe   : > { %v1744_v5 = vpack.c.b16 %v1736_v7, %v1735_v12  ;;  %v1743_v46 = vpack.c.b16 %v1734_v15, %v1733_v40  ;;  %v2139_v7 = vunpack.c.l.b16 %v1376_v60  ;;  %v4379_v40 = vld [vmem:[%s5297_s5 + $0x80] sm:$0xff]  ;;  %v2136_v60 = vunpack.c.l.b16 %v1373_v44 }
 0x2ff   : > { %2429 = vmax.xlane.f32.xlu2 %v5810_v22  ;;  %v1732_v12 = vunpack.c.l.b16 %v1309_v30 }
 0x300   : > { %1753 = vmatpush.bf16.xpose.msra.mxu1 %v1744_v5 }
 0x301   : > { %3065 = vmatpush.bf16.msrb.mxu3 %v5358_v35  ;;  %v1090_v35 = vpop.f32.mrf.mxu0  ;;  %v1742_v15 = vpack.c.b16 %v1732_v12, %v1731_v62  ;;  %v2132_v12 = vunpack.c.l.b16 %v1369_v41 }
 0x302   : > { %v1314_v0 = vpack.c.bf16 %v1090_v35, %v1090_v35  ;;  %v1375_v35 = vpack.c.bf16 %v5790_v16, %v5790_v16 }
 0x304   : > { %v1822_v55 = vunpack.c.l.b16 %v1314_v0  ;;  %v2138_v62 = vunpack.c.l.b16 %v1375_v35 }
 0x305   : > { %3066 = vmatpush.bf16.msrb.mxu3 %v5338_v58  ;;  %v1377_v58 = vpack.c.bf16 %v1247_v25, %v1247_v25 }
 0x307   : > { %v2140_v14 = vunpack.c.l.b16 %v1377_v58 }
 0x308   : > { %1754 = vmatpush.bf16.xpose.msra.mxu1 %v1743_v46  ;;  %1968 = vmatmul.bf16.gmra.mxu3 %v4384_v63 }
 0x309   : > { %3067 = vmatpush.bf16.msrb.mxu3 %v5333_v48  ;;  %v1092_v32 = vpop.f32.mrf.mxu0  ;;  %v5826_v25 = vpack.c.b16 %v2140_v14, %v2139_v7  ;;  %v1366_v7 = vpack.c.bf16 %v5634_v57, %v5634_v57  ;;  %v1359_v57 = vpack.c.bf16 %v5561_v20, %v5561_v20  ;;  %v2036_v20 = vunpack.c.l.b16 %v1358_v18 }
 0x30a   : > { %v1315_v48 = vpack.c.bf16 %v1092_v32, %v1092_v32 }
 0x30c   : > { %v1823_v10 = vunpack.c.l.b16 %v1315_v48 }
 0x30d   : > { %3068 = vmatpush.bf16.msrb.mxu3 %v5329_v39 }
 0x30e   : > { %v5824_v39 = vpack.c.b16 %v1823_v10, %v1822_v55  ;;  %v2039_v55 = vunpack.c.l.b16 %v1361_v33 }
 0x310   : > { %1755 = vmatpush.bf16.xpose.msra.mxu1 %v1742_v15  ;;  %1861 = vmatpush.bf16.xpose.msra.mxu2 %v5824_v39 }
 0x311   : > { %3069 = vmatpush.bf16.msrb.mxu3 %v5326_v31  ;;  %v2137_v31 = vunpack.c.l.b16 %v1374_v56  ;;  %v1365_v56 = vpack.c.bf16 %v5625_v28, %v5625_v28  ;;  %v4375_v28 = vld [vmem:[%s5297_s5 + $0x60] sm:$0xff] }
 0x313   : > { %v5840_v16 = vpack.c.b16 %v2138_v62, %v2137_v31  ;;  %v2037_v31 = vunpack.c.l.b16 %v1359_v57  ;;  %v2128_v44 = vunpack.c.l.b16 %v1365_v56  ;;  %v6743_v57 = vld [vmem:[#allocation29_spill] sm:$0xff] }
 0x315   : > { %3070 = vmatpush.bf16.msrb.mxu3 %v5323_v23  ;;  %v1372_v23 = vpack.c.bf16 %v5728_v34, %v5728_v34  ;;  %v1370_v34 = vpack.c.bf16 %v5673_v27, %v5673_v27  ;;  %v1368_v27 = vpack.c.bf16 %v5647_v11, %v5647_v11  ;;  %v1360_v11 = vpack.c.bf16 %v5579_v8, %v5579_v8 }
 0x316   : > { %v2129_v8 = vunpack.c.l.b16 %v1366_v7 }
 0x317   : > { %1862 = vmatmul.bf16.vlgmr.msra.gmra.mxu2 %v4379_v40  ;;  %v2135_v30 = vunpack.c.l.b16 %v1372_v23  ;;  %v2133_v58 = vunpack.c.l.b16 %v1370_v34  ;;  %v2131_v32 = vunpack.c.l.b16 %v1368_v27  ;;  %v2038_v63 = vunpack.c.l.b16 %v1360_v11 }
 0x318   : > { %2157 = vmatpush.bf16.xpose.msrb.mxu2 %v5826_v25  ;;  %1756 = vmatpush.bf16.xpose.msra.mxu1 %v5713_v6 }
 0x319   : > { %3222 = vmatpush.bf16.msra.mxu3 %v1744_v5  ;;  %v4385_v5 = vld [vmem:[%s5297_s5 + $0xb0] sm:$0xff]  ;;  %v5862_v0 = vpack.c.b16 %v2134_v13, %v2133_v58  ;;  %v5876_v48 = vpack.c.b16 %v2132_v12, %v2131_v32  ;;  %v1363_v58 = vpack.c.bf16 %v6741_v2, %v6741_v2  ;;  %v2046_v13 = vpack.c.b16 %v2037_v31, %v2036_v20 }
 0x31a   : > { %1973 = vmatmul.bf16.gmra.mxu3 %v4385_v5  ;;  %v2268_v5 = vstv %s4285_s15  ;;  %v6745_v2 = vld [vmem:[#allocation42_spill] sm:$0xff] }
 0x31b   : > { %vm2269_vm2 = vcmp.ge.s32.totalorder %v5477_v47, %v2268_v5 }
 0x31c   : > { %v5912_v27 = vsel %vm2269_vm2, -1e+09, %v6732_v24 }
 0x31d   : > { %3223 = vmatpush.bf16.msra.mxu3 %v1743_v46  ;;  %v5851_v46 = vpack.c.b16 %v2136_v60, %v2135_v30  ;;  %v1357_v60 = vpack.c.bf16 %v5522_v29, %v5522_v29 }
 0x31f   : > { %v2035_v33 = vunpack.c.l.b16 %v1357_v60 }
 0x320   : > { %2158 = vmatpush.bf16.xpose.msrb.mxu2 %v5840_v16  ;;  %1757 = vmatpush.bf16.xpose.msra.mxu1 %v5677_v21 }
 0x321   : > { %3224 = vmatpush.bf16.msra.mxu3 %v1742_v15  ;;  %v4381_v15 = vld [vmem:[%s5297_s5 + $0x90] sm:$0xff] }
 0x325   : > { %3225 = vmatpush.bf16.msra.mxu3 %v5713_v6  ;;  %v4380_v6 = vld [vmem:[%s5297_s5 + $0x88] sm:$0xff] }
 0x327   : > { %1867 = vmatmul.bf16.gmra.mxu2 %v4380_v6 }
 0x328   : > { %2159 = vmatpush.bf16.xpose.msrb.mxu2 %v5851_v46  ;;  %1758 = vmatpush.bf16.xpose.msra.mxu1 %v5649_v49 }
 0x329   : > { %3226 = vmatpush.bf16.msra.mxu3 %v5677_v21  ;;  %v4386_v21 = vld [vmem:[%s5297_s5 + $0xb8] sm:$0xff] }
 0x32a   : > { %1978 = vmatmul.bf16.gmra.mxu3 %v4386_v21 }
 0x32c   : > { %v2720_v14 = vpop.xlane.xlu2 %2719 }
 0x32d   : > { %3227 = vmatpush.bf16.msra.mxu3 %v5649_v49  ;;  %v1367_v49 = vpack.c.bf16 %v5641_v52, %v5641_v52  ;;  %4697 = vrcp.f32 %v2720_v14  ;;  %v5885_v52 = vpack.c.b16 %v2039_v55, %v2038_v63  ;;  %v4382_v14 = vld [vmem:[%s5297_s5 + $0x98] sm:$0xff] }
 0x32f   : > { %v2130_v10 = vunpack.c.l.b16 %v1367_v49  ;;  %v2126_v49 = vunpack.c.l.b16 %v1363_v58  ;;  %v6746_v58 = vld [vmem:[#allocation53_spill] sm:$0xff] }
 0x330   : > { %2160 = vmatpush.bf16.xpose.msrb.mxu2 %v5862_v0  ;;  %1759 = vmatpush.bf16.xpose.msra.mxu1 %v5639_v1 }
 0x331   : > { %3228 = vmatpush.bf16.msra.mxu3 %v5639_v1  ;;  %v1364_v1 = vpack.c.bf16 %v5614_v37, %v5614_v37  ;;  %v5891_v35 = vpack.c.b16 %v2130_v10, %v2129_v8 }
 0x333   : > { %v2416_v45 = vpop.xlane.xlu1 %2415  ;;  %v4698_v37 = vpop.eup %4697  ;;  %v2127_v23 = vunpack.c.l.b16 %v1364_v1  ;;  %v1355_v1 = vpack.c.bf16 %v6743_v57, %v6743_v57 }
 0x334   : > { %v2535_v62 = vsub.f32 %v5693_v43, %v2416_v45  ;;  %v2722_v40 = vpop.xlane.xlu0 %2721  ;;  %v2911_v34 = vmul.f32 %v4698_v37, %v5679_v17  ;;  %v1362_v43 = vpack.c.bf16 %v5598_v3, %v5598_v3 }
 0x335   : > { %3229 = vmatpush.bf16.msra.mxu3 %v5627_v19  ;;  %4699 = vrcp.f32 %v2722_v40  ;;  %v5908_v6 = vpack.c.b16 %v2128_v44, %v2127_v23  ;;  %v6744_v40 = vld [vmem:[#allocation40_spill] sm:$0xff]  ;;  %v2033_v5 = vunpack.c.l.b16 %v1355_v1  ;;  %v6752_v1 = vld [vmem:[#allocation46_spill] sm:$0xff] }
 0x336   : > { %v2607_v30 = vmul.f32 1.442695, %v2535_v62  ;;  %v2975_v41 = vpack.c.bf16 %v2911_v34, %v2911_v34  ;;  %v2125_v7 = vunpack.c.l.b16 %v1362_v43 }
 0x337   : > { %1872 = vmatmul.bf16.gmra.mxu2 %v4381_v15 }
 0x338   : > { %2161 = vmatpush.bf16.xpose.msrb.mxu2 %v5876_v48  ;;  %1760 = vmatpush.bf16.xpose.msra.mxu1 %v5627_v19  ;;  %v1356_v19 = vpack.c.bf16 %v5509_v42, %v5509_v42  ;;  %4701 = vpow2.f32 %v2607_v30  ;;  %v5928_v45 = vpack.c.b16 %v2126_v49, %v2125_v7 }
 0x33a   : > { %v2034_v11 = vunpack.c.l.b16 %v1356_v19  ;;  %v4376_v19 = vld [vmem:[%s5297_s5 + $0x68] sm:$0xff] }
 0x33b   : > { %v4700_v42 = vpop.eup %4699  ;;  %v2418_v29 = vpop.xlane.xlu1 %2417 }
 0x33c   : > { %v1661_v17 = vpop.f32.mrf.mxu3  ;;  %v2912_v3 = vmul.f32 %v4700_v42, %v5695_v26  ;;  %v2536_v21 = vsub.f32 %v5711_v9, %v2418_v29  ;;  %v2724_v12 = vpop.xlane.xlu0 %2723  ;;  %v3047_v26 = vunpack.c.l.b16 %v2975_v41  ;;  %v6742_v9 = vld [vmem:[#allocation27_spill] sm:$0xff]  ;;  %v2045_v56 = vpack.c.b16 %v2035_v33, %v2034_v11  ;;  %v6747_v29 = vld [vmem:[#allocation48_spill] sm:$0xff] }
 0x33d   : > { %v2202_v32 = vmul.f32 0.088388346, %v1661_v17  ;;  %4703 = vrcp.f32 %v2724_v12  ;;  %v1354_v18 = vpack.c.bf16 %v6742_v9, %v6742_v9  ;;  %v6748_v17 = vld [vmem:[#allocation50_spill] sm:$0xff]  ;;  %v6749_v12 = vld [vmem:[#allocation44_spill] sm:$0xff]  ;;  %v6750_v33 = vld [vmem:[#allocation55_spill] sm:$0xff] }
 0x33e   : > { %v5917_v63 = vpop.eup %4701  ;;  %v2976_v55 = vpack.c.bf16 %v2912_v3, %v2912_v3  ;;  %v2609_v8 = vmul.f32 1.442695, %v2536_v21 }
 0x33f   : > { %1761 = vmatmul.bf16.vlgmr.msra.gmra.mxu1 %v4375_v28  ;;  %v5920_v10 = vadd.f32 %v5912_v27, %v2202_v32  ;;  %2735 = vadd.xlane.f32.xlu0 %v5917_v63  ;;  %v2032_v28 = vunpack.c.l.b16 %v1354_v18 }
 0x340   : > { %2056 = vmatpush.bf16.xpose.msrb.mxu1 %v5885_v52  ;;  %2162 = vmatpush.bf16.xpose.msrb.mxu2 %v5891_v35  ;;  %v3048_v15 = vunpack.c.l.b16 %v2976_v55  ;;  %4705 = vpow2.f32 %v2609_v8  ;;  %v6751_v8 = vld [vmem:[#allocation57_spill] sm:$0xff] }
 0x341   : > { %2431 = vmax.xlane.f32.xlu2 %v5920_v10  ;;  %v2044_v41 = vpack.c.b16 %v2033_v5, %v2032_v28  ;;  %v6755_v28 = vld [vmem:[#allocation43_spill] sm:$0xff] }
 0x342   : > { %v3055_v20 = vpack.c.b16 %v3048_v15, %v3047_v26  ;;  %v4391_v15 = vld [vmem:[%s5297_s5 + $0xe0] sm:$0xff]  ;;  %v1348_v5 = vpack.c.bf16 %v6755_v28, %v6755_v28 }
 0x343   : > { %v4704_v44 = vpop.eup %4703 }
 0x344   : > { %v1663_v31 = vpop.f32.mrf.mxu3  ;;  %v2726_v37 = vpop.xlane.xlu1 %2725  ;;  %3071 = vmatmul.bf16.vlgmr.msrb.gmra.mxu3 %v3055_v20  ;;  %v2913_v42 = vmul.f32 %v4704_v44, %v6746_v58  ;;  %v1350_v20 = vpack.c.bf16 %v6752_v1, %v6752_v1  ;;  %v6761_v1 = vld [vmem:[#allocation25_spill] sm:$0xff] }
 0x345   : > { %v2203_v62 = vmul.f32 0.088388346, %v1663_v31  ;;  %v2420_v23 = vpop.xlane.xlu0 %2419  ;;  %4707 = vrcp.f32 %v2726_v37  ;;  %3381 = vmatpush.bf16.msrb.mxu3 %v5885_v52  ;;  %v1353_v52 = vpack.c.bf16 %v6748_v17, %v6748_v17  ;;  %v6753_v31 = vld [vmem:[#allocation47_spill] sm:$0xff] }
 0x346   : > { %v2537_v30 = vsub.f32 %v5731_v51, %v2420_v23  ;;  %v5935_v60 = vpop.eup %4705  ;;  %v1352_v51 = vpack.c.bf16 %v6747_v29, %v6747_v29  ;;  %v2977_v49 = vpack.c.bf16 %v2913_v42, %v2913_v42  ;;  %v6757_v29 = vld [vmem:[#allocation30_spill] sm:$0xff] }
 0x347   : > { %1877 = vmatmul.bf16.gmra.mxu2 %v4382_v14  ;;  %v5938_v34 = vadd.f32 %v5912_v27, %v2203_v62  ;;  %2737 = vadd.xlane.f32.xlu1 %v5935_v60  ;;  %v2031_v55 = vunpack.c.l.b16 %v1353_v52  ;;  %v1351_v62 = vpack.c.bf16 %v6753_v31, %v6753_v31  ;;  %v4377_v52 = vld [vmem:[%s5297_s5 + $0x70] sm:$0xff] }
 0x348   : > { %2057 = vmatpush.bf16.xpose.msrb.mxu1 %v2046_v13  ;;  %2163 = vmatpush.bf16.xpose.msrb.mxu2 %v5908_v6  ;;  %v2611_v43 = vmul.f32 1.442695, %v2537_v30  ;;  %v2030_v14 = vunpack.c.l.b16 %v1352_v51  ;;  %v3049_v37 = vunpack.c.l.b16 %v2977_v49  ;;  %v6760_v49 = vld [vmem:[#allocation26_spill] sm:$0xff] }
 0x349   : > { %2433 = vmax.xlane.f32.xlu0 %v5938_v34  ;;  %3382 = vmatpush.bf16.msrb.mxu3 %v2046_v13  ;;  %v2029_v58 = vunpack.c.l.b16 %v1351_v62 }
 0x34a   : > { %4709 = vpow2.f32 %v2611_v43  ;;  %v2043_v23 = vpack.c.b16 %v2031_v55, %v2030_v14 }
 0x34b   : > { %v4708_v3 = vpop.eup %4707 }
 0x34c   : > { %v1666_v21 = vpop.f32.mrf.mxu3  ;;  %v2422_v11 = vpop.xlane.xlu1 %2421  ;;  %v2914_v7 = vmul.f32 %v4708_v3, %v6750_v33  ;;  %v2026_v33 = vunpack.c.l.b16 %v1348_v5 }
 0x34d   : > { %v2204_v32 = vmul.f32 0.088388346, %v1666_v21  ;;  %v2538_v26 = vsub.f32 %v6751_v8, %v2422_v11  ;;  %3383 = vmatpush.bf16.msrb.mxu3 %v2045_v56  ;;  %v6758_v21 = vld [vmem:[#allocation38_spill] sm:$0xff] }
 0x34e   : > { %v2978_v13 = vpack.c.bf16 %v2914_v7, %v2914_v7 }
 0x34f   : > { %1766 = vmatmul.bf16.gmra.mxu1 %v4376_v19  ;;  %v5953_v9 = vadd.f32 %v5912_v27, %v2204_v32  ;;  %v2613_v57 = vmul.f32 1.442695, %v2538_v26  ;;  %v6756_v19 = vld [vmem:[#allocation45_spill] sm:$0xff]  ;;  %v1346_v32 = vpack.c.bf16 %v6758_v21, %v6758_v21 }
 0x350   : > { %2058 = vmatpush.bf16.xpose.msrb.mxu1 %v2045_v56  ;;  %2164 = vmatpush.bf16.xpose.msrb.mxu2 %v5928_v45  ;;  %v5955_v18 = vpop.eup %4709  ;;  %v3050_v56 = vunpack.c.l.b16 %v2978_v13  ;;  %v1349_v43 = vpack.c.bf16 %v6756_v19, %v6756_v19 }
 0x351   : > { %2739 = vadd.xlane.f32.xlu1 %v5955_v18  ;;  %4711 = vpow2.f32 %v2613_v57  ;;  %2435 = vmax.xlane.f32.xlu0 %v5953_v9  ;;  %v2024_v8 = vunpack.c.l.b16 %v1346_v32  ;;  %v6764_v32 = vld [vmem:[#allocation51_spill] sm:$0xff] }
 0x352   : > { %3384 = vmatpush.bf16.msrb.mxu3 %v2044_v41  ;;  %v3056_v44 = vpack.c.b16 %v3050_v56, %v3049_v37  ;;  %v2027_v7 = vunpack.c.l.b16 %v1349_v43 }
 0x354   : > { %v1668_v30 = vpop.f32.mrf.mxu3  ;;  %v2728_v17 = vpop.xlane.xlu1 %2727  ;;  %3076 = vmatmul.bf16.gmra.mxu3 %v3056_v44  ;;  %v2041_v62 = vpack.c.b16 %v2027_v7, %v2026_v33 }
 0x355   : > { %v2205_v42 = vmul.f32 0.088388346, %v1668_v30  ;;  %v2730_v51 = vpop.xlane.xlu2 %2729 }
 0x356   : > { %4713 = vrcp.f32 %v2730_v51  ;;  %3385 = vmatpush.bf16.msrb.mxu3 %v2043_v23 }
 0x357   : > { %2165 = vmatmul.bf16.vlgmr.msrb.gmra.mxu2 %v4391_v15  ;;  %4715 = vrcp.f32 %v2728_v17  ;;  %v5973_v3 = vpop.eup %4711 }
 0x358   : > { %3169 = vmatpush.bf16.msra.mxu2 %v6744_v40  ;;  %2059 = vmatpush.bf16.xpose.msrb.mxu1 %v2044_v41  ;;  %v6754_v40 = vld [vmem:[#allocation33_spill] sm:$0xff]  ;;  %v5971_v41 = vadd.f32 %v5912_v27, %v2205_v42 }
 0x359   : > { %2741 = vadd.xlane.f32.xlu2 %v5973_v3 }
 0x35a   : > { %2437 = vmax.xlane.f32.xlu1 %v5971_v41 }
 0x35c   : > { %3170 = vmatpush.bf16.msra.mxu2 %v6745_v2  ;;  %v2028_v2 = vunpack.c.l.b16 %v1350_v20  ;;  %v4714_v55 = vpop.eup %4713  ;;  %v1671_v26 = vpop.f32.mrf.mxu3 }
 0x35d   : > { %v4716_v15 = vpop.eup %4715  ;;  %v2206_v57 = vmul.f32 0.088388346, %v1671_v26  ;;  %v2424_v20 = vpop.xlane.xlu1 %2423 }
 0x35e   : > { %v2042_v14 = vpack.c.b16 %v2029_v58, %v2028_v2  ;;  %v2426_v31 = vpop.xlane.xlu2 %2425  ;;  %v2539_v37 = vsub.f32 %v5782_v38, %v2424_v20  ;;  %v2915_v44 = vmul.f32 %v4716_v15, %v5766_v50  ;;  %v6762_v2 = vld [vmem:[#allocation24_spill] sm:$0xff]  ;;  %v6763_v50 = vld [vmem:[#allocation49_spill] sm:$0xff] }
 0x35f   : > { %1771 = vmatmul.bf16.gmra.mxu1 %v4377_v52  ;;  %v2540_v56 = vsub.f32 %v5786_v4, %v2426_v31  ;;  %v5989_v5 = vadd.f32 %v5912_v27, %v2206_v57  ;;  %v4378_v52 = vld [vmem:[%s5297_s5 + $0x78] sm:$0xff] }
 0x360   : > { %3171 = vmatpush.bf16.msra.mxu2 %v6749_v12  ;;  %2060 = vmatpush.bf16.xpose.msrb.mxu1 %v2043_v23  ;;  %v6759_v12 = vld [vmem:[#allocation41_spill] sm:$0xff]  ;;  %v2615_v30 = vmul.f32 1.442695, %v2539_v37  ;;  %v2979_v43 = vpack.c.bf16 %v2915_v44, %v2915_v44 }
 0x361   : > { %v1347_v11 = vpack.c.bf16 %v6759_v12, %v6759_v12  ;;  %3386 = vmatpush.bf16.msrb.mxu3 %v2042_v14  ;;  %v4392_v23 = vld [vmem:[%s5297_s5 + $0xe8] sm:$0xff]  ;;  %v2617_v19 = vmul.f32 1.442695, %v2540_v56  ;;  %v6768_v56 = vld [vmem:[#allocation22_spill] sm:$0xff] }
 0x362   : > { %4717 = vpow2.f32 %v2615_v30  ;;  %2439 = vmax.xlane.f32.xlu1 %v5989_v5 }
 0x363   : > { %v2025_v13 = vunpack.c.l.b16 %v1347_v11  ;;  %4719 = vpow2.f32 %v2617_v19  ;;  %v6770_v19 = vld [vmem:[#allocation23_spill] sm:$0xff] }
 0x364   : > { %3172 = vmatpush.bf16.msra.mxu2 %v6754_v40  ;;  %v2916_v40 = vmul.f32 %v4714_v55, %v5768_v61  ;;  %v3051_v61 = vunpack.c.l.b16 %v2979_v43  ;;  %v1673_v38 = vpop.f32.mrf.mxu3  ;;  %v4387_v43 = vld [vmem:[%s5297_s5 + $0xc0] sm:$0xff] }
 0x365   : > { %3387 = vmatpush.bf16.msrb.mxu3 %v2041_v62  ;;  %v2040_v58 = vpack.c.b16 %v2025_v13, %v2024_v8  ;;  %v2428_v17 = vpop.xlane.xlu1 %2427  ;;  %v2207_v7 = vmul.f32 0.088388346, %v1673_v38  ;;  %v6766_v8 = vld [vmem:[#allocation21_spill] sm:$0xff]  ;;  %v6772_v38 = vld [vmem:[#allocation20_spill] sm:$0xff] }
 0x366   : > { %v2980_v28 = vpack.c.bf16 %v2916_v40, %v2916_v40  ;;  %v2732_v51 = vpop.xlane.xlu2 %2731  ;;  %v2541_v21 = vsub.f32 %v5797_v36, %v2428_v17  ;;  %v6774_v17 = vld [vmem:[#allocation59_spill] sm:$0xff] }
 0x367   : > { %2170 = vmatmul.bf16.gmra.mxu2 %v4392_v23  ;;  %v6010_v20 = vadd.f32 %v5912_v27, %v2207_v7  ;;  %v6769_v23 = vld [vmem:[#allocation56_spill] sm:$0xff]  ;;  %v4388_v7 = vld [vmem:[%s5297_s5 + $0xc8] sm:$0xff] }
 0x368   : > { %3173 = vmatpush.bf16.msra.mxu2 %v6757_v29  ;;  %2061 = vmatpush.bf16.xpose.msrb.mxu1 %v2042_v14  ;;  %v3052_v42 = vunpack.c.l.b16 %v2980_v28  ;;  %v2734_v29 = vpop.xlane.xlu0 %2733  ;;  %v5997_v12 = vpop.eup %4717  ;;  %v2619_v33 = vmul.f32 1.442695, %v2541_v21  ;;  %v6775_v21 = vld [vmem:[#allocation18_spill] sm:$0xff] }
 0x369   : > { %3388 = vmatpush.bf16.msrb.mxu3 %v2040_v58  ;;  %4721 = vrcp.f32 %v2734_v29  ;;  %v5999_v11 = vpop.eup %4719  ;;  %2743 = vadd.xlane.f32.xlu2 %v5997_v12 }
 0x36a   : > { %v3057_v4 = vpack.c.b16 %v3052_v42, %v3051_v61  ;;  %4723 = vrcp.f32 %v2732_v51  ;;  %2745 = vadd.xlane.f32.xlu0 %v5999_v11  ;;  %v6771_v42 = vld [vmem:[#allocation58_spill] sm:$0xff]  ;;  %v6773_v51 = vld [vmem:[#allocation19_spill] sm:$0xff] }
 0x36b   : > { %4725 = vpow2.f32 %v2619_v33  ;;  %v6776_v33 = vld [vmem:[#allocation17_spill] sm:$0xff] }
 0x36c   : > { %3174 = vmatpush.bf16.msra.mxu2 %v6760_v49  ;;  %3081 = vmatmul.bf16.gmra.mxu3 %v3057_v4  ;;  %v6765_v49 = vld [vmem:[#allocation52_spill] sm:$0xff]  ;;  %v1676_v55 = vpop.f32.mrf.mxu3 }
 0x36f   : > { %1776 = vmatmul.bf16.gmra.mxu1 %v4378_v52  ;;  %v4722_v14 = vpop.eup %4721 }
 0x370   : > { %3175 = vmatpush.bf16.msra.mxu2 %v6761_v1  ;;  %2062 = vmatpush.bf16.xpose.msrb.mxu1 %v2041_v62  ;;  %v4724_v36 = vpop.eup %4723  ;;  %v2918_v15 = vmul.f32 %v4722_v14, %v5802_v53  ;;  %v6767_v1 = vld [vmem:[#allocation54_spill] sm:$0xff]  ;;  %v6777_v14 = vld [vmem:[#allocation16_spill] sm:$0xff] }
 0x371   : > { %v2917_v57 = vmul.f32 %v4724_v36, %v5799_v54  ;;  %v6012_v37 = vpop.eup %4725  ;;  %2441 = vmax.xlane.f32.xlu2 %v6010_v20 }
 0x372   : > { %v2430_v26 = vpop.xlane.xlu2 %2429  ;;  %v2982_v31 = vpack.c.bf16 %v2918_v15, %v2918_v15  ;;  %2747 = vadd.xlane.f32.xlu0 %v6012_v37 }
 0x373   : > { %v2542_v13 = vsub.f32 %v5810_v22, %v2430_v26  ;;  %v2981_v40 = vpack.c.bf16 %v2917_v57, %v2917_v57  ;;  %v2208_v22 = vmul.f32 0.088388346, %v1676_v55  ;;  %v6778_v55 = vld [vmem:[#allocation28_spill] sm:$0xff]  ;;  %v6779_v26 = vld [vmem:[#allocation31_spill] sm:$0xff] }
 0x374   : > { %3176 = vmatpush.bf16.msra.mxu2 %v6762_v2  ;;  %v3054_v53 = vunpack.c.l.b16 %v2982_v31  ;;  %v1678_v44 = vpop.f32.mrf.mxu3  ;;  %v6780_v57 = vld [vmem:[#allocation32_spill] sm:$0xff] }
 0x375   : > { %v2621_v62 = vmul.f32 1.442695, %v2542_v13  ;;  %v3053_v54 = vunpack.c.l.b16 %v2981_v40  ;;  %v2209_v30 = vmul.f32 0.088388346, %v1678_v44  ;;  %v6021_v2 = vadd.f32 %v5912_v27, %v2208_v22  ;;  %v6781_v22 = vld [vmem:[#allocation34_spill] sm:$0xff] }
 0x376   : > { %v2287_v13 = vstv %s4287_s17  ;;  %v4393_v44 = vld [vmem:[%s5297_s5 + $0xf0] sm:$0xff] }
 0x377   : > { %4727 = vpow2.f32 %v2621_v62  ;;  %v3058_v28 = vpack.c.b16 %v3054_v53, %v3053_v54  ;;  %v6025_v61 = vadd.f32 %v5912_v27, %v2209_v30  ;;  %vm2288_vm4 = vcmp.ge.s32.totalorder %v5477_v47, %v2287_v13  ;;  %v4389_v53 = vld [vmem:[%s5297_s5 + $0xd0] sm:$0xff]  ;;  %2175 = vmatmul.bf16.gmra.mxu2 %v4393_v44 }
 0x378   : > { %3328 = vmatpush.bf16.msrb.mxu2 %v6763_v50  ;;  %2063 = vmatpush.bf16.xpose.msrb.mxu1 %v2040_v58  ;;  %v2298_v58 = vstv %s4288_s7  ;;  %v6061_v40 = vsel %vm2288_vm4, -1e+09, %v6732_v24 }
 0x379   : > { %vm2299_vm3 = vcmp.ge.s32.totalorder %v5477_v47, %v2298_v58  ;;  %2443 = vmax.xlane.f32.xlu2 %v6021_v2 }
 0x37a   : > { %2445 = vmax.xlane.f32.xlu0 %v6025_v61  ;;  %v6036_v27 = vsel %vm2299_vm3, -1e+09, %v6732_v24 }
 0x37c   : > { %3329 = vmatpush.bf16.msrb.mxu2 %v6764_v32  ;;  %3086 = vmatmul.bf16.gmra.mxu3 %v3058_v28  ;;  %v1964_v4 = vpop.f32.mrf.mxu3  ;;  %v6782_v28 = vld [vmem:[#allocation35_spill] sm:$0xff] }
 0x37d   : > { %v6027_v50 = vpop.eup %4727  ;;  %v2226_v29 = vmul.f32 0.088388346, %v1964_v4 }
 0x37e   : > { %2749 = vadd.xlane.f32.xlu1 %v6027_v50 }
 0x37f   : > { %2064 = vmatmul.bf16.vlgmr.msrb.gmra.mxu1 %v4387_v43  ;;  %v6041_v52 = vadd.f32 %v6036_v27, %v2226_v29  ;;  %v6784_v29 = vld [vmem:[#allocation37_spill] sm:$0xff] }
 0x380   : > { %3330 = vmatpush.bf16.msrb.mxu2 %v6765_v49  ;;  %3116 = vmatpush.bf16.msra.mxu1 %v6766_v8 }
 0x381   : > { %2479 = vmax.xlane.f32.xlu2 %v6041_v52 }
 0x384   : > { %3331 = vmatpush.bf16.msrb.mxu2 %v6767_v1  ;;  %3117 = vmatpush.bf16.msra.mxu1 %v6768_v56  ;;  %v1966_v32 = vpop.f32.mrf.mxu3 }
 0x388   : > { %3332 = vmatpush.bf16.msrb.mxu2 %v6769_v23  ;;  %3118 = vmatpush.bf16.msra.mxu1 %v6770_v19 }
 0x38c   : > { %3333 = vmatpush.bf16.msrb.mxu2 %v6771_v42  ;;  %3119 = vmatpush.bf16.msra.mxu1 %v6772_v38  ;;  %v1969_v36 = vpop.f32.mrf.mxu3  ;;  %v6783_v42 = vld [vmem:[#allocation36_spill] sm:$0xff] }
 0x38d   : > { %v2228_v8 = vmul.f32 0.088388346, %v1969_v36 }
 0x38f   : > { %2069 = vmatmul.bf16.gmra.mxu1 %v4388_v7  ;;  %v6055_v15 = vadd.f32 %v6036_v27, %v2228_v8 }
 0x390   : > { %3334 = vmatpush.bf16.msrb.mxu2 %v5774_v59  ;;  %3120 = vmatpush.bf16.msra.mxu1 %v6773_v51  ;;  %v2227_v59 = vmul.f32 0.088388346, %v1966_v32 }
 0x391   : > { %2483 = vmax.xlane.f32.xlu2 %v6055_v15 }
 0x392   : > { %v6048_v49 = vadd.f32 %v6036_v27, %v2227_v59 }
 0x394   : > { %3335 = vmatpush.bf16.msrb.mxu2 %v6774_v17  ;;  %3121 = vmatpush.bf16.msra.mxu1 %v6775_v21  ;;  %v1971_v1 = vpop.f32.mrf.mxu3  ;;  %v4390_v21 = vld [vmem:[%s5297_s5 + $0xd8] sm:$0xff] }
 0x395   : > { %2481 = vmax.xlane.f32.xlu0 %v6048_v49  ;;  %v2229_v62 = vmul.f32 0.088388346, %v1971_v1  ;;  %v2277_v1 = vstv %s4286_s11 }
 0x396   : > { %vm2278_vm5 = vcmp.ge.s32.totalorder %v5477_v47, %v2277_v1 }
 0x397   : > { %v6066_v54 = vadd.f32 %v6036_v27, %v2229_v62 }
 0x398   : > { %3122 = vmatpush.bf16.msra.mxu1 %v6776_v33 }
 0x39a   : > { %v1863_v31 = vpop.f32.mrf.mxu2 }
 0x39b   : > { %v2218_v56 = vmul.f32 0.088388346, %v1863_v31 }
 0x39c   : > { %3123 = vmatpush.bf16.msra.mxu1 %v6777_v14 }
 0x39d   : > { %v6069_v23 = vadd.f32 %v6061_v40, %v2218_v56  ;;  %2485 = vmax.xlane.f32.xlu0 %v6066_v54  ;;  %v1974_v30 = vpop.f32.mrf.mxu3 }
 0x39e   : > { %v2230_v43 = vmul.f32 0.088388346, %v1974_v30 }
 0x39f   : > { %2074 = vmatmul.bf16.gmra.mxu1 %v4389_v53  ;;  %2463 = vmax.xlane.f32.xlu2 %v6069_v23 }
 0x3a0   : > { %3275 = vmatpush.bf16.msrb.mxu1 %v6778_v55  ;;  %v6077_v38 = vadd.f32 %v6036_v27, %v2230_v43 }
 0x3a2   : > { %v1865_v19 = vpop.f32.mrf.mxu2 }
 0x3a3   : > { %v2219_v58 = vmul.f32 0.088388346, %v1865_v19 }
 0x3a4   : > { %3276 = vmatpush.bf16.msrb.mxu1 %v6779_v26 }
 0x3a5   : > { %v6080_v4 = vadd.f32 %v6061_v40, %v2219_v58  ;;  %v1976_v32 = vpop.f32.mrf.mxu3 }
 0x3a6   : > { %v2231_v33 = vmul.f32 0.088388346, %v1976_v32 }
 0x3a7   : > { %2465 = vmax.xlane.f32.xlu0 %v6080_v4  ;;  %2487 = vmax.xlane.f32.xlu2 %v6077_v38 }
 0x3a8   : > { %3277 = vmatpush.bf16.msrb.mxu1 %v6780_v57  ;;  %v6092_v55 = vadd.f32 %v6036_v27, %v2231_v33 }
 0x3aa   : > { %v1868_v51 = vpop.f32.mrf.mxu2 }
 0x3ab   : > { %v2220_v17 = vmul.f32 0.088388346, %v1868_v51 }
 0x3ac   : > { %3278 = vmatpush.bf16.msrb.mxu1 %v6781_v22 }
 0x3ad   : > { %v6088_v59 = vadd.f32 %v6061_v40, %v2220_v17  ;;  %v6099_v26 = vpop.f32.mrf.mxu3 }
 0x3af   : > { %2467 = vmax.xlane.f32.xlu0 %v6088_v59  ;;  %2079 = vmatmul.bf16.gmra.mxu1 %v4390_v21 }
 0x3b0   : > { %3279 = vmatpush.bf16.msrb.mxu1 %v6782_v28  ;;  %v6108_v28 = vsel %vm2278_vm5, -1e+09, %v6732_v24 }
 0x3b2   : > { %v1870_v7 = vpop.f32.mrf.mxu2 }
 0x3b3   : > { %v2221_v14 = vmul.f32 0.088388346, %v1870_v7 }
 0x3b4   : > { %3280 = vmatpush.bf16.msrb.mxu1 %v6783_v42  ;;  %v2432_v8 = vpop.xlane.xlu2 %2431 }
 0x3b5   : > { %v6095_v36 = vadd.f32 %v6061_v40, %v2221_v14  ;;  %v2543_v13 = vsub.f32 %v5920_v10, %v2432_v8  ;;  %v6111_v42 = vpop.f32.mrf.mxu3 }
 0x3b7   : > { %2469 = vmax.xlane.f32.xlu1 %v6095_v36  ;;  %2489 = vmax.xlane.f32.xlu0 %v6092_v55  ;;  %v2623_v62 = vmul.f32 1.442695, %v2543_v13 }
 0x3b8   : > { %3281 = vmatpush.bf16.msrb.mxu1 %v6784_v29 }
 0x3ba   : > { %v1873_v57 = vpop.f32.mrf.mxu2  ;;  %v2738_v44 = vpop.xlane.xlu1 %2737 }
 0x3bb   : > { %v2222_v31 = vmul.f32 0.088388346, %v1873_v57 }
 0x3bc   : > { %3282 = vmatpush.bf16.msrb.mxu1 %v5824_v39  ;;  %v2736_v39 = vpop.xlane.xlu0 %2735  ;;  %v1762_v56 = vpop.f32.mrf.mxu1 }
 0x3bd   : > { %4729 = vrcp.f32 %v2736_v39  ;;  %v6103_v53 = vadd.f32 %v6061_v40, %v2222_v31  ;;  %v2210_v22 = vmul.f32 0.088388346, %v1762_v56 }
 0x3be   : > { %4731 = vpow2.f32 %v2623_v62 }
 0x3bf   : > { %2471 = vmax.xlane.f32.xlu1 %v6103_v53  ;;  %4733 = vrcp.f32 %v2738_v44  ;;  %v6114_v29 = vadd.f32 %v6108_v28, %v2210_v22 }
 0x3c2   : > { %v1875_v43 = vpop.f32.mrf.mxu2 }
 0x3c3   : > { %v4730_v10 = vpop.eup %4729  ;;  %v2223_v58 = vmul.f32 0.088388346, %v1875_v43 }
 0x3c4   : > { %v2434_v30 = vpop.xlane.xlu0 %2433  ;;  %v6116_v51 = vpop.eup %4731  ;;  %v2919_v17 = vmul.f32 %v4730_v10, %v5917_v63 }
 0x3c5   : > { %v2544_v19 = vsub.f32 %v5938_v34, %v2434_v30  ;;  %v1764_v32 = vpop.f32.mrf.mxu1  ;;  %2751 = vadd.xlane.f32.xlu0 %v6116_v51  ;;  %v6121_v33 = vadd.f32 %v6061_v40, %v2223_v58  ;;  %v4734_v34 = vpop.eup %4733 }
 0x3c6   : > { %v2983_v7 = vpack.c.bf16 %v2919_v17, %v2919_v17  ;;  %v2920_v14 = vmul.f32 %v4734_v34, %v5935_v60  ;;  %v2211_v39 = vmul.f32 0.088388346, %v1764_v32  ;;  %v2740_v8 = vpop.xlane.xlu1 %2739  ;;  %v4394_v60 = vld [vmem:[%s5297_s5 + $0xf8] sm:$0xff]  ;;  %v409_v17 = vld [vmem:[%s5297_s5] sm:$0xff]  }
 0x3c7   : > { %v2625_v21 = vmul.f32 1.442695, %v2544_v19  ;;  %2447 = vmax.xlane.f32.xlu1 %v6114_v29  ;;  %2473 = vmax.xlane.f32.xlu2 %v6121_v33  ;;  %v3072_v10 = vpop.f32.mrf.mxu3  ;;  %v3463_v32 = vunpack.c.l.bf16 %v409_v17 }
 0x3c8   : > { %v2984_v63 = vpack.c.bf16 %v2920_v14, %v2920_v14  ;;  %v3100_v62 = vunpack.c.l.b16 %v2983_v7  ;;  %v6130_v30 = vadd.f32 %v6108_v28, %v2211_v39  ;;  %2180 = vmatmul.bf16.gmra.mxu2 %v4394_v60  ;;  %v3464_v14 = vunpack.c.h.bf16 %v409_v17 }
 0x3c9   : > { %4735 = vpow2.f32 %v2625_v21 }
 0x3ca   : > { %v1878_v57 = vpop.f32.mrf.mxu2  ;;  %v3101_v56 = vunpack.c.l.b16 %v2984_v63  ;;  %4737 = vrcp.f32 %v2740_v8 }
 0x3cb   : > { %v2224_v43 = vmul.f32 0.088388346, %v1878_v57 }
 0x3cc   : > { %v2436_v13 = vpop.xlane.xlu0 %2435  ;;  %v3108_v19 = vpack.c.b16 %v3101_v56, %v3100_v62  ;;  %v3527_v56 = vadd.f32 %v3463_v32, %v3072_v10  ;;  %v2323_v10 = vstv %s6137_s26 }
 0x3cd   : > { %v2545_v1 = vsub.f32 %v5953_v9, %v2436_v13  ;;  %v1767_v22 = vpop.f32.mrf.mxu1  ;;  %v2742_v9 = vpop.xlane.xlu2 %2741  ;;  %v6144_v63 = vadd.f32 %v6061_v40, %v2224_v43  ;;  %vm2324_vm6 = vcmp.ge.s32.totalorder %v5477_v47, %v2323_v10 }
 0x3ce   : > { %v2212_v58 = vmul.f32 0.088388346, %v1767_v22  ;;  %3124 = vmatmul.bf16.vlgmr.msra.gmra.mxu1 %v3108_v19  ;;  %v2438_v7 = vpop.xlane.xlu1 %2437 }
 0x3cf   : > { %v6127_v31 = vpop.eup %4735  ;;  %v2627_v44 = vmul.f32 1.442695, %v2545_v1  ;;  %2449 = vmax.xlane.f32.xlu2 %v6130_v30  ;;  %3434 = vmatpush.bf16.msra.mxu1 %v5826_v25  ;;  %v2546_v39 = vsub.f32 %v5971_v41, %v2438_v7  ;;  %v3074_v1 = vpop.f32.mrf.mxu3 }
 0x3d0   : > { %2753 = vadd.xlane.f32.xlu1 %v6127_v31  ;;  %v4738_v21 = vpop.eup %4737  ;;  %v6141_v8 = vadd.f32 %v6108_v28, %v2212_v58  ;;  %v3528_v22 = vadd.f32 %v3464_v14, %v3074_v1  ;;  %v6177_v1 = vsel %vm2324_vm6, -1e+09, %v6732_v24 }
 0x3d1   : > { %4739 = vpow2.f32 %v2627_v44  ;;  %v2629_v25 = vmul.f32 1.442695, %v2546_v39  ;;  %v2921_v62 = vmul.f32 %v4738_v21, %v5955_v18 }
 0x3d2   : > { %4741 = vrcp.f32 %v2742_v9  ;;  %v1880_v34 = vpop.f32.mrf.mxu2  ;;  %v4407_v60 = vpack.c.bf16 %v3528_v22, %v3527_v56 }
 0x3d3   : > { %3435 = vmatpush.bf16.msra.mxu1 %v5840_v16  ;;  %4743 = vpow2.f32 %v2629_v25  ;;  %v2225_v19 = vmul.f32 0.088388346, %v1880_v34  ;;  %v2985_v43 = vpack.c.bf16 %v2921_v62, %v2921_v62 }
 0x3d4   : > { %4408 = vst [vmem:[%s6157_s8] sm:$0xff] %v4407_v60  }
 0x3d5   : > { %v1769_v13 = vpop.f32.mrf.mxu1  ;;  %v3102_v34 = vunpack.c.l.b16 %v2985_v43 }
 0x3d6   : > { %v2213_v44 = vmul.f32 0.088388346, %v1769_v13  ;;  %v2440_v21 = vpop.xlane.xlu1 %2439  ;;  %v411_v13 = vld [vmem:[%s5297_s5 + $0x8] sm:$0xff]  }
 0x3d7   : > { %v6146_v57 = vpop.eup %4739  ;;  %2451 = vmax.xlane.f32.xlu2 %v6141_v8  ;;  %3436 = vmatpush.bf16.msra.mxu1 %v5851_v46  ;;  %v3077_v46 = vpop.f32.mrf.mxu3  ;;  %v2547_v25 = vsub.f32 %v5989_v5, %v2440_v21  ;;  %v3465_v62 = vunpack.c.l.bf16 %v411_v13 }
 0x3d8   : > { %2755 = vadd.xlane.f32.xlu0 %v6146_v57  ;;  %2475 = vmax.xlane.f32.xlu1 %v6144_v63  ;;  %v4742_v41 = vpop.eup %4741  ;;  %v6162_v9 = vadd.f32 %v6108_v28, %v2213_v44 }
 0x3d9   : > { %v2922_v16 = vmul.f32 %v4742_v41, %v5973_v3  ;;  %v6164_v32 = vpop.eup %4743  ;;  %v6168_v3 = vadd.f32 %v6061_v40, %v2225_v19  ;;  %v3466_v41 = vunpack.c.h.bf16 %v411_v13  ;;  %v2631_v60 = vmul.f32 1.442695, %v2547_v25 }
 0x3da   : > { %v2166_v18 = vpop.f32.mrf.mxu2 }
 0x3db   : > { %v2986_v58 = vpack.c.bf16 %v2922_v16, %v2922_v16  ;;  %3437 = vmatpush.bf16.msra.mxu1 %v5862_v0  ;;  %v2242_v39 = vmul.f32 0.088388346, %v2166_v18  ;;  %v3529_v18 = vadd.f32 %v3465_v62, %v3077_v46 }
 0x3dc   : > { %v2744_v40 = vpop.xlane.xlu2 %2743 }
 0x3dd   : > { %v1772_v17 = vpop.f32.mrf.mxu1  ;;  %v3103_v7 = vunpack.c.l.b16 %v2986_v58  ;;  %4745 = vrcp.f32 %v2744_v40  ;;  %v2746_v56 = vpop.xlane.xlu0 %2745  ;;  %v6184_v5 = vadd.f32 %v6177_v1, %v2242_v39 }
 0x3de   : > { %v2214_v14 = vmul.f32 0.088388346, %v1772_v17  ;;  %4747 = vrcp.f32 %v2746_v56 }
 0x3df   : > { %2477 = vmax.xlane.f32.xlu2 %v6168_v3  ;;  %v3109_v0 = vpack.c.b16 %v3103_v7, %v3102_v34  ;;  %3438 = vmatpush.bf16.msra.mxu1 %v5876_v48  ;;  %v3079_v48 = vpop.f32.mrf.mxu3  ;;  %4749 = vpow2.f32 %v2631_v60 }
 0x3e0   : > { %2453 = vmax.xlane.f32.xlu0 %v6162_v9  ;;  %2757 = vadd.xlane.f32.xlu1 %v6164_v32  ;;  %v6181_v44 = vadd.f32 %v6108_v28, %v2214_v14  ;;  %v3530_v10 = vadd.f32 %v3466_v41, %v3079_v48 }
 0x3e1   : > { %3129 = vmatmul.bf16.gmra.mxu1 %v3109_v0 }
 0x3e2   : > { %v2168_v22 = vpop.f32.mrf.mxu2  ;;  %v4412_v17 = vpack.c.bf16 %v3530_v10, %v3529_v18 }
 0x3e3   : > { %v2243_v19 = vmul.f32 0.088388346, %v2168_v22  ;;  %3439 = vmatpush.bf16.msra.mxu1 %v5891_v35  ;;  %v4746_v58 = vpop.eup %4745 }
 0x3e4   : > { %v4748_v21 = vpop.eup %4747  ;;  %v2442_v35 = vpop.xlane.xlu2 %2441  ;;  %v2923_v7 = vmul.f32 %v4746_v58, %v5997_v12  ;;  %4564 = vst [vmem:[%s6157_s8 + $0x8] sm:$0xff] %v4412_v17  }
 0x3e5   : > { %v1774_v16 = vpop.f32.mrf.mxu1  ;;  %v6188_v43 = vadd.f32 %v6177_v1, %v2243_v19  ;;  %v2748_v14 = vpop.xlane.xlu0 %2747  ;;  %v2548_v39 = vsub.f32 %v6010_v20, %v2442_v35  ;;  %v2924_v13 = vmul.f32 %v4748_v21, %v5999_v11  ;;  %v413_v11 = vld [vmem:[%s5297_s5 + $0x10] sm:$0xff]  }
 0x3e6   : > { %v2215_v34 = vmul.f32 0.088388346, %v1774_v16  ;;  %v2987_v25 = vpack.c.bf16 %v2923_v7, %v2923_v7  ;;  %4751 = vrcp.f32 %v2748_v14  ;;  %v6198_v56 = vpop.eup %4749  ;;  %v3467_v48 = vunpack.c.l.bf16 %v413_v11 }
 0x3e7   : > { %2513 = vmax.xlane.f32.xlu2 %v6188_v43  ;;  %3440 = vmatpush.bf16.msra.mxu1 %v5908_v6  ;;  %v2633_v0 = vmul.f32 1.442695, %v2548_v39  ;;  %v2988_v62 = vpack.c.bf16 %v2924_v13, %v2924_v13  ;;  %v3468_v18 = vunpack.c.h.bf16 %v413_v11 }
 0x3e8   : > { %2455 = vmax.xlane.f32.xlu0 %v6181_v44  ;;  %2511 = vmax.xlane.f32.xlu1 %v6184_v5  ;;  %v6202_v6 = vadd.f32 %v6108_v28, %v2215_v34  ;;  %v3104_v12 = vunpack.c.l.b16 %v2987_v25 }
 0x3e9   : > { %4753 = vpow2.f32 %v2633_v0  ;;  %v3105_v20 = vunpack.c.l.b16 %v2988_v62 }
 0x3ea   : > { %v2171_v46 = vpop.f32.mrf.mxu2 }
 0x3eb   : > { %3441 = vmatpush.bf16.msra.mxu1 %v5928_v45  ;;  %v3110_v41 = vpack.c.b16 %v3105_v20, %v3104_v12  ;;  %v2244_v35 = vmul.f32 0.088388346, %v2171_v46 }
 0x3ec   : > { %v4752_v19 = vpop.eup %4751  ;;  %v6215_v13 = vpop.xlane.xlu2 %2443 }
 0x3ed   : > { %v1777_v40 = vpop.f32.mrf.mxu1  ;;  %v2925_v21 = vmul.f32 %v4752_v19, %v6012_v37  ;;  %v6220_v37 = vadd.f32 %v6177_v1, %v2244_v35  ;;  %v2310_v19 = vstv %s4289_s14 }
 0x3ee   : > { %vm2311_vm7 = vcmp.ge.s32.totalorder %v5477_v47, %v2310_v19 }
 0x3ef   : > { %v3082_v22 = vpop.f32.mrf.mxu3  ;;  %v6207_v10 = vpop.eup %4753  ;;  %v2989_v12 = vpack.c.bf16 %v2925_v21, %v2925_v21  ;;  %v6237_v35 = vsel %vm2311_vm7, -1e+09, %v6732_v24 }
 0x3f0   : > { %2759 = vadd.xlane.f32.xlu0 %v6198_v56  ;;  %2457 = vmax.xlane.f32.xlu1 %v6202_v6  ;;  %v3531_v7 = vadd.f32 %v3467_v48, %v3082_v22  ;;  %v415_v48 = vld [vmem:[%s5297_s5 + $0x18] sm:$0xff]  }
 0x3f1   : > { %v2750_v60 = vpop.xlane.xlu1 %2749  ;;  %3134 = vmatmul.bf16.gmra.mxu1 %v3110_v41  ;;  %v3106_v11 = vunpack.c.l.b16 %v2989_v12  ;;  %v3470_v21 = vunpack.c.h.bf16 %v415_v48 }
 0x3f2   : > { %4755 = vrcp.f32 %v2750_v60  ;;  %v2173_v16 = vpop.f32.mrf.mxu2 }
 0x3f3   : > { %v2245_v45 = vmul.f32 0.088388346, %v2173_v16  ;;  %v2216_v16 = vmul.f32 0.088388346, %v1777_v40 }
 0x3f5   : > { %v1779_v58 = vpop.f32.mrf.mxu1  ;;  %v6210_v17 = vadd.f32 %v6177_v1, %v2245_v45  ;;  %v6228_v45 = vpop.xlane.xlu0 %2445 }
 0x3f6   : > { %v2217_v14 = vmul.f32 0.088388346, %v1779_v58  ;;  %v3469_v58 = vunpack.c.l.bf16 %v415_v48 }
 0x3f7   : > { %v3084_v34 = vpop.f32.mrf.mxu3  ;;  %2517 = vmax.xlane.f32.xlu2 %v6210_v17 }
 0x3f8   : > { %v3532_v39 = vadd.f32 %v3468_v18, %v3084_v34  ;;  %2761 = vadd.xlane.f32.xlu1 %v6207_v10  ;;  %v4756_v25 = vpop.eup %4755  ;;  %v6223_v46 = vadd.f32 %v6108_v28, %v2217_v14  ;;  %v6230_v18 = vpop.xlane.xlu2 %2479  ;;  %v6234_v34 = vadd.f32 %v6108_v28, %v2216_v16 }
 0x3f9   : > { %v2926_v62 = vmul.f32 %v4756_v25, %v6027_v50 }
 0x3fa   : > { %v4417_v0 = vpack.c.bf16 %v3532_v39, %v3531_v7 }
 0x3fb   : > { %v2990_v22 = vpack.c.bf16 %v2926_v62, %v2926_v62 }
 0x3fc   : > { %4565 = vst [vmem:[%s6157_s8 + $0x10] sm:$0xff] %v4417_v0  }
 0x3fd   : > { %v2065_v20 = vpop.f32.mrf.mxu1  ;;  %v3107_v41 = vunpack.c.l.b16 %v2990_v22 }
 0x3fe   : > { %v2234_v39 = vmul.f32 0.088388346, %v2065_v20 }
 0x3ff   : > { %v3087_v60 = vpop.f32.mrf.mxu3  ;;  %2461 = vmax.xlane.f32.xlu2 %v6223_v46  ;;  %v3111_v50 = vpack.c.b16 %v3107_v41, %v3106_v11 }
 0x400   : > { %2515 = vmax.xlane.f32.xlu1 %v6220_v37  ;;  %v3533_v25 = vadd.f32 %v3469_v58, %v3087_v60  ;;  %v6250_v24 = vadd.f32 %v6237_v35, %v2234_v39 }
 0x401   : > { %3139 = vmatmul.bf16.gmra.mxu1 %v3111_v50 }
 0x404   : > { %v6245_v22 = vpop.xlane.xlu2 %2483 }
 0x405   : > { %v2067_v40 = vpop.f32.mrf.mxu1 }
 0x406   : > { %v2235_v7 = vmul.f32 0.088388346, %v2067_v40 }
 0x407   : > { %v3089_v14 = vpop.f32.mrf.mxu3 }
 0x408   : > { %v3534_v0 = vadd.f32 %v3470_v21, %v3089_v14  ;;  %2459 = vmax.xlane.f32.xlu1 %v6234_v34  ;;  %v6241_v47 = vadd.f32 %v6237_v35, %v2235_v7  ;;  %v6243_v12 = vpop.xlane.xlu0 %2481 }
 0x40a   : > { %v4422_v62 = vpack.c.bf16 %v3534_v0, %v3533_v25  ;;  %2497 = vmax.xlane.f32.xlu2 %v6241_v47 }
 0x40c   : > { %4566 = vst [vmem:[%s6157_s8 + $0x18] sm:$0xff] %v4422_v62  }
 0x40d   : > { %v2070_v28 = vpop.f32.mrf.mxu1 }
 0x40e   : > { %v2236_v20 = vmul.f32 0.088388346, %v2070_v28 }
 0x410   : > { %2495 = vmax.xlane.f32.xlu1 %v6250_v24  ;;  %v6253_v11 = vpop.xlane.xlu0 %2485  ;;  %v6257_v19 = vadd.f32 %v6237_v35, %v2236_v20 }
 0x412   : > { %v2464_v41 = vpop.xlane.xlu2 %2463 }
 0x413   : > { %v2559_v60 = vsub.f32 %v6069_v23, %v2464_v41 }
 0x415   : > { %v2072_v16 = vpop.f32.mrf.mxu1  ;;  %v2655_v50 = vmul.f32 1.442695, %v2559_v60 }
 0x416   : > { %v2237_v48 = vmul.f32 0.088388346, %v2072_v16 }
 0x417   : > { %4757 = vpow2.f32 %v2655_v50 }
 0x418   : > { %2499 = vmax.xlane.f32.xlu1 %v6257_v19  ;;  %v6261_v58 = vadd.f32 %v6237_v35, %v2237_v48 }
 0x41a   : > { %2501 = vmax.xlane.f32.xlu2 %v6261_v58  ;;  %v2466_v21 = vpop.xlane.xlu0 %2465 }
 0x41b   : > { %v2560_v40 = vsub.f32 %v6080_v4, %v2466_v21 }
 0x41d   : > { %v2075_v7 = vpop.f32.mrf.mxu1  ;;  %v6265_v14 = vpop.eup %4757  ;;  %v2657_v39 = vmul.f32 1.442695, %v2560_v40 }
 0x41e   : > { %v2238_v23 = vmul.f32 0.088388346, %v2075_v7  ;;  %2783 = vadd.xlane.f32.xlu0 %v6265_v14  ;;  %v6286_v40 = vpop.xlane.xlu2 %2487 }
 0x41f   : > { %4759 = vpow2.f32 %v2657_v39 }
 0x420   : > { %v6269_v25 = vadd.f32 %v6237_v35, %v2238_v23 }
 0x422   : > { %2503 = vmax.xlane.f32.xlu1 %v6269_v25  ;;  %v2468_v0 = vpop.xlane.xlu0 %2467 }
 0x423   : > { %v2561_v62 = vsub.f32 %v6088_v59, %v2468_v0 }
 0x425   : > { %v2077_v28 = vpop.f32.mrf.mxu1  ;;  %v2659_v20 = vmul.f32 1.442695, %v2561_v62  ;;  %v6276_v60 = vpop.eup %4759 }
 0x426   : > { %v2239_v41 = vmul.f32 0.088388346, %v2077_v28 }
 0x427   : > { %4761 = vpow2.f32 %v2659_v20 }
 0x428   : > { %v6274_v4 = vadd.f32 %v6237_v35, %v2239_v41 }
 0x42a   : > { %2785 = vadd.xlane.f32.xlu1 %v6276_v60  ;;  %2505 = vmax.xlane.f32.xlu2 %v6274_v4  ;;  %v2470_v16 = vpop.xlane.xlu1 %2469  ;;  %v6284_v59 = vpop.xlane.xlu0 %2489 }
 0x42b   : > { %v2562_v50 = vsub.f32 %v6095_v36, %v2470_v16  ;;  %v2176_v36 = vpop.f32.mrf.mxu2 }
 0x42d   : > { %v6281_v48 = vpop.eup %4761  ;;  %v2661_v21 = vmul.f32 1.442695, %v2562_v50  ;;  %v6292_v28 = vpop.f32.mrf.mxu1 }
 0x42e   : > { %6785 = vst [vmem:[#allocation39_spill] sm:$0xff] %v6281_v48  ;;  %2787 = vadd.xlane.f32.xlu0 %v6281_v48 }
 0x42f   : > { %4763 = vpow2.f32 %v2661_v21 }
 0x432   : > { %v2472_v7 = vpop.xlane.xlu1 %2471 }
 0x433   : > { %v2563_v23 = vsub.f32 %v6103_v53, %v2472_v7 }
 0x435   : > { %v6289_v39 = vpop.eup %4763  ;;  %v2663_v0 = vmul.f32 1.442695, %v2563_v23  ;;  %v2550_v23 = vsub.f32 %v6025_v61, %v6228_v45 }
 0x436   : > { %6786 = vst [vmem:[#allocation27_spill] sm:$0xff] %v6289_v39  ;;  %2789 = vadd.xlane.f32.xlu1 %v6289_v39 }
 0x437   : > { %4765 = vpow2.f32 %v2663_v0 }
 0x438   : > { %v2752_v62 = vpop.xlane.xlu0 %2751 }
 0x439   : > { %4767 = vrcp.f32 %v2752_v62 }
 0x43a   : > { %v2448_v20 = vpop.xlane.xlu1 %2447  ;;  %v2474_v41 = vpop.xlane.xlu2 %2473 }
 0x43b   : > { %v2551_v16 = vsub.f32 %v6114_v29, %v2448_v20  ;;  %v2564_v50 = vsub.f32 %v6121_v33, %v2474_v41  ;;  %v6302_v20 = vpop.f32.mrf.mxu1  ;;  %v2178_v33 = vpop.f32.mrf.mxu2  ;;  %v2637_v41 = vmul.f32 1.442695, %v2550_v23 }
 0x43c   : > { %v2247_v45 = vmul.f32 0.088388346, %v2178_v33 }
 0x43d   : > { %v6296_v21 = vpop.eup %4765  ;;  %v2639_v53 = vmul.f32 1.442695, %v2551_v16  ;;  %v2665_v7 = vmul.f32 1.442695, %v2564_v50 }
 0x43e   : > { %6787 = vst [vmem:[#allocation29_spill] sm:$0xff] %v6296_v21  ;;  %2791 = vadd.xlane.f32.xlu0 %v6296_v21 }
 0x43f   : > { %4769 = vpow2.f32 %v2639_v53  ;;  %v4768_v48 = vpop.eup %4767  ;;  %v2549_v53 = vsub.f32 %v6021_v2, %v6215_v13  ;;  %v6315_v2 = vadd.f32 %v6177_v1, %v2247_v45  ;;  %v417_v45 = vld [vmem:[%s5297_s5 + $0x20] sm:$0xff]  }
 0x440   : > { %4771 = vpow2.f32 %v2665_v7  ;;  %v2927_v61 = vmul.f32 %v4768_v48, %v6116_v51 }
 0x441   : > { %v2635_v7 = vmul.f32 1.442695, %v2549_v53 }
 0x442   : > { %v2450_v39 = vpop.xlane.xlu2 %2449  ;;  %v2991_v23 = vpack.c.bf16 %v2927_v61, %v2927_v61 }
 0x443   : > { %v2754_v0 = vpop.xlane.xlu1 %2753  ;;  %v2552_v29 = vsub.f32 %v6130_v30, %v2450_v39 }
 0x444   : > { %4773 = vrcp.f32 %v2754_v0  ;;  %v3153_v53 = vunpack.c.l.b16 %v2991_v23 }
 0x445   : > { %v6304_v62 = vpop.eup %4769  ;;  %v2641_v16 = vmul.f32 1.442695, %v2552_v29 }
 0x446   : > { %v6306_v50 = vpop.eup %4771  ;;  %2767 = vadd.xlane.f32.xlu2 %v6304_v62 }
 0x447   : > { %4775 = vpow2.f32 %v2641_v16  ;;  %2793 = vadd.xlane.f32.xlu1 %v6306_v50 }
 0x448   : > { %4777 = vpow2.f32 %v2637_v41 }
 0x44a   : > { %v4774_v30 = vpop.eup %4773  ;;  %v2452_v29 = vpop.xlane.xlu2 %2451 }
 0x44b   : > { %v2756_v39 = vpop.xlane.xlu0 %2755  ;;  %v2928_v0 = vmul.f32 %v4774_v30, %v6127_v31  ;;  %v2476_v21 = vpop.xlane.xlu1 %2475  ;;  %v2553_v51 = vsub.f32 %v6141_v8, %v2452_v29  ;;  %v2246_v31 = vmul.f32 0.088388346, %v2176_v36 }
 0x44c   : > { %4779 = vrcp.f32 %v2756_v39  ;;  %v3125_v41 = vpop.f32.mrf.mxu1 }
 0x44d   : > { %v2992_v13 = vpack.c.bf16 %v2928_v0, %v2928_v0  ;;  %v6318_v48 = vpop.eup %4775  ;;  %v2643_v33 = vmul.f32 1.442695, %v2553_v51  ;;  %4781 = vpow2.f32 %v2635_v7  ;;  %v3471_v0 = vunpack.c.l.bf16 %v417_v45 }
 0x44e   : > { %6788 = vst [vmem:[#allocation40_spill] sm:$0xff] %v6318_v48  ;;  %v6320_v16 = vpop.eup %4777  ;;  %2769 = vadd.xlane.f32.xlu0 %v6318_v48  ;;  %2521 = vmax.xlane.f32.xlu2 %v6315_v2  ;;  %v3472_v7 = vunpack.c.h.bf16 %v417_v45  ;;  %v6329_v48 = vadd.f32 %v6177_v1, %v2246_v31  ;;  %v2565_v31 = vsub.f32 %v6144_v63, %v2476_v21 }
 0x44f   : > { %6789 = vst [vmem:[#allocation42_spill] sm:$0xff] %v6320_v16  ;;  %v3154_v61 = vunpack.c.l.b16 %v2992_v13  ;;  %4783 = vpow2.f32 %v2643_v33  ;;  %2765 = vadd.xlane.f32.xlu1 %v6320_v16 }
 0x451   : > { %v3161_v8 = vpack.c.b16 %v3154_v61, %v3153_v53  ;;  %v2232_v53 = vmul.f32 0.088388346, %v6099_v26 }
 0x452   : > { %v2478_v51 = vpop.xlane.xlu2 %2477  ;;  %v4780_v23 = vpop.eup %4779 }
 0x453   : > { %v2454_v30 = vpop.xlane.xlu0 %2453  ;;  %3177 = vmatmul.bf16.vlgmr.msra.gmra.mxu2 %v3161_v8  ;;  %v2758_v29 = vpop.xlane.xlu1 %2757  ;;  %v2566_v13 = vsub.f32 %v6168_v3, %v2478_v51  ;;  %v3535_v8 = vadd.f32 %v3471_v0, %v3125_v41  ;;  %v2929_v3 = vmul.f32 %v4780_v23, %v6146_v57  ;;  %v6346_v0 = vadd.f32 %v6036_v27, %v2232_v53 }
 0x454   : > { %v2554_v39 = vsub.f32 %v6162_v9, %v2454_v30  ;;  %4785 = vrcp.f32 %v2758_v29  ;;  %v6331_v36 = vpop.eup %4781  ;;  %v3127_v61 = vpop.f32.mrf.mxu1  ;;  %v2667_v57 = vmul.f32 1.442695, %v2565_v31  ;;  %v2240_v53 = vmul.f32 0.088388346, %v6292_v28 }
 0x455   : > { %v6333_v16 = vpop.eup %4783  ;;  %v2669_v9 = vmul.f32 1.442695, %v2566_v13  ;;  %v3536_v45 = vadd.f32 %v3472_v7, %v3127_v61  ;;  %v2993_v7 = vpack.c.bf16 %v2929_v3, %v2929_v3 }
 0x456   : > { %v2645_v33 = vmul.f32 1.442695, %v2554_v39  ;;  %2763 = vadd.xlane.f32.xlu0 %v6331_v36  ;;  %2771 = vadd.xlane.f32.xlu2 %v6333_v16 }
 0x457   : > { %2519 = vmax.xlane.f32.xlu1 %v6329_v48  ;;  %v4427_v30 = vpack.c.bf16 %v3536_v45, %v3535_v8  ;;  %v419_v8 = vld [vmem:[%s5297_s5 + $0x28] sm:$0xff]  }
 0x458   : > { %4787 = vpow2.f32 %v2645_v33 }
 0x459   : > { %4789 = vpow2.f32 %v2669_v9  ;;  %4567 = vst [vmem:[%s6157_s8 + $0x20] sm:$0xff] %v4427_v30   ;;  %v2568_v9 = vsub.f32 %v6048_v49, %v6243_v12  ;;  %v2241_v12 = vmul.f32 0.088388346, %v6302_v20 }
 0x45a   : > { %v4786_v39 = vpop.eup %4785  ;;  %v2514_v45 = vpop.xlane.xlu2 %2513 }
 0x45b   : > { %v2456_v29 = vpop.xlane.xlu0 %2455  ;;  %v6343_v41 = vpop.xlane.xlu1 %2511  ;;  %v2930_v51 = vmul.f32 %v4786_v39, %v6164_v32  ;;  %v6362_v39 = vadd.f32 %v6237_v35, %v2240_v53  ;;  %v2673_v28 = vmul.f32 1.442695, %v2568_v9  ;;  %v6375_v53 = vadd.f32 %v6237_v35, %v2241_v12 }
 0x45c   : > { %v2555_v26 = vsub.f32 %v6181_v44, %v2456_v29  ;;  %v3155_v44 = vunpack.c.l.b16 %v2993_v7  ;;  %v2181_v9 = vpop.f32.mrf.mxu2 }
 0x45d   : > { %v2994_v23 = vpack.c.bf16 %v2930_v51, %v2930_v51  ;;  %v3474_v51 = vunpack.c.h.bf16 %v419_v8 }
 0x45e   : > { %v6349_v63 = vpop.eup %4787  ;;  %v2647_v21 = vmul.f32 1.442695, %v2555_v26  ;;  %2491 = vmax.xlane.f32.xlu2 %v6346_v0  ;;  %v3130_v32 = vpop.f32.mrf.mxu1  ;;  %v3473_v26 = vunpack.c.l.bf16 %v419_v8 }
 0x45f   : > { %v6351_v13 = vpop.eup %4789  ;;  %2773 = vadd.xlane.f32.xlu0 %v6349_v63  ;;  %v3156_v33 = vunpack.c.l.b16 %v2994_v23 }
 0x460   : > { %4791 = vpow2.f32 %v2647_v21  ;;  %2797 = vadd.xlane.f32.xlu1 %v6351_v13 }
 0x461   : > { %4793 = vpow2.f32 %v2667_v57  ;;  %v3162_v61 = vpack.c.b16 %v3156_v33, %v3155_v44  ;;  %v3537_v57 = vadd.f32 %v3473_v26, %v3130_v32  ;;  %v421_v26 = vld [vmem:[%s5297_s5 + $0x30] sm:$0xff]  }
 0x463   : > { %v2760_v3 = vpop.xlane.xlu0 %2759  ;;  %3182 = vmatmul.bf16.gmra.mxu2 %v3162_v61  ;;  %v2458_v31 = vpop.xlane.xlu1 %2457 }
 0x464   : > { %v2556_v30 = vsub.f32 %v6202_v6, %v2458_v31  ;;  %4795 = vrcp.f32 %v2760_v3  ;;  %v2584_v3 = vsub.f32 %v6188_v43, %v2514_v45  ;;  %v2248_v31 = vmul.f32 0.088388346, %v2181_v9 }
 0x465   : > { %v3475_v43 = vunpack.c.l.bf16 %v421_v26 }
 0x466   : > { %v6364_v29 = vpop.eup %4791  ;;  %v2649_v49 = vmul.f32 1.442695, %v2556_v30  ;;  %v3132_v6 = vpop.f32.mrf.mxu1  ;;  %v2233_v30 = vmul.f32 0.088388346, %v6111_v42 }
 0x467   : > { %v6366_v7 = vpop.eup %4793  ;;  %2775 = vadd.xlane.f32.xlu2 %v6364_v29  ;;  %v3538_v21 = vadd.f32 %v3474_v51, %v3132_v6 }
 0x468   : > { %2795 = vadd.xlane.f32.xlu0 %v6366_v7  ;;  %4797 = vpow2.f32 %v2649_v49  ;;  %2507 = vmax.xlane.f32.xlu1 %v6362_v39  ;;  %v6397_v45 = vadd.f32 %v6036_v27, %v2233_v30 }
 0x469   : > { %4799 = vpow2.f32 %v2673_v28  ;;  %v4432_v23 = vpack.c.bf16 %v3538_v21, %v3537_v57  ;;  %v2705_v57 = vmul.f32 1.442695, %v2584_v3 }
 0x46a   : > { %v6372_v33 = vpop.xlane.xlu2 %2517  ;;  %v4796_v20 = vpop.eup %4795 }
 0x46b   : > { %v2762_v44 = vpop.xlane.xlu1 %2761  ;;  %4568 = vst [vmem:[%s6157_s8 + $0x28] sm:$0xff] %v4432_v23   ;;  %v2931_v32 = vmul.f32 %v4796_v20, %v6198_v56  ;;  %v6394_v56 = vadd.f32 %v6177_v1, %v2248_v31  ;;  %v3476_v23 = vunpack.c.h.bf16 %v421_v26 }
 0x46c   : > { %4801 = vrcp.f32 %v2762_v44 }
 0x46d   : > { %v2995_v6 = vpack.c.bf16 %v2931_v32, %v2931_v32  ;;  %4803 = vpow2.f32 %v2705_v57  ;;  %v423_v57 = vld [vmem:[%s5297_s5 + $0x38] sm:$0xff]  }
 0x46e   : > { %v6378_v61 = vpop.eup %4797  ;;  %v3135_v35 = vpop.f32.mrf.mxu1 }
 0x46f   : > { %v6380_v8 = vpop.eup %4799  ;;  %2509 = vmax.xlane.f32.xlu2 %v6375_v53  ;;  %v3157_v20 = vunpack.c.l.b16 %v2995_v6  ;;  %v3539_v32 = vadd.f32 %v3475_v43, %v3135_v35 }
 0x470   : > { %2777 = vadd.xlane.f32.xlu0 %v6378_v61  ;;  %2801 = vadd.xlane.f32.xlu1 %v6380_v8 }
 0x472   : > { %v4802_v28 = vpop.eup %4801  ;;  %v2462_v49 = vpop.xlane.xlu2 %2461 }
 0x473   : > { %v6389_v51 = vpop.xlane.xlu1 %2515  ;;  %v2932_v12 = vmul.f32 %v4802_v28, %v6207_v10  ;;  %v2558_v21 = vsub.f32 %v6223_v46, %v2462_v49  ;;  %v2567_v10 = vsub.f32 %v6041_v52, %v6230_v18  ;;  %v6405_v49 = vpop.eup %4803 }
 0x475   : > { %v2996_v42 = vpack.c.bf16 %v2932_v12, %v2932_v12  ;;  %v2653_v44 = vmul.f32 1.442695, %v2558_v21  ;;  %v2671_v26 = vmul.f32 1.442695, %v2567_v10  ;;  %v2583_v10 = vsub.f32 %v6184_v5, %v6343_v41 }
 0x476   : > { %v3137_v46 = vpop.f32.mrf.mxu1  ;;  %v2569_v5 = vsub.f32 %v6055_v15, %v6245_v22 }
 0x477   : > { %v3158_v9 = vunpack.c.l.b16 %v2996_v42  ;;  %4805 = vpow2.f32 %v2653_v44  ;;  %v3540_v3 = vadd.f32 %v3476_v23, %v3137_v46  ;;  %v3478_v23 = vunpack.c.h.bf16 %v423_v57  ;;  %v2183_v44 = vpop.f32.mrf.mxu2 }
 0x478   : > { %2493 = vmax.xlane.f32.xlu0 %v6397_v45  ;;  %2523 = vmax.xlane.f32.xlu1 %v6394_v56 }
 0x479   : > { %v3163_v27 = vpack.c.b16 %v3158_v9, %v3157_v20  ;;  %v4437_v31 = vpack.c.bf16 %v3540_v3, %v3539_v32  ;;  %v2249_v3 = vmul.f32 0.088388346, %v2183_v44 }
 0x47b   : > { %3187 = vmatmul.bf16.gmra.mxu2 %v3163_v27  ;;  %v2460_v30 = vpop.xlane.xlu1 %2459  ;;  %4569 = vst [vmem:[%s6157_s8 + $0x30] sm:$0xff] %v4437_v31  }
 0x47c   : > { %v2557_v28 = vsub.f32 %v6234_v34, %v2460_v30  ;;  %v3477_v34 = vunpack.c.l.bf16 %v423_v57 }
 0x47d   : > { %v2498_v52 = vpop.xlane.xlu2 %2497  ;;  %v6407_v18 = vpop.eup %4805 }
 0x47e   : > { %v2651_v12 = vmul.f32 1.442695, %v2557_v28  ;;  %v3140_v35 = vpop.f32.mrf.mxu1  ;;  %v2576_v6 = vsub.f32 %v6241_v47, %v2498_v52  ;;  %v2586_v52 = vsub.f32 %v6210_v17, %v6372_v33  ;;  %v2585_v33 = vsub.f32 %v6220_v37, %v6389_v51 }
 0x47f   : > { %v3541_v46 = vadd.f32 %v3477_v34, %v3140_v35  ;;  %v2572_v37 = vsub.f32 %v6092_v55, %v6284_v59 }
 0x480   : > { %4807 = vpow2.f32 %v2651_v12  ;;  %2781 = vadd.xlane.f32.xlu0 %v6407_v18  ;;  %2833 = vadd.xlane.f32.xlu1 %v6405_v49  ;;  %v2689_v43 = vmul.f32 1.442695, %v2576_v6  ;;  %v2709_v35 = vmul.f32 1.442695, %v2586_v52 }
 0x481   : > { %4809 = vpow2.f32 %v2671_v26  ;;  %v2703_v26 = vmul.f32 1.442695, %v2583_v10  ;;  %v2707_v10 = vmul.f32 1.442695, %v2585_v33 }
 0x482   : > { %4811 = vpow2.f32 %v2689_v43 }
 0x483   : > { %v2496_v21 = vpop.xlane.xlu1 %2495 }
 0x484   : > { %v2575_v9 = vsub.f32 %v6250_v24, %v2496_v21  ;;  %v6425_v24 = vadd.f32 %v6177_v1, %v2249_v3  ;;  %v2675_v1 = vmul.f32 1.442695, %v2569_v5 }
 0x486   : > { %v6413_v42 = vpop.eup %4807  ;;  %v3142_v47 = vpop.f32.mrf.mxu1  ;;  %v2687_v27 = vmul.f32 1.442695, %v2575_v9 }
 0x487   : > { %v6415_v20 = vpop.eup %4809  ;;  %2779 = vadd.xlane.f32.xlu2 %v6413_v42  ;;  %v3542_v32 = vadd.f32 %v3478_v23, %v3142_v47 }
 0x488   : > { %2799 = vadd.xlane.f32.xlu0 %v6415_v20  ;;  %v6429_v12 = vpop.eup %4811  ;;  %4813 = vpow2.f32 %v2687_v27 }
 0x489   : > { %v4442_v31 = vpack.c.bf16 %v3542_v32, %v3541_v46 }
 0x48b   : > { %v2500_v30 = vpop.xlane.xlu1 %2499  ;;  %4570 = vst [vmem:[%s6157_s8 + $0x38] sm:$0xff] %v4442_v31   ;;  %v2681_v31 = vmul.f32 1.442695, %v2572_v37 }
 0x48c   : > { %v2577_v28 = vsub.f32 %v6257_v19, %v2500_v30  ;;  %v2570_v19 = vsub.f32 %v6066_v54, %v6253_v11 }
 0x48d   : > { %v2502_v6 = vpop.xlane.xlu2 %2501 }
 0x48e   : > { %v2691_v41 = vmul.f32 1.442695, %v2577_v28  ;;  %v6437_v15 = vpop.eup %4813  ;;  %v2677_v22 = vmul.f32 1.442695, %v2570_v19  ;;  %v2578_v54 = vsub.f32 %v6261_v58, %v2502_v6 }
 0x48f   : > { %2525 = vmax.xlane.f32.xlu2 %v6425_v24 }
 0x490   : > { %4815 = vpow2.f32 %v2691_v41  ;;  %2817 = vadd.xlane.f32.xlu0 %v6429_v12  ;;  %v2693_v43 = vmul.f32 1.442695, %v2578_v54 }
 0x491   : > { %4817 = vpow2.f32 %v2703_v26  ;;  %v2784_v57 = vpop.xlane.xlu0 %2783 }
 0x492   : > { %4819 = vpow2.f32 %v2675_v1 }
 0x493   : > { %4821 = vpow2.f32 %v2709_v35 }
 0x494   : > { %4823 = vrcp.f32 %v2784_v57 }
 0x495   : > { %v2504_v21 = vpop.xlane.xlu1 %2503  ;;  %4825 = vpow2.f32 %v2677_v22 }
 0x496   : > { %v6439_v34 = vpop.eup %4815  ;;  %v2579_v11 = vsub.f32 %v6269_v25, %v2504_v21  ;;  %v2571_v25 = vsub.f32 %v6077_v38, %v6286_v40  ;;  %v6791_v21 = vld [vmem:[#allocation27_spill] sm:$0xff] }
 0x497   : > { %v6441_v17 = vpop.eup %4817  ;;  %2819 = vadd.xlane.f32.xlu1 %v6439_v34  ;;  %2815 = vadd.xlane.f32.xlu2 %v6437_v15 }
 0x498   : > { %2831 = vadd.xlane.f32.xlu0 %v6441_v17  ;;  %v6450_v23 = vpop.eup %4819  ;;  %v2695_v44 = vmul.f32 1.442695, %v2579_v11  ;;  %v2679_v32 = vmul.f32 1.442695, %v2571_v25 }
 0x499   : > { %v6452_v9 = vpop.eup %4821 }
 0x49a   : > { %v4824_v46 = vpop.eup %4823 }
 0x49b   : > { %v6454_v58 = vpop.eup %4825  ;;  %v2943_v51 = vmul.f32 %v4824_v46, %v6265_v14 }
 0x49d   : > { %v2786_v47 = vpop.xlane.xlu1 %2785  ;;  %v3007_v38 = vpack.c.bf16 %v2943_v51, %v2943_v51  ;;  %v2506_v28 = vpop.xlane.xlu2 %2505 }
 0x49e   : > { %4827 = vrcp.f32 %v2786_v47  ;;  %v2580_v55 = vsub.f32 %v6274_v4, %v2506_v28  ;;  %v6790_v4 = vld [vmem:[#allocation39_spill] sm:$0xff] }
 0x49f   : > { %4829 = vpow2.f32 %v2693_v43  ;;  %2837 = vadd.xlane.f32.xlu1 %v6452_v9  ;;  %2803 = vadd.xlane.f32.xlu2 %v6450_v23  ;;  %v3259_v14 = vunpack.c.l.b16 %v3007_v38 }
 0x4a0   : > { %4831 = vpow2.f32 %v2695_v44  ;;  %2805 = vadd.xlane.f32.xlu0 %v6454_v58  ;;  %v2697_v19 = vmul.f32 1.442695, %v2580_v55 }
 0x4a1   : > { %4833 = vpow2.f32 %v2707_v10  ;;  %v2788_v30 = vpop.xlane.xlu0 %2787 }
 0x4a2   : > { %4835 = vpow2.f32 %v2679_v32  ;;  %v6792_v32 = vld [vmem:[#allocation29_spill] sm:$0xff] }
 0x4a3   : > { %4837 = vrcp.f32 %v2788_v30 }
 0x4a4   : > { %v4828_v3 = vpop.eup %4827  ;;  %4839 = vpow2.f32 %v2681_v31 }
 0x4a5   : > { %v6464_v27 = vpop.eup %4829  ;;  %v2944_v40 = vmul.f32 %v4828_v3, %v6276_v60 }
 0x4a6   : > { %v6467_v26 = vpop.eup %4831 }
 0x4a7   : > { %v6469_v5 = vpop.eup %4833  ;;  %v3008_v41 = vpack.c.bf16 %v2944_v40, %v2944_v40  ;;  %2823 = vadd.xlane.f32.xlu1 %v6467_v26  ;;  %2821 = vadd.xlane.f32.xlu2 %v6464_v27 }
 0x4a8   : > { %2835 = vadd.xlane.f32.xlu0 %v6469_v5  ;;  %v6475_v1 = vpop.eup %4835 }
 0x4a9   : > { %v3260_v60 = vunpack.c.l.b16 %v3008_v41  ;;  %v2790_v59 = vpop.xlane.xlu1 %2789  ;;  %v4838_v35 = vpop.eup %4837 }
 0x4aa   : > { %4841 = vrcp.f32 %v2790_v59  ;;  %v6477_v6 = vpop.eup %4839  ;;  %v2945_v57 = vmul.f32 %v4838_v35, %v6790_v4 }
 0x4ab   : > { %v3267_v52 = vpack.c.b16 %v3260_v60, %v3259_v14  ;;  %4843 = vpow2.f32 %v2697_v19 }
 0x4ac   : > { %v3009_v43 = vpack.c.bf16 %v2945_v57, %v2945_v57  ;;  %v6793_v57 = vld [vmem:[#allocation40_spill] sm:$0xff] }
 0x4ad   : > { %3283 = vmatmul.bf16.vlgmr.msrb.gmra.mxu1 %v3267_v52 }
 0x4ae   : > { %v3261_v47 = vunpack.c.l.b16 %v3009_v43 }
 0x4af   : > { %2807 = vadd.xlane.f32.xlu2 %v6475_v1 }
 0x4b0   : > { %2809 = vadd.xlane.f32.xlu0 %v6477_v6  ;;  %v4842_v22 = vpop.eup %4841 }
 0x4b1   : > { %v2946_v54 = vmul.f32 %v4842_v22, %v6791_v21  ;;  %v2792_v33 = vpop.xlane.xlu0 %2791  ;;  %v6483_v44 = vpop.eup %4843 }
 0x4b2   : > { %4845 = vrcp.f32 %v2792_v33 }
 0x4b3   : > { %v3010_v11 = vpack.c.bf16 %v2946_v54, %v2946_v54 }
 0x4b5   : > { %v3262_v10 = vunpack.c.l.b16 %v3010_v11 }
 0x4b7   : > { %2825 = vadd.xlane.f32.xlu2 %v6483_v44  ;;  %v3268_v37 = vpack.c.b16 %v3262_v10, %v3261_v47 }
 0x4b8   : > { %v4846_v51 = vpop.eup %4845 }
 0x4b9   : > { %v2768_v46 = vpop.xlane.xlu2 %2767  ;;  %v2947_v3 = vmul.f32 %v4846_v51, %v6792_v32 }
 0x4ba   : > { %v2794_v25 = vpop.xlane.xlu1 %2793 }
 0x4bb   : > { %4847 = vrcp.f32 %v2794_v25  ;;  %v3011_v60 = vpack.c.bf16 %v2947_v3, %v2947_v3 }
 0x4bc   : > { %4849 = vrcp.f32 %v2768_v46 }
 0x4bd   : > { %3288 = vmatmul.bf16.gmra.mxu1 %v3268_v37  ;;  %v3263_v22 = vunpack.c.l.b16 %v3011_v60  ;;  %v6794_v37 = vld [vmem:[#allocation42_spill] sm:$0xff] }
 0x4c1   : > { %v4848_v31 = vpop.eup %4847  ;;  %v2770_v38 = vpop.xlane.xlu0 %2769 }
 0x4c2   : > { %v2522_v40 = vpop.xlane.xlu2 %2521  ;;  %v4850_v30 = vpop.eup %4849  ;;  %4851 = vrcp.f32 %v2770_v38  ;;  %v2948_v55 = vmul.f32 %v4848_v31, %v6306_v50 }
 0x4c3   : > { %v2766_v28 = vpop.xlane.xlu1 %2765  ;;  %v2588_v41 = vsub.f32 %v6315_v2, %v2522_v40  ;;  %v2935_v52 = vmul.f32 %v4850_v30, %v6304_v62 }
 0x4c4   : > { %4853 = vrcp.f32 %v2766_v28  ;;  %v3012_v59 = vpack.c.bf16 %v2948_v55, %v2948_v55 }
 0x4c5   : > { %v2713_v14 = vmul.f32 1.442695, %v2588_v41  ;;  %v2999_v4 = vpack.c.bf16 %v2935_v52, %v2935_v52 }
 0x4c6   : > { %v3264_v19 = vunpack.c.l.b16 %v3012_v59 }
 0x4c7   : > { %4855 = vpow2.f32 %v2713_v14  ;;  %v3206_v62 = vunpack.c.l.b16 %v2999_v4 }
 0x4c8   : > { %v4852_v35 = vpop.eup %4851  ;;  %v3269_v43 = vpack.c.b16 %v3264_v19, %v3263_v22 }
 0x4c9   : > { %v2936_v21 = vmul.f32 %v4852_v35, %v6793_v57  ;;  %v2764_v54 = vpop.xlane.xlu0 %2763 }
 0x4ca   : > { %v2772_v11 = vpop.xlane.xlu2 %2771  ;;  %v4854_v33 = vpop.eup %4853  ;;  %4857 = vrcp.f32 %v2764_v54 }
 0x4cb   : > { %v2520_v2 = vpop.xlane.xlu1 %2519  ;;  %v3000_v50 = vpack.c.bf16 %v2936_v21, %v2936_v21  ;;  %4859 = vrcp.f32 %v2772_v11  ;;  %v2934_v51 = vmul.f32 %v4854_v33, %v6794_v37 }
 0x4cc   : > { %v2587_v10 = vsub.f32 %v6329_v48, %v2520_v2 }
 0x4cd   : > { %v6492_v47 = vpop.eup %4855  ;;  %3293 = vmatmul.bf16.gmra.mxu1 %v3269_v43  ;;  %v3207_v46 = vunpack.c.l.b16 %v3000_v50  ;;  %v2998_v48 = vpack.c.bf16 %v2934_v51, %v2934_v51 }
 0x4ce   : > { %v2711_v25 = vmul.f32 1.442695, %v2587_v10  ;;  %2841 = vadd.xlane.f32.xlu1 %v6492_v47 }
 0x4cf   : > { %v3214_v32 = vpack.c.b16 %v3207_v46, %v3206_v62  ;;  %v3160_v19 = vunpack.c.l.b16 %v2998_v48 }
 0x4d0   : > { %4861 = vpow2.f32 %v2711_v25  ;;  %v4858_v3 = vpop.eup %4857 }
 0x4d1   : > { %3230 = vmatmul.bf16.vlgmr.msra.gmra.mxu3 %v3214_v32  ;;  %v2933_v40 = vmul.f32 %v4858_v3, %v6331_v36  ;;  %v4860_v30 = vpop.eup %4859  ;;  %v425_v36 = vld [vmem:[%s5297_s5 + $0x40] sm:$0xff]  }
 0x4d2   : > { %v2774_v31 = vpop.xlane.xlu0 %2773  ;;  %v2492_v38 = vpop.xlane.xlu2 %2491  ;;  %v2937_v35 = vmul.f32 %v4860_v30, %v6333_v16  ;;  %v3479_v33 = vunpack.c.l.bf16 %v425_v36  ;;  %v3480_v43 = vunpack.c.h.bf16 %v425_v36 }
 0x4d3   : > { %4863 = vrcp.f32 %v2774_v31  ;;  %v2798_v28 = vpop.xlane.xlu1 %2797  ;;  %v2573_v41 = vsub.f32 %v6346_v0, %v2492_v38  ;;  %v2997_v55 = vpack.c.bf16 %v2933_v40, %v2933_v40 }
 0x4d4   : > { %4865 = vrcp.f32 %v2798_v28  ;;  %v3001_v54 = vpack.c.bf16 %v2937_v35, %v2937_v35 }
 0x4d5   : > { %v2683_v14 = vmul.f32 1.442695, %v2573_v41  ;;  %v3159_v52 = vunpack.c.l.b16 %v2997_v55 }
 0x4d6   : > { %v6498_v60 = vpop.eup %4861  ;;  %v3178_v59 = vpop.f32.mrf.mxu2  ;;  %v3208_v25 = vunpack.c.l.b16 %v3001_v54 }
 0x4d7   : > { %4867 = vpow2.f32 %v2683_v14  ;;  %2839 = vadd.xlane.f32.xlu0 %v6498_v60  ;;  %v3164_v22 = vpack.c.b16 %v3160_v19, %v3159_v52  ;;  %v3543_v51 = vadd.f32 %v3479_v33, %v3178_v59 }
 0x4d9   : > { %v4864_v4 = vpop.eup %4863  ;;  %3192 = vmatmul.bf16.gmra.mxu2 %v3164_v22 }
 0x4da   : > { %v2776_v21 = vpop.xlane.xlu2 %2775  ;;  %v2938_v0 = vmul.f32 %v4864_v4, %v6349_v63  ;;  %v4866_v11 = vpop.eup %4865 }
 0x4db   : > { %v2796_v57 = vpop.xlane.xlu0 %2795  ;;  %v2508_v2 = vpop.xlane.xlu1 %2507  ;;  %v2950_v63 = vmul.f32 %v4866_v11, %v6351_v13 }
 0x4dc   : > { %4869 = vrcp.f32 %v2796_v57  ;;  %v2581_v50 = vsub.f32 %v6362_v39, %v2508_v2  ;;  %v3002_v16 = vpack.c.bf16 %v2938_v0, %v2938_v0 }
 0x4dd   : > { %v6505_v10 = vpop.eup %4867  ;;  %4871 = vrcp.f32 %v2776_v21  ;;  %v3014_v30 = vpack.c.bf16 %v2950_v63, %v2950_v63 }
 0x4de   : > { %v2699_v62 = vmul.f32 1.442695, %v2581_v50  ;;  %v3180_v46 = vpop.f32.mrf.mxu2  ;;  %2811 = vadd.xlane.f32.xlu2 %v6505_v10  ;;  %v3209_v37 = vunpack.c.l.b16 %v3002_v16 }
 0x4df   : > { %v3544_v32 = vadd.f32 %v3480_v43, %v3180_v46  ;;  %v3266_v35 = vunpack.c.l.b16 %v3014_v30 }
 0x4e0   : > { %4873 = vpow2.f32 %v2699_v62  ;;  %v3215_v3 = vpack.c.b16 %v3209_v37, %v3208_v25 }
 0x4e1   : > { %v4447_v38 = vpack.c.bf16 %v3544_v32, %v3543_v51 }
 0x4e2   : > { %v4870_v31 = vpop.eup %4869  ;;  %3235 = vmatmul.bf16.gmra.mxu3 %v3215_v3  ;;  %v2510_v40 = vpop.xlane.xlu2 %2509 }
 0x4e3   : > { %v2778_v39 = vpop.xlane.xlu0 %2777  ;;  %v2949_v48 = vmul.f32 %v4870_v31, %v6366_v7  ;;  %v4872_v28 = vpop.eup %4871  ;;  %4571 = vst [vmem:[%s6157_s8 + $0x40] sm:$0xff] %v4447_v38   ;;  %v2582_v55 = vsub.f32 %v6375_v53, %v2510_v40  ;;  %v427_v7 = vld [vmem:[%s5297_s5 + $0x48] sm:$0xff]  }
 0x4e4   : > { %4875 = vrcp.f32 %v2778_v39  ;;  %v2802_v41 = vpop.xlane.xlu1 %2801  ;;  %v2939_v36 = vmul.f32 %v4872_v28, %v6364_v29  ;;  %v3481_v0 = vunpack.c.l.bf16 %v427_v7  ;;  %v3482_v11 = vunpack.c.h.bf16 %v427_v7  ;;  %v429_v28 = vld [vmem:[%s5297_s5 + $0x50] sm:$0xff]  }
 0x4e5   : > { %v3013_v13 = vpack.c.bf16 %v2949_v48, %v2949_v48  ;;  %v2701_v14 = vmul.f32 1.442695, %v2582_v55  ;;  %v3483_v7 = vunpack.c.l.bf16 %v429_v28 }
 0x4e6   : > { %v6512_v59 = vpop.eup %4873  ;;  %v3183_v52 = vpop.f32.mrf.mxu2  ;;  %v3003_v53 = vpack.c.bf16 %v2939_v36, %v2939_v36 }
 0x4e7   : > { %v3265_v19 = vunpack.c.l.b16 %v3013_v13  ;;  %4877 = vpow2.f32 %v2701_v14  ;;  %2827 = vadd.xlane.f32.xlu1 %v6512_v59  ;;  %v3545_v46 = vadd.f32 %v3481_v0, %v3183_v52 }
 0x4e8   : > { %v3210_v16 = vunpack.c.l.b16 %v3003_v53 }
 0x4e9   : > { %v3270_v22 = vpack.c.b16 %v3266_v35, %v3265_v19 }
 0x4ea   : > { %v4876_v4 = vpop.eup %4875 }
 0x4eb   : > { %v2494_v57 = vpop.xlane.xlu0 %2493  ;;  %3298 = vmatmul.bf16.gmra.mxu1 %v3270_v22  ;;  %v2940_v21 = vmul.f32 %v4876_v4, %v6378_v61  ;;  %v3484_v4 = vunpack.c.h.bf16 %v429_v28 }
 0x4ec   : > { %v2574_v54 = vsub.f32 %v6397_v45, %v2494_v57  ;;  %v2524_v33 = vpop.xlane.xlu1 %2523 }
 0x4ed   : > { %v3004_v2 = vpack.c.bf16 %v2940_v21, %v2940_v21  ;;  %v6519_v43 = vpop.eup %4877  ;;  %v2589_v61 = vsub.f32 %v6394_v56, %v2524_v33 }
 0x4ee   : > { %v2685_v29 = vmul.f32 1.442695, %v2574_v54  ;;  %v3185_v50 = vpop.f32.mrf.mxu2  ;;  %2829 = vadd.xlane.f32.xlu2 %v6519_v43 }
 0x4ef   : > { %v3211_v62 = vunpack.c.l.b16 %v3004_v2  ;;  %v3546_v25 = vadd.f32 %v3482_v11, %v3185_v50  ;;  %v2715_v45 = vmul.f32 1.442695, %v2589_v61 }
 0x4f0   : > { %4879 = vpow2.f32 %v2685_v29 }
 0x4f1   : > { %v3216_v37 = vpack.c.b16 %v3211_v62, %v3210_v16  ;;  %v4452_v63 = vpack.c.bf16 %v3546_v25, %v3545_v46  ;;  %4881 = vrcp.f32 %v2802_v41 }
 0x4f3   : > { %3240 = vmatmul.bf16.gmra.mxu3 %v3216_v37  ;;  %4572 = vst [vmem:[%s6157_s8 + $0x48] sm:$0xff] %v4452_v63   ;;  %v2782_v51 = vpop.xlane.xlu0 %2781 }
 0x4f4   : > { %4883 = vrcp.f32 %v2782_v51  ;;  %v2834_v14 = vpop.xlane.xlu1 %2833 }
 0x4f5   : > { %4885 = vpow2.f32 %v2715_v45 }
 0x4f6   : > { %v6524_v32 = vpop.eup %4879 }
 0x4f7   : > { %2813 = vadd.xlane.f32.xlu0 %v6524_v32  ;;  %v4882_v3 = vpop.eup %4881 }
 0x4f8   : > { %v2952_v40 = vmul.f32 %v4882_v3, %v6380_v8 }
 0x4fa   : > { %v2780_v31 = vpop.xlane.xlu2 %2779  ;;  %v4884_v38 = vpop.eup %4883  ;;  %v3016_v13 = vpack.c.bf16 %v2952_v40, %v2952_v40 }
 0x4fb   : > { %v2800_v39 = vpop.xlane.xlu0 %2799  ;;  %4887 = vrcp.f32 %v2780_v31  ;;  %v6527_v56 = vpop.eup %4885  ;;  %v2942_v30 = vmul.f32 %v4884_v38, %v6407_v18 }
 0x4fc   : > { %4889 = vrcp.f32 %v2800_v39  ;;  %v3313_v53 = vunpack.c.l.b16 %v3016_v13 }
 0x4fd   : > { %v3006_v35 = vpack.c.bf16 %v2942_v30, %v2942_v30  ;;  %4891 = vrcp.f32 %v2834_v14 }
 0x4fe   : > { %v3188_v48 = vpop.f32.mrf.mxu2 }
 0x4ff   : > { %2843 = vadd.xlane.f32.xlu0 %v6527_v56  ;;  %v3213_v11 = vunpack.c.l.b16 %v3006_v35 }
 0x501   : > { %v4888_v41 = vpop.eup %4887 }
 0x502   : > { %v4890_v55 = vpop.eup %4889  ;;  %v2526_v52 = vpop.xlane.xlu2 %2525  ;;  %v2941_v19 = vmul.f32 %v4888_v41, %v6413_v42  ;;  %v3547_v42 = vadd.f32 %v3483_v7, %v3188_v48 }
 0x503   : > { %v2951_v36 = vmul.f32 %v4890_v55, %v6415_v20  ;;  %v2818_v22 = vpop.xlane.xlu0 %2817  ;;  %v2590_v8 = vsub.f32 %v6425_v24, %v2526_v52  ;;  %v4892_v62 = vpop.eup %4891 }
 0x504   : > { %v3005_v57 = vpack.c.bf16 %v2941_v19, %v2941_v19  ;;  %4893 = vrcp.f32 %v2818_v22  ;;  %v2968_v37 = vmul.f32 %v4892_v62, %v6405_v49 }
 0x505   : > { %v3015_v21 = vpack.c.bf16 %v2951_v36, %v2951_v36  ;;  %v2717_v18 = vmul.f32 1.442695, %v2590_v8 }
 0x506   : > { %v3190_v0 = vpop.f32.mrf.mxu2  ;;  %v3212_v54 = vunpack.c.l.b16 %v3005_v57  ;;  %v3032_v31 = vpack.c.bf16 %v2968_v37, %v2968_v37 }
 0x507   : > { %v3312_v33 = vunpack.c.l.b16 %v3015_v21  ;;  %4895 = vpow2.f32 %v2717_v18  ;;  %v3548_v2 = vadd.f32 %v3484_v4, %v3190_v0 }
 0x508   : > { %v3217_v20 = vpack.c.b16 %v3213_v11, %v3212_v54  ;;  %v3419_v55 = vunpack.c.l.b16 %v3032_v31 }
 0x509   : > { %v3320_v29 = vpack.c.b16 %v3313_v53, %v3312_v33  ;;  %v4457_v50 = vpack.c.bf16 %v3548_v2, %v3547_v42 }
 0x50a   : > { %3245 = vmatmul.bf16.gmra.mxu3 %v3217_v20  ;;  %v2820_v24 = vpop.xlane.xlu1 %2819  ;;  %v2816_v16 = vpop.xlane.xlu2 %2815 }
 0x50b   : > { %4573 = vst [vmem:[%s6157_s8 + $0x50] sm:$0xff] %v4457_v50   ;;  %v2832_v46 = vpop.xlane.xlu0 %2831  ;;  %3336 = vmatmul.bf16.vlgmr.msrb.gmra.mxu2 %v3320_v29  ;;  %v4894_v61 = vpop.eup %4893 }
 0x50c   : > { %4897 = vrcp.f32 %v2832_v46  ;;  %v2960_v63 = vmul.f32 %v4894_v61, %v6429_v12 }
 0x50d   : > { %v6537_v25 = vpop.eup %4895  ;;  %4899 = vrcp.f32 %v2816_v16 }
 0x50e   : > { %2845 = vadd.xlane.f32.xlu1 %v6537_v25  ;;  %v3024_v48 = vpack.c.bf16 %v2960_v63, %v2960_v63 }
 0x510   : > { %v3366_v12 = vunpack.c.l.b16 %v3024_v48 }
 0x512   : > { %v4898_v45 = vpop.eup %4897  ;;  %v2804_v51 = vpop.xlane.xlu2 %2803 }
 0x513   : > { %v4900_v3 = vpop.eup %4899  ;;  %v2967_v38 = vmul.f32 %v4898_v45, %v6441_v17  ;;  %v2806_v39 = vpop.xlane.xlu0 %2805 }
 0x514   : > { %v2838_v40 = vpop.xlane.xlu1 %2837  ;;  %v2959_v30 = vmul.f32 %v4900_v3, %v6437_v15  ;;  %4901 = vrcp.f32 %v2806_v39 }
 0x515   : > { %v3031_v28 = vpack.c.bf16 %v2967_v38, %v2967_v38  ;;  %4903 = vrcp.f32 %v2804_v51  ;;  %v441_v38 = vld [vmem:[%s5297_s5 + $0x80] sm:$0xff]  }
 0x516   : > { %v3023_v41 = vpack.c.bf16 %v2959_v30, %v2959_v30  ;;  %4905 = vrcp.f32 %v2838_v40 }
 0x517   : > { %v3418_v49 = vunpack.c.l.b16 %v3031_v28  ;;  %4907 = vrcp.f32 %v2820_v24  ;;  %v3495_v28 = vunpack.c.l.bf16 %v441_v38 }
 0x518   : > { %v3365_v13 = vunpack.c.l.b16 %v3023_v41  ;;  %v3496_v41 = vunpack.c.h.bf16 %v441_v38 }
 0x519   : > { %v3426_v14 = vpack.c.b16 %v3419_v55, %v3418_v49 }
 0x51a   : > { %v4902_v52 = vpop.eup %4901  ;;  %v3373_v19 = vpack.c.b16 %v3366_v12, %v3365_v13  ;;  %v2822_v35 = vpop.xlane.xlu2 %2821 }
 0x51b   : > { %v4904_v17 = vpop.eup %4903  ;;  %v2836_v36 = vpop.xlane.xlu0 %2835  ;;  %3442 = vmatmul.bf16.vlgmr.msra.gmra.mxu1 %v3426_v14  ;;  %v2954_v7 = vmul.f32 %v4902_v52, %v6454_v58 }
 0x51c   : > { %v4906_v15 = vpop.eup %4905  ;;  %4909 = vrcp.f32 %v2836_v36  ;;  %3389 = vmatmul.bf16.vlgmr.msrb.gmra.mxu3 %v3373_v19  ;;  %v2953_v22 = vmul.f32 %v4904_v17, %v6450_v23  ;;  %v2824_v11 = vpop.xlane.xlu1 %2823 }
 0x51d   : > { %v4908_v8 = vpop.eup %4907  ;;  %4911 = vrcp.f32 %v2822_v35  ;;  %v3018_v4 = vpack.c.bf16 %v2954_v7, %v2954_v7  ;;  %v2970_v18 = vmul.f32 %v4906_v15, %v6452_v9  ;;  %v443_v15 = vld [vmem:[%s5297_s5 + $0x88] sm:$0xff]  }
 0x51e   : > { %v3017_v57 = vpack.c.bf16 %v2953_v22, %v2953_v22  ;;  %v2961_v0 = vmul.f32 %v4908_v8, %v6439_v34  ;;  %v3497_v22 = vunpack.c.l.bf16 %v443_v15  ;;  %v3498_v8 = vunpack.c.h.bf16 %v443_v15 }
 0x51f   : > { %v3315_v21 = vunpack.c.l.b16 %v3018_v4  ;;  %v3034_v23 = vpack.c.bf16 %v2970_v18, %v2970_v18 }
 0x520   : > { %v3314_v53 = vunpack.c.l.b16 %v3017_v57  ;;  %v3025_v50 = vpack.c.bf16 %v2961_v0, %v2961_v0 }
 0x521   : > { %v3421_v16 = vunpack.c.l.b16 %v3034_v23 }
 0x522   : > { %v4910_v54 = vpop.eup %4909  ;;  %v3321_v33 = vpack.c.b16 %v3315_v21, %v3314_v53  ;;  %v2808_v42 = vpop.xlane.xlu2 %2807  ;;  %v3367_v62 = vunpack.c.l.b16 %v3025_v50 }
 0x523   : > { %v4912_v58 = vpop.eup %4911  ;;  %v2810_v2 = vpop.xlane.xlu0 %2809  ;;  %4913 = vrcp.f32 %v2808_v42  ;;  %v2969_v20 = vmul.f32 %v4910_v54, %v6469_v5 }
 0x524   : > { %4915 = vrcp.f32 %v2810_v2  ;;  %3341 = vmatmul.bf16.gmra.mxu2 %v3321_v33  ;;  %v2962_v29 = vmul.f32 %v4912_v58, %v6464_v27 }
 0x525   : > { %4917 = vrcp.f32 %v2824_v11  ;;  %v3033_v9 = vpack.c.bf16 %v2969_v20, %v2969_v20  ;;  %v445_v11 = vld [vmem:[%s5297_s5 + $0x90] sm:$0xff]  }
 0x526   : > { %v3026_v24 = vpack.c.bf16 %v2962_v29, %v2962_v29  ;;  %v3499_v42 = vunpack.c.l.bf16 %v445_v11  ;;  %v3500_v58 = vunpack.c.h.bf16 %v445_v11 }
 0x527   : > { %v3420_v34 = vunpack.c.l.b16 %v3033_v9 }
 0x528   : > { %v3368_v46 = vunpack.c.l.b16 %v3026_v24 }
 0x529   : > { %v4914_v61 = vpop.eup %4913  ;;  %v3427_v37 = vpack.c.b16 %v3421_v16, %v3420_v34 }
 0x52a   : > { %v4916_v63 = vpop.eup %4915  ;;  %v3284_v45 = vpop.f32.mrf.mxu1  ;;  %v3374_v51 = vpack.c.b16 %v3368_v46, %v3367_v62  ;;  %v2955_v3 = vmul.f32 %v4914_v61, %v6475_v1  ;;  %v433_v61 = vld [vmem:[%s5297_s5 + $0x60] sm:$0xff]  }
 0x52b   : > { %v2826_v5 = vpop.xlane.xlu2 %2825  ;;  %v4918_v31 = vpop.eup %4917  ;;  %3447 = vmatmul.bf16.gmra.mxu1 %v3427_v37  ;;  %v2956_v27 = vmul.f32 %v4916_v63, %v6477_v6  ;;  %v3559_v52 = vadd.f32 %v3495_v28, %v3284_v45  ;;  %v3487_v63 = vunpack.c.l.bf16 %v433_v61 }
 0x52c   : > { %4919 = vrcp.f32 %v2826_v5  ;;  %3394 = vmatmul.bf16.gmra.mxu3 %v3374_v51  ;;  %v3019_v39 = vpack.c.bf16 %v2955_v3, %v2955_v3  ;;  %v2963_v30 = vmul.f32 %v4918_v31, %v6467_v26  ;;  %v3488_v51 = vunpack.c.h.bf16 %v433_v61 }
 0x52d   : > { %v3020_v40 = vpack.c.bf16 %v2956_v27, %v2956_v27  ;;  %v431_v27 = vld [vmem:[%s5297_s5 + $0x58] sm:$0xff]  }
 0x52e   : > { %v3316_v48 = vunpack.c.l.b16 %v3019_v39  ;;  %v3027_v14 = vpack.c.bf16 %v2963_v30, %v2963_v30  ;;  %v3486_v30 = vunpack.c.h.bf16 %v431_v27 }
 0x52f   : > { %v3317_v55 = vunpack.c.l.b16 %v3020_v40 }
 0x530   : > { %v3369_v17 = vunpack.c.l.b16 %v3027_v14 }
 0x531   : > { %v3322_v12 = vpack.c.b16 %v3317_v55, %v3316_v48  ;;  %v3485_v48 = vunpack.c.l.bf16 %v431_v27 }
 0x532   : > { %v4920_v49 = vpop.eup %4919  ;;  %v3286_v1 = vpop.f32.mrf.mxu1 }
 0x533   : > { %v2964_v13 = vmul.f32 %v4920_v49, %v6483_v44  ;;  %v3560_v6 = vadd.f32 %v3496_v41, %v3286_v1  ;;  %v435_v1 = vld [vmem:[%s5297_s5 + $0x68] sm:$0xff]  }
 0x534   : > { %3346 = vmatmul.bf16.gmra.mxu2 %v3322_v12 }
 0x535   : > { %v3028_v19 = vpack.c.bf16 %v2964_v13, %v2964_v13  ;;  %v4487_v35 = vpack.c.bf16 %v3560_v6, %v3559_v52 }
 0x537   : > { %v3370_v36 = vunpack.c.l.b16 %v3028_v19  ;;  %4579 = vst [vmem:[%s6157_s8 + $0x80] sm:$0xff] %v4487_v35   ;;  %v447_v19 = vld [vmem:[%s5297_s5 + $0x98] sm:$0xff]  }
 0x539   : > { %v3375_v26 = vpack.c.b16 %v3370_v36, %v3369_v17 }
 0x53a   : > { %v3289_v7 = vpop.f32.mrf.mxu1 }
 0x53b   : > { %v3561_v44 = vadd.f32 %v3497_v22, %v3289_v7  ;;  %v3490_v7 = vunpack.c.h.bf16 %v435_v1  ;;  %v3501_v22 = vunpack.c.l.bf16 %v447_v19 }
 0x53c   : > { %3399 = vmatmul.bf16.gmra.mxu3 %v3375_v26  ;;  %v3489_v26 = vunpack.c.l.bf16 %v435_v1 }
 0x541   : > { %v2842_v4 = vpop.xlane.xlu1 %2841 }
 0x542   : > { %v3291_v57 = vpop.f32.mrf.mxu1  ;;  %4921 = vrcp.f32 %v2842_v4 }
 0x543   : > { %v3562_v21 = vadd.f32 %v3498_v8, %v3291_v57  ;;  %v3502_v8 = vunpack.c.h.bf16 %v447_v19  ;;  %v465_v19 = vld [vmem:[%s5297_s5 + $0xe0] sm:$0xff]  }
 0x545   : > { %v4492_v18 = vpack.c.bf16 %v3562_v21, %v3561_v44 }
 0x547   : > { %4580 = vst [vmem:[%s6157_s8 + $0x88] sm:$0xff] %v4492_v18  }
 0x548   : > { %v4922_v54 = vpop.eup %4921 }
 0x549   : > { %v2972_v33 = vmul.f32 %v4922_v54, %v6492_v47 }
 0x54a   : > { %v2840_v53 = vpop.xlane.xlu0 %2839  ;;  %v3294_v0 = vpop.f32.mrf.mxu1 }
 0x54b   : > { %4923 = vrcp.f32 %v2840_v53  ;;  %v3036_v29 = vpack.c.bf16 %v2972_v33, %v2972_v33  ;;  %v3563_v50 = vadd.f32 %v3499_v42, %v3294_v0 }
 0x54d   : > { %v3423_v46 = vunpack.c.l.b16 %v3036_v29 }
 0x551   : > { %v4924_v2 = vpop.eup %4923  ;;  %v2812_v47 = vpop.xlane.xlu2 %2811 }
 0x552   : > { %v3296_v20 = vpop.f32.mrf.mxu1  ;;  %v2971_v23 = vmul.f32 %v4924_v2, %v6498_v60 }
 0x553   : > { %v3564_v9 = vadd.f32 %v3500_v58, %v3296_v20 }
 0x554   : > { %v3035_v24 = vpack.c.bf16 %v2971_v23, %v2971_v23  ;;  %v3231_v16 = vpop.f32.mrf.mxu3 }
 0x555   : > { %v4497_v34 = vpack.c.bf16 %v3564_v9, %v3563_v50  ;;  %v3551_v3 = vadd.f32 %v3487_v63, %v3231_v16  ;;  %v437_v50 = vld [vmem:[%s5297_s5 + $0x70] sm:$0xff]  }
 0x556   : > { %v3422_v62 = vunpack.c.l.b16 %v3035_v24  ;;  %v3492_v16 = vunpack.c.h.bf16 %v437_v50 }
 0x557   : > { %4581 = vst [vmem:[%s6157_s8 + $0x90] sm:$0xff] %v4497_v34   ;;  %v3491_v34 = vunpack.c.l.bf16 %v437_v50 }
 0x558   : > { %v3428_v37 = vpack.c.b16 %v3423_v46, %v3422_v62 }
 0x55a   : > { %3452 = vmatmul.bf16.gmra.mxu1 %v3428_v37  ;;  %v2828_v45 = vpop.xlane.xlu1 %2827 }
 0x55b   : > { %4925 = vrcp.f32 %v2828_v45 }
 0x55c   : > { %v3193_v60 = vpop.f32.mrf.mxu2  ;;  %v3233_v5 = vpop.f32.mrf.mxu3 }
 0x55d   : > { %v3552_v31 = vadd.f32 %v3488_v51, %v3233_v5  ;;  %v3549_v49 = vadd.f32 %v3485_v48, %v3193_v60  ;;  %v449_v48 = vld [vmem:[%s5297_s5 + $0xa0] sm:$0xff]  }
 0x55f   : > { %v4467_v38 = vpack.c.bf16 %v3552_v31, %v3551_v3 }
 0x561   : > { %v2830_v39 = vpop.xlane.xlu2 %2829  ;;  %v4926_v40 = vpop.eup %4925  ;;  %4575 = vst [vmem:[%s6157_s8 + $0x60] sm:$0xff] %v4467_v38  }
 0x562   : > { %4927 = vrcp.f32 %v2830_v39  ;;  %v2965_v55 = vmul.f32 %v4926_v40, %v6512_v59  ;;  %v439_v39 = vld [vmem:[%s5297_s5 + $0x78] sm:$0xff]  }
 0x563   : > { %4929 = vrcp.f32 %v2812_v47 }
 0x564   : > { %v3195_v28 = vpop.f32.mrf.mxu2  ;;  %v3029_v17 = vpack.c.bf16 %v2965_v55, %v2965_v55 }
 0x565   : > { %v3236_v41 = vpop.f32.mrf.mxu3  ;;  %v3550_v12 = vadd.f32 %v3486_v30, %v3195_v28  ;;  %v3493_v30 = vunpack.c.l.bf16 %v439_v39  ;;  %v3494_v28 = vunpack.c.h.bf16 %v439_v39 }
 0x566   : > { %v3371_v4 = vunpack.c.l.b16 %v3029_v17  ;;  %v3553_v21 = vadd.f32 %v3489_v26, %v3236_v41  ;;  %v3503_v41 = vunpack.c.l.bf16 %v449_v48  ;;  %v3520_v17 = vunpack.c.h.bf16 %v465_v19 }
 0x567   : > { %v4462_v52 = vpack.c.bf16 %v3550_v12, %v3549_v49 }
 0x568   : > { %v3299_v13 = vpop.f32.mrf.mxu1  ;;  %v4928_v14 = vpop.eup %4927 }
 0x569   : > { %v2966_v6 = vmul.f32 %v4928_v14, %v6519_v43  ;;  %v4930_v36 = vpop.eup %4929  ;;  %4574 = vst [vmem:[%s6157_s8 + $0x58] sm:$0xff] %v4462_v52   ;;  %v3565_v54 = vadd.f32 %v3501_v22, %v3299_v13 }
 0x56a   : > { %v2814_v35 = vpop.xlane.xlu0 %2813  ;;  %v2957_v44 = vmul.f32 %v4930_v36, %v6505_v10 }
 0x56b   : > { %4931 = vrcp.f32 %v2814_v35  ;;  %v3030_v15 = vpack.c.bf16 %v2966_v6, %v2966_v6  ;;  %v3519_v35 = vunpack.c.l.bf16 %v465_v19  ;;  %v463_v19 = vld [vmem:[%s5297_s5 + $0xd8] sm:$0xff]  }
 0x56c   : > { %v3021_v58 = vpack.c.bf16 %v2957_v44, %v2957_v44 }
 0x56d   : > { %v3238_v59 = vpop.f32.mrf.mxu3  ;;  %v3372_v57 = vunpack.c.l.b16 %v3030_v15  ;;  %v457_v15 = vld [vmem:[%s5297_s5 + $0xc0] sm:$0xff]  }
 0x56e   : > { %v3554_v43 = vadd.f32 %v3490_v7, %v3238_v59  ;;  %v3318_v10 = vunpack.c.l.b16 %v3021_v58  ;;  %v3511_v59 = vunpack.c.l.bf16 %v457_v15 }
 0x56f   : > { %v3376_v53 = vpack.c.b16 %v3372_v57, %v3371_v4  ;;  %v3512_v4 = vunpack.c.h.bf16 %v457_v15 }
 0x570   : > { %v3301_v18 = vpop.f32.mrf.mxu1  ;;  %v4472_v11 = vpack.c.bf16 %v3554_v43, %v3553_v21 }
 0x571   : > { %v4932_v0 = vpop.eup %4931  ;;  %v3566_v33 = vadd.f32 %v3502_v8, %v3301_v18  ;;  %3404 = vmatmul.bf16.gmra.mxu3 %v3376_v53  ;;  %v451_v53 = vld [vmem:[%s5297_s5 + $0xa8] sm:$0xff]  }
 0x572   : > { %v2958_v42 = vmul.f32 %v4932_v0, %v6524_v32  ;;  %4576 = vst [vmem:[%s6157_s8 + $0x68] sm:$0xff] %v4472_v11   ;;  %v2844_v24 = vpop.xlane.xlu0 %2843  ;;  %v3505_v11 = vunpack.c.l.bf16 %v451_v53 }
 0x573   : > { %v4502_v2 = vpack.c.bf16 %v3566_v33, %v3565_v54  ;;  %4933 = vrcp.f32 %v2844_v24  ;;  %v467_v54 = vld [vmem:[%s5297_s5 + $0xe8] sm:$0xff]   ;;  %v3506_v33 = vunpack.c.h.bf16 %v451_v53  ;;  %v471_v53 = vld [vmem:[%s5297_s5 + $0xf8] sm:$0xff]  }
 0x574   : > { %v3022_v20 = vpack.c.bf16 %v2958_v42, %v2958_v42  ;;  %v3521_v42 = vunpack.c.l.bf16 %v467_v54  ;;  %v3522_v58 = vunpack.c.h.bf16 %v467_v54  ;;  %v3526_v54 = vunpack.c.h.bf16 %v471_v53 }
 0x575   : > { %4582 = vst [vmem:[%s6157_s8 + $0x98] sm:$0xff] %v4502_v2  }
 0x576   : > { %v3241_v23 = vpop.f32.mrf.mxu3  ;;  %v3319_v29 = vunpack.c.l.b16 %v3022_v20 }
 0x577   : > { %v3555_v46 = vadd.f32 %v3491_v34, %v3241_v23 }
 0x578   : > { %v3323_v9 = vpack.c.b16 %v3319_v29, %v3318_v10 }
 0x579   : > { %v4934_v47 = vpop.eup %4933 }
 0x57a   : > { %3351 = vmatmul.bf16.gmra.mxu2 %v3323_v9  ;;  %v2973_v63 = vmul.f32 %v4934_v47, %v6527_v56  ;;  %v3504_v56 = vunpack.c.h.bf16 %v449_v48  ;;  %v459_v9 = vld [vmem:[%s5297_s5 + $0xc8] sm:$0xff]  }
 0x57c   : > { %v3037_v60 = vpack.c.bf16 %v2973_v63, %v2973_v63  ;;  %v453_v63 = vld [vmem:[%s5297_s5 + $0xb0] sm:$0xff]  }
 0x57e   : > { %v3243_v62 = vpop.f32.mrf.mxu3  ;;  %v3424_v31 = vunpack.c.l.b16 %v3037_v60  ;;  %v3508_v60 = vunpack.c.h.bf16 %v453_v63 }
 0x57f   : > { %v3556_v32 = vadd.f32 %v3492_v16, %v3243_v62  ;;  %v3513_v62 = vunpack.c.l.bf16 %v459_v9 }
 0x581   : > { %v4477_v61 = vpack.c.bf16 %v3556_v32, %v3555_v46  ;;  %v2846_v37 = vpop.xlane.xlu1 %2845  ;;  %v3514_v46 = vunpack.c.h.bf16 %v459_v9 }
 0x582   : > { %4935 = vrcp.f32 %v2846_v37 }
 0x583   : > { %4577 = vst [vmem:[%s6157_s8 + $0x70] sm:$0xff] %v4477_v61  }
 0x588   : > { %v4936_v45 = vpop.eup %4935 }
 0x589   : > { %v2974_v51 = vmul.f32 %v4936_v45, %v6537_v25 }
 0x58b   : > { %v3038_v5 = vpack.c.bf16 %v2974_v51, %v2974_v51  ;;  %v3507_v51 = vunpack.c.l.bf16 %v453_v63 }
 0x58d   : > { %v3246_v3 = vpop.f32.mrf.mxu3  ;;  %v3425_v27 = vunpack.c.l.b16 %v3038_v5 }
 0x58e   : > { %v3337_v38 = vpop.f32.mrf.mxu2  ;;  %v3557_v49 = vadd.f32 %v3493_v30, %v3246_v3 }
 0x58f   : > { %v3429_v40 = vpack.c.b16 %v3425_v27, %v3424_v31  ;;  %v3567_v1 = vadd.f32 %v3503_v41, %v3337_v38  ;;  %v461_v38 = vld [vmem:[%s5297_s5 + $0xd0] sm:$0xff]  }
 0x590   : > { %v3516_v48 = vunpack.c.h.bf16 %v461_v38 }
 0x591   : > { %3457 = vmatmul.bf16.gmra.mxu1 %v3429_v40  ;;  %v3515_v40 = vunpack.c.l.bf16 %v461_v38 }
 0x595   : > { %v3248_v55 = vpop.f32.mrf.mxu3 }
 0x596   : > { %v3558_v25 = vadd.f32 %v3494_v28, %v3248_v55  ;;  %v3339_v12 = vpop.f32.mrf.mxu2 }
 0x597   : > { %v3568_v13 = vadd.f32 %v3504_v56, %v3339_v12 }
 0x598   : > { %v4482_v14 = vpack.c.bf16 %v3558_v25, %v3557_v49  ;;  %v3443_v52 = vpop.f32.mrf.mxu1  ;;  %v469_v49 = vld [vmem:[%s5297_s5 + $0xf0] sm:$0xff]  }
 0x599   : > { %v4507_v6 = vpack.c.bf16 %v3568_v13, %v3567_v1  ;;  %v3583_v7 = vadd.f32 %v3519_v35, %v3443_v52  ;;  %v3523_v25 = vunpack.c.l.bf16 %v469_v49  ;;  %v3524_v12 = vunpack.c.h.bf16 %v469_v49 }
 0x59a   : > { %4578 = vst [vmem:[%s6157_s8 + $0x78] sm:$0xff] %v4482_v14   ;;  %v3517_v35 = vunpack.c.l.bf16 %v463_v19 }
 0x59b   : > { %4583 = vst [vmem:[%s6157_s8 + $0xa0] sm:$0xff] %v4507_v6  }
 0x59f   : > { %v3390_v36 = vpop.f32.mrf.mxu3 }
 0x5a0   : > { %v3445_v26 = vpop.f32.mrf.mxu1  ;;  %v3575_v21 = vadd.f32 %v3511_v59, %v3390_v36 }
 0x5a1   : > { %v3584_v22 = vadd.f32 %v3520_v17, %v3445_v26  ;;  %v3518_v17 = vunpack.c.h.bf16 %v463_v19 }
 0x5a3   : > { %v4547_v8 = vpack.c.bf16 %v3584_v22, %v3583_v7  ;;  %v455_v22 = vld [vmem:[%s5297_s5 + $0xb8] sm:$0xff]  }
 0x5a4   : > { %v3509_v59 = vunpack.c.l.bf16 %v455_v22 }
 0x5a5   : > { %4591 = vst [vmem:[%s6157_s8 + $0xe0] sm:$0xff] %v4547_v8  }
 0x5a7   : > { %v3342_v57 = vpop.f32.mrf.mxu2  ;;  %v3392_v44 = vpop.f32.mrf.mxu3 }
 0x5a8   : > { %v3576_v43 = vadd.f32 %v3512_v4, %v3392_v44  ;;  %v3448_v18 = vpop.f32.mrf.mxu1  ;;  %v3569_v23 = vadd.f32 %v3505_v11, %v3342_v57  ;;  %v3510_v4 = vunpack.c.h.bf16 %v455_v22 }
 0x5a9   : > { %v3585_v50 = vadd.f32 %v3521_v42, %v3448_v18 }
 0x5aa   : > { %v4527_v0 = vpack.c.bf16 %v3576_v43, %v3575_v21 }
 0x5ac   : > { %4587 = vst [vmem:[%s6157_s8 + $0xc0] sm:$0xff] %v4527_v0   ;;  %v3525_v0 = vunpack.c.l.bf16 %v471_v53 }
 0x5af   : > { %v3344_v2 = vpop.f32.mrf.mxu2  ;;  %v3395_v20 = vpop.f32.mrf.mxu3 }
 0x5b0   : > { %v3570_v10 = vadd.f32 %v3506_v33, %v3344_v2  ;;  %v3450_v29 = vpop.f32.mrf.mxu1  ;;  %v3577_v37 = vadd.f32 %v3513_v62, %v3395_v20 }
 0x5b1   : > { %v3586_v24 = vadd.f32 %v3522_v58, %v3450_v29 }
 0x5b2   : > { %v4512_v34 = vpack.c.bf16 %v3570_v10, %v3569_v23 }
 0x5b3   : > { %v4552_v16 = vpack.c.bf16 %v3586_v24, %v3585_v50 }
 0x5b4   : > { %4584 = vst [vmem:[%s6157_s8 + $0xa8] sm:$0xff] %v4512_v34  }
 0x5b5   : > { %4592 = vst [vmem:[%s6157_s8 + $0xe8] sm:$0xff] %v4552_v16  }
 0x5b7   : > { %v3347_v32 = vpop.f32.mrf.mxu2  ;;  %v3397_v61 = vpop.f32.mrf.mxu3 }
 0x5b8   : > { %v3578_v47 = vadd.f32 %v3514_v46, %v3397_v61  ;;  %v3571_v31 = vadd.f32 %v3507_v51, %v3347_v32 }
 0x5ba   : > { %v4532_v45 = vpack.c.bf16 %v3578_v47, %v3577_v37 }
 0x5bc   : > { %4588 = vst [vmem:[%s6157_s8 + $0xc8] sm:$0xff] %v4532_v45  }
 0x5bf   : > { %v3349_v5 = vpop.f32.mrf.mxu2  ;;  %v3400_v3 = vpop.f32.mrf.mxu3 }
 0x5c0   : > { %v3572_v27 = vadd.f32 %v3508_v60, %v3349_v5  ;;  %v3579_v28 = vadd.f32 %v3515_v40, %v3400_v3 }
 0x5c2   : > { %v4517_v39 = vpack.c.bf16 %v3572_v27, %v3571_v31 }
 0x5c4   : > { %4585 = vst [vmem:[%s6157_s8 + $0xb0] sm:$0xff] %v4517_v39  }
 0x5c7   : > { %v3402_v30 = vpop.f32.mrf.mxu3 }
 0x5c8   : > { %v3580_v41 = vadd.f32 %v3516_v48, %v3402_v30 }
 0x5ca   : > { %v4537_v56 = vpack.c.bf16 %v3580_v41, %v3579_v28 }
 0x5cc   : > { %4589 = vst [vmem:[%s6157_s8 + $0xd0] sm:$0xff] %v4537_v56  }
 0x5d7   : > { %v3453_v55 = vpop.f32.mrf.mxu1 }
 0x5d8   : > { %v3587_v13 = vadd.f32 %v3523_v25, %v3453_v55 }
 0x5df   : > { %v3455_v1 = vpop.f32.mrf.mxu1 }
 0x5e0   : > { %v3588_v14 = vadd.f32 %v3524_v12, %v3455_v1 }
 0x5e2   : > { %v4557_v52 = vpack.c.bf16 %v3588_v14, %v3587_v13 }
 0x5e4   : > { %4593 = vst [vmem:[%s6157_s8 + $0xf0] sm:$0xff] %v4557_v52  }
 0x5f4   : > { %v3405_v6 = vpop.f32.mrf.mxu3 }
 0x5f5   : > { %v3581_v7 = vadd.f32 %v3517_v35, %v3405_v6 }
 0x5fc   : > { %v3407_v26 = vpop.f32.mrf.mxu3 }
 0x5fd   : > { %v3352_v36 = vpop.f32.mrf.mxu2  ;;  %v3582_v15 = vadd.f32 %v3518_v17, %v3407_v26 }
 0x5fe   : > { %v3573_v44 = vadd.f32 %v3509_v59, %v3352_v36 }
 0x5ff   : > { %v4542_v8 = vpack.c.bf16 %v3582_v15, %v3581_v7 }
 0x601   : > { %4590 = vst [vmem:[%s6157_s8 + $0xd8] sm:$0xff] %v4542_v8  }
 0x605   : > { %v3354_v57 = vpop.f32.mrf.mxu2 }
 0x606   : > { %v3574_v21 = vadd.f32 %v3510_v4, %v3354_v57 }
 0x608   : > { %v4522_v43 = vpack.c.bf16 %v3574_v21, %v3573_v44 }
 0x60a   : > { %4586 = vst [vmem:[%s6157_s8 + $0xb8] sm:$0xff] %v4522_v43  }
 0x60e   : > { %v3458_v18 = vpop.f32.mrf.mxu1 }
 0x60f   : > { %v3589_v33 = vadd.f32 %v3525_v0, %v3458_v18 }
 0x616   : > { %v3460_v11 = vpop.f32.mrf.mxu1 }
 0x617   : > { %v3590_v42 = vadd.f32 %v3526_v54, %v3460_v11 }
 0x619   : > { %v4562_v58 = vpack.c.bf16 %v3590_v42, %v3589_v33 }
 0x61b   : > { %4594 = vst [vmem:[%s6157_s8 + $0xf8] sm:$0xff] %v4562_v58  }
 0x61c   : > { %5066 = shalt.err (!%p5063_p2)
}
 0x61d   : > { %s5117_s27 = smov 64   ;;  %s5118_s7 = smov 4  }
 0x61e   : > { %4625 = dma.vmem_to_hbm [thread:$0]  (%p5192_p10), %s3733_s6, 4096, %s3735_s16, %s3720_s13, %s5117_s27, %s5117_s27, %s5118_s7  }
 0x61f PF: > { %p4642_p13 = scmp.ge.s32.totalorder %s5111_s22, 2  ;;  %s3749_s17 = sand.u32 1, %s5099_s19  }
 0x620   : > { %s3750_s11 = scalar_lea.sflag [#allocation6], %s3749_s17 }
 0x621   : > { %p4638_p3 = pnand %p4642_p13, %p5196_p11 }
 0x623   : > { %p4639_p4 = pneg %p4638_p3 }
 0x625   : > { %5094 = dma.done.wait (%p4639_p4), %s3750_s11, 4096  }
 0x626   : > { %5096 = vsyncadd (%p4639_p4), %s3750_s11, 4294963200  ;;  %s6795_s26 = sld [smem:[#allocation15_spill]]  ;;  %p28_p5 = scmp.ge.s32.totalorder %s5172_s24, 5  }
 0x627   : > { %s6796_s19 = smov %s5103_s20  ;;  %s6797_s20 = smov %s5107_s21 }
 0x628   : > { %s6799_s22 = smov %s5172_s24  ;;  %30 = sbr.rel (!%p28_p5) target bundleno = 13 (0xd), region = 101 }
 0x62c   : > { %s6798_s21 = smov %s6795_s26 }
 0x62d   :  { %3756 = vsyncpa [#allocation5], 1 }
 0x62e   :  { %3758 = vsyncpa [#allocation5 + $0x1], 1 }
 0x62f   :  { %3759 = vsyncpa [#allocation8], 1 }
 0x630   :  { %3761 = vsyncpa [#allocation8 + $0x1], 1 }
 0x631   :  { %3762 = vsyncpa [#allocation6], 1 }
 0x632   :  { %3764 = vsyncpa [#allocation6 + $0x1], 1 }

</bundles_post_ra>
